<compile_context>
chip_gen: v5e
topology: v5e:2x2
jax: 0.10.0
libtpu: 0.0.40
codegen_flags: <defaults>
</compile_context>

<pallas_src>
import math

import jax
import jax.numpy as jnp
from jax.experimental import pallas as pl
from jax.experimental.pallas import tpu as pltpu

# ---------------- synthetic model config (small shapes) ----------------
MODEL_CONFIG = dict(
    input_dim=16,        # per-input feature dim
    num_units=32,        # GRU hidden units H
    num_classes=4,
    num_outputs=4,
    num_inputs=8,        # number of inputs == GRU sequence length T
    output_points_fw=[7, 3, None, 5],
    output_points_bw=[0, None, 2, 4],
    region="na",
)
FEATURE_SIZE = 50        # hard-coded to 50 in the PyTorch __init__
NUM_LAYERS = 8
BN_EPS = 1e-5
LEAKY_SLOPE = 0.01
SUBLANE = 8


def _leaky(v):
    return jnp.where(v > 0.0, v, LEAKY_SLOPE * v)


# ---------------- fused forward kernel ----------------
def make_fused_forward(cfg, b_real, b_pad):
    T = cfg["num_inputs"]
    H = cfg["num_units"]
    C = cfg["num_classes"]
    NO = cfg["num_outputs"]
    D = cfg["input_dim"]
    W = 2 * H                     # bidirectional channel width (64)
    G2 = 4 * W                    # padded fused gate width [r|z|n|pad], blocks of W (256)
    BP = b_pad
    assert BP % SUBLANE == 0 and b_real <= BP
    assert FEATURE_SIZE <= W, "feature padding assumes feature_size <= 2*num_units"
    out_fw = cfg["output_points_fw"]
    out_bw = cfg["output_points_bw"]
    inv_b = 1.0 / float(b_real)
    inv_cnt = 1.0 / float(T * b_real)
    f32 = jnp.float32

    def kernel(x_ref, featw_ref, featb_ref, featg_ref, featbt_ref,
               wih_ref, bih_ref, whh_ref, bhh_ref,
               bng_ref, bnb_ref, hw_ref, hb_ref,
               logits_ref, gi_scr):
        # ---- trace-time constant masks (full 2-D slabs, lane/sublane aligned) ----
        bmask = (jax.lax.broadcasted_iota(jnp.int32, (BP, W), 0) < b_real).astype(f32)
        gcol = jax.lax.broadcasted_iota(jnp.int32, (BP, G2), 1)
        gfw = ((gcol & (W - 1)) < H).astype(f32)        # forward-direction gate columns
        gbw = 1.0 - gfw                                 # backward-direction gate columns
        hcol = jax.lax.broadcasted_iota(jnp.int32, (BP, W), 1)
        mfw = (hcol < H).astype(f32)                    # forward half of hidden slab
        mbw = 1.0 - mfw

        # ---- feature stage: per-input Linear + LeakyReLU + BatchNorm1d (masked batch stats) ----
        x = x_ref[...]                                              # (T, BP, D)
        y = jnp.einsum("tbd,tdf->tbf", x, featw_ref[...],
                       preferred_element_type=f32) + featb_ref[...]  # (T, BP, W)
        y = _leaky(y)
        mu = jnp.sum(y * bmask, axis=1, keepdims=True) * inv_b
        dy = y - mu
        var = jnp.sum(dy * dy * bmask, axis=1, keepdims=True) * inv_b
        feat = dy * jax.lax.rsqrt(var + BN_EPS) * featg_ref[...] + featbt_ref[...]

        h0 = jnp.zeros((BP, W), f32)                    # [h_fw | h_bw], zeros (init_hidden)

        # ---- 8 stacked bidirectional GRU layers + BatchNorm + residual ----
        def layer_body(i, carry):
            h, act = carry                               # (BP, W), (T, BP, W)
            wih = wih_ref[i]                             # (W, G2)
            whh = whh_ref[i]                             # (W, G2), block-diag fw/bw
            bih = bih_ref[i]                             # (1, G2)
            bhh = bhh_ref[i]                             # (1, G2)
            bng = bng_ref[i]                             # (1, W)
            bnb = bnb_ref[i]                             # (1, W)

            # hoisted input projection for all timesteps & both directions: 1 matmul
            gi = (jnp.dot(act.reshape(T * BP, W), wih,
                          preferred_element_type=f32).reshape(T, BP, G2) + bih)
            # write backward-direction columns in time-reversed order so each step
            # reads one contiguous, tile-aligned (BP, G2) block
            for t in range(T):
                gi_scr[t] = gi[t] * gfw + gi[T - 1 - t] * gbw

            hs = []
            hh = h
            for s in range(T):
                g_in = gi_scr[s]                                         # (BP, G2)
                gh = jnp.dot(hh, whh, preferred_element_type=f32) + bhh  # (BP, G2)
                rz = jax.nn.sigmoid(g_in[:, 0:2 * W] + gh[:, 0:2 * W])   # (BP, 128)
                r = rz[:, 0:W]
                z = rz[:, W:2 * W]
                n = jnp.tanh(g_in[:, 2 * W:3 * W] + r * gh[:, 2 * W:3 * W])
                hh = (1.0 - z) * n + z * hh
                hs.append(hh)

            # re-pair directions into the time-ordered bidirectional output
            out = jnp.stack([hs[t] * mfw + hs[T - 1 - t] * mbw
                             for t in range(T)], axis=0)                 # (T, BP, W)

            # BatchNorm1d(2H): training-mode stats over (T, real batch), masked
            s1 = jnp.sum(out * bmask, axis=0)                            # (BP, W)
            mean = jnp.sum(s1, axis=0, keepdims=True) * inv_cnt          # (1, W)
            dd = out - mean
            v1 = jnp.sum(dd * dd * bmask, axis=0)
            var_l = jnp.sum(v1, axis=0, keepdims=True) * inv_cnt
            yb = dd * jax.lax.rsqrt(var_l + BN_EPS) * bng + bnb

            res = jnp.where(i > 0, 1.0, 0.0).astype(f32)                 # residual only for i>0
            act_new = yb + res * act
            return hh, act_new

        _, act_fin = jax.lax.fori_loop(0, NUM_LAYERS, layer_body, (h0, feat))

        # final LeakyReLU on the stack output
        act_fin = _leaky(act_fin)

        # ---- per-output-point linear heads (padded to uniform (2H, C)) ----
        zero_slab = jnp.zeros((BP, W), f32)
        head_ins = []
        for t_fw, t_bw in zip(out_fw, out_bw):
            fw_part = act_fin[int(t_fw)] * mfw if t_fw is not None else zero_slab
            bw_part = act_fin[int(t_bw)] * mbw if t_bw is not None else zero_slab
            head_ins.append(fw_part + bw_part)
        head_in = jnp.stack(head_ins, axis=0)                            # (NO, BP, W)
        logits_ref[...] = jnp.einsum("obw,owc->obc", head_in, hw_ref[...],
                                     preferred_element_type=f32) + hb_ref[...]

    in_shapes = [
        (T, BP, D), (T, D, W), (T, 1, W), (T, 1, W), (T, 1, W),
        (NUM_LAYERS, W, G2), (NUM_LAYERS, 1, G2),
        (NUM_LAYERS, W, G2), (NUM_LAYERS, 1, G2),
        (NUM_LAYERS, 1, W), (NUM_LAYERS, 1, W),
        (NO, W, C), (NO, 1, C),
    ]
    flops = (2 * T * BP * D * W
             + NUM_LAYERS * (2 * T * BP * W * G2 + 2 * T * BP * W * G2)
             + 2 * NO * BP * W * C)
    transcendentals = NUM_LAYERS * T * BP * 3 * W
    bytes_accessed = (sum(math.prod(s) for s in in_shapes) + NO * BP * C) * 4

    vmem_spec = pl.BlockSpec(memory_space=pltpu.MemorySpace.VMEM)
    return pl.pallas_call(
        kernel,
        out_shape=jax.ShapeDtypeStruct((NO, BP, C), jnp.float32),
        in_specs=[vmem_spec] * len(in_shapes),
        out_specs=vmem_spec,
        scratch_shapes=[pltpu.VMEM((T, BP, G2), jnp.float32)],   # reordered gate projections
        cost_estimate=pl.CostEstimate(flops=int(flops),
                                      transcendentals=int(transcendentals),
                                      bytes_accessed=int(bytes_accessed)),
    )


# ---------------- parameter init (deterministic, synthetic) ----------------
def _pack_gate_cols(w_fw, w_bw, H, W, G2):
    """Pack per-direction [r|z|n] (rows, 3H) weights into the fused, interleaved,
    lane-padded layout [r_fw r_bw | z_fw z_bw | n_fw n_bw | 0-pad] -> (rows, G2)."""
    rows = w_fw.shape[0]
    out = jnp.zeros((rows, G2), jnp.float32)
    for g in range(3):
        out = out.at[:, g * W:g * W + H].set(w_fw[:, g * H:(g + 1) * H])
        out = out.at[:, g * W + H:(g + 1) * W].set(w_bw[:, g * H:(g + 1) * H])
    return out


def init_params(key, cfg):
    H = cfg["num_units"]
    D = cfg["input_dim"]
    T = cfg["num_inputs"]
    C = cfg["num_classes"]
    F = FEATURE_SIZE
    W = 2 * H
    G2 = 4 * W
    keys = iter(jax.random.split(key, 512))

    def u(shape, scale):
        return jax.random.uniform(next(keys), shape, jnp.float32, -scale, scale)

    p = {}
    fs = 1.0 / (D ** 0.5)
    # feature-stage Linear pre-padded to the lane-aligned width W (pad cols stay 0)
    p["feat_w"] = jnp.zeros((T, D, W), jnp.float32).at[:, :, :F].set(u((T, D, F), fs))
    p["feat_b"] = jnp.zeros((T, 1, W), jnp.float32).at[:, :, :F].set(u((T, 1, F), fs))
    p["feat_gamma"] = jnp.ones((T, 1, W), jnp.float32)
    p["feat_beta"] = jnp.zeros((T, 1, W), jnp.float32)

    s = 1.0 / (H ** 0.5)
    wih_l, bih_l, whh_l, bhh_l = [], [], [], []
    for layer in range(NUM_LAYERS):
        din = F if layer == 0 else W
        wih = _pack_gate_cols(u((din, 3 * H), s), u((din, 3 * H), s), H, W, G2)
        if din < W:                                  # zero-pad layer-0 input rows to W
            wih = jnp.concatenate([wih, jnp.zeros((W - din, G2), jnp.float32)], axis=0)
        wih_l.append(wih)
        bih_l.append(_pack_gate_cols(u((1, 3 * H), s), u((1, 3 * H), s), H, W, G2))
        # recurrent weights: fw hidden rows [0:H] feed fw gate cols, bw rows [H:2H] -> bw cols
        hf = u((H, 3 * H), s)
        hb = u((H, 3 * H), s)
        whh = jnp.zeros((W, G2), jnp.float32)
        for g in range(3):
            whh = whh.at[0:H, g * W:g * W + H].set(hf[:, g * H:(g + 1) * H])
            whh = whh.at[H:W, g * W + H:(g + 1) * W].set(hb[:, g * H:(g + 1) * H])
        whh_l.append(whh)
        bhh_l.append(_pack_gate_cols(u((1, 3 * H), s), u((1, 3 * H), s), H, W, G2))
    p["wih"] = jnp.stack(wih_l)                      # (L, W, G2)
    p["bih"] = jnp.stack(bih_l)                      # (L, 1, G2)
    p["whh"] = jnp.stack(whh_l)                      # (L, W, G2)
    p["bhh"] = jnp.stack(bhh_l)                      # (L, 1, G2)

    p["bn_gamma"] = jnp.ones((NUM_LAYERS, 1, W), jnp.float32)
    p["bn_beta"] = jnp.zeros((NUM_LAYERS, 1, W), jnp.float32)

    # output heads, zero-padded to a uniform (2H, C) so they batch into one matmul
    hw, hb_ = [], []
    for t_fw, t_bw in zip(cfg["output_points_fw"], cfg["output_points_bw"]):
        if t_fw is not None and t_bw is not None:
            sc = 1.0 / (W ** 0.5)
            w = u((W, C), sc)
        elif t_fw is not None:
            sc = 1.0 / (H ** 0.5)
            w = jnp.zeros((W, C), jnp.float32).at[:H].set(u((H, C), sc))
        else:
            sc = 1.0 / (H ** 0.5)
            w = jnp.zeros((W, C), jnp.float32).at[H:].set(u((H, C), sc))
        hw.append(w)
        hb_.append(u((1, C), sc))
    p["head_w"] = jnp.stack(hw)                      # (num_outputs, W, C)
    p["head_b"] = jnp.stack(hb_)                     # (num_outputs, 1, C)
    return p


# ---------------- forward pass ----------------
def gru_model_forward(x, params, cfg):
    b_real = x.shape[0]
    b_pad = max(SUBLANE, ((b_real + SUBLANE - 1) // SUBLANE) * SUBLANE)
    x_seq = jnp.transpose(x.astype(jnp.float32), (1, 0, 2))       # (T, B, input_dim)
    x_seq = jnp.pad(x_seq, ((0, 0), (0, b_pad - b_real), (0, 0)))  # pad batch to 8 sublanes
    fwd = make_fused_forward(cfg, b_real, b_pad)
    logits = fwd(x_seq,
                 params["feat_w"], params["feat_b"],
                 params["feat_gamma"], params["feat_beta"],
                 params["wih"], params["bih"], params["whh"], params["bhh"],
                 params["bn_gamma"], params["bn_beta"],
                 params["head_w"], params["head_b"])
    return [logits[i, :b_real] for i in range(cfg["num_outputs"])]


if __name__ == "__main__":
    cfg = MODEL_CONFIG
    batch = 2
    key = jax.random.PRNGKey(0)
    kx, kp = jax.random.split(key)
    x = jax.random.normal(kx, (batch, cfg["num_inputs"], cfg["input_dim"]), jnp.float32)
    params = init_params(kp, cfg)

    logits = gru_model_forward(x, params, cfg)
    logits = [jax.block_until_ready(l) for l in logits]

    assert len(logits) == len(cfg["output_points_fw"])
    assert all(l.shape == (batch, cfg["num_classes"]) for l in logits)
    assert all(bool(jnp.all(jnp.isfinite(l))) for l in logits)
    print("KERNEL_OK")
</pallas_src>

<mosaic_0001>
module attributes {stable_mosaic.version = 11 : i64} {
  func.func @kernel(%arg0: memref<8x8x16xf32, #tpu.memory_space<vmem>>, %arg1: memref<8x16x64xf32, #tpu.memory_space<vmem>>, %arg2: memref<8x1x64xf32, #tpu.memory_space<vmem>>, %arg3: memref<8x1x64xf32, #tpu.memory_space<vmem>>, %arg4: memref<8x1x64xf32, #tpu.memory_space<vmem>>, %arg5: memref<8x64x256xf32, #tpu.memory_space<vmem>>, %arg6: memref<8x1x256xf32, #tpu.memory_space<vmem>>, %arg7: memref<8x64x256xf32, #tpu.memory_space<vmem>>, %arg8: memref<8x1x256xf32, #tpu.memory_space<vmem>>, %arg9: memref<8x1x64xf32, #tpu.memory_space<vmem>>, %arg10: memref<8x1x64xf32, #tpu.memory_space<vmem>>, %arg11: memref<4x64x4xf32, #tpu.memory_space<vmem>>, %arg12: memref<4x1x4xf32, #tpu.memory_space<vmem>>, %arg13: memref<4x8x4xf32, #tpu.memory_space<vmem>>, %arg14: memref<8x8x256xf32, #tpu.memory_space<vmem>>) attributes {dimension_semantics = [], scalar_prefetch = 0 : i64, scratch_operands = 1 : i64, tpu.core_type = #tpu.core_type<tc>} {
    %0 = tpu.iota {dimensions = array<i32: 0>} : vector<8x64xi32>
    %c2_i32 = arith.constant 2 : i32
    %1 = vector.broadcast %c2_i32 : i32 to vector<8x64xi32>
    %2 = arith.cmpi slt, %0, %1 : vector<8x64xi32>
    %3 = arith.extui %2 : vector<8x64xi1> to vector<8x64xi32>
    %4 = arith.sitofp %3 : vector<8x64xi32> to vector<8x64xf32>
    %5 = tpu.iota {dimensions = array<i32: 1>} : vector<8x256xi32>
    %c63_i32 = arith.constant 63 : i32
    %6 = vector.broadcast %c63_i32 : i32 to vector<8x256xi32>
    %7 = arith.andi %5, %6 : vector<8x256xi32>
    %c32_i32 = arith.constant 32 : i32
    %8 = vector.broadcast %c32_i32 : i32 to vector<8x256xi32>
    %9 = arith.cmpi slt, %7, %8 : vector<8x256xi32>
    %10 = arith.extui %9 : vector<8x256xi1> to vector<8x256xi32>
    %11 = arith.sitofp %10 : vector<8x256xi32> to vector<8x256xf32>
    %cst = arith.constant 1.000000e+00 : f32
    %12 = vector.broadcast %cst : f32 to vector<8x256xf32>
    %13 = arith.subf %12, %11 : vector<8x256xf32>
    %14 = tpu.iota {dimensions = array<i32: 1>} : vector<8x64xi32>
    %c32_i32_0 = arith.constant 32 : i32
    %15 = vector.broadcast %c32_i32_0 : i32 to vector<8x64xi32>
    %16 = arith.cmpi slt, %14, %15 : vector<8x64xi32>
    %17 = arith.extui %16 : vector<8x64xi1> to vector<8x64xi32>
    %18 = arith.sitofp %17 : vector<8x64xi32> to vector<8x64xf32>
    %cst_1 = arith.constant 1.000000e+00 : f32
    %19 = vector.broadcast %cst_1 : f32 to vector<8x64xf32>
    %20 = arith.subf %19, %18 : vector<8x64xf32>
    %c0 = arith.constant 0 : index
    %c0_2 = arith.constant 0 : index
    %c0_3 = arith.constant 0 : index
    %21 = vector.load %arg0[%c0, %c0_2, %c0_3] : memref<8x8x16xf32, #tpu.memory_space<vmem>>, vector<8x8x16xf32>
    %c0_4 = arith.constant 0 : index
    %c0_5 = arith.constant 0 : index
    %c0_6 = arith.constant 0 : index
    %22 = vector.load %arg1[%c0_4, %c0_5, %c0_6] : memref<8x16x64xf32, #tpu.memory_space<vmem>>, vector<8x16x64xf32>
    "tpu.trace_start"() <{level = 10 : i32, message = "tbd,tdf->tbf"}> : () -> ()
    %cst_7 = arith.constant dense<0.000000e+00> : vector<8x8x64xf32>
    %23 = tpu.matmul %21, %22, %cst_7 {dimension_numbers = #tpu.dot_dimension_numbers<[2], [1], [1], [2], [0, 0, 0, 1, 1, 2], [0], [0]>} : vector<8x8x16xf32>, vector<8x16x64xf32>, vector<8x8x64xf32> -> vector<8x8x64xf32>
    "tpu.trace_stop"() : () -> ()
    %c0_8 = arith.constant 0 : index
    %c0_9 = arith.constant 0 : index
    %c0_10 = arith.constant 0 : index
    %24 = vector.load %arg2[%c0_8, %c0_9, %c0_10] : memref<8x1x64xf32, #tpu.memory_space<vmem>>, vector<8x1x64xf32>
    %25 = vector.broadcast %24 : vector<8x1x64xf32> to vector<8x8x64xf32>
    %26 = arith.addf %23, %25 : vector<8x8x64xf32>
    %cst_11 = arith.constant 0.000000e+00 : f32
    %27 = vector.broadcast %cst_11 : f32 to vector<8x8x64xf32>
    %28 = arith.cmpf ogt, %26, %27 : vector<8x8x64xf32>
    %cst_12 = arith.constant 0.00999999977 : f32
    %29 = vector.broadcast %cst_12 : f32 to vector<8x8x64xf32>
    %30 = arith.mulf %29, %26 : vector<8x8x64xf32>
    %31 = arith.select %28, %26, %30 : vector<8x8x64xi1>, vector<8x8x64xf32>
    %32 = vector.shape_cast %4 : vector<8x64xf32> to vector<1x8x64xf32>
    %33 = vector.broadcast %32 : vector<1x8x64xf32> to vector<8x8x64xf32>
    %34 = arith.mulf %31, %33 : vector<8x8x64xf32>
    %cst_13 = arith.constant dense<0.000000e+00> : vector<8x64xf32>
    %35 = vector.multi_reduction <add>, %34, %cst_13 [1] : vector<8x8x64xf32> to vector<8x64xf32>
    %36 = vector.shape_cast %35 : vector<8x64xf32> to vector<8x1x64xf32>
    %cst_14 = arith.constant 5.000000e-01 : f32
    %37 = vector.broadcast %cst_14 : f32 to vector<8x1x64xf32>
    %38 = arith.mulf %36, %37 : vector<8x1x64xf32>
    %39 = vector.broadcast %38 : vector<8x1x64xf32> to vector<8x8x64xf32>
    %40 = arith.subf %31, %39 : vector<8x8x64xf32>
    %41 = arith.mulf %40, %40 : vector<8x8x64xf32>
    %42 = vector.shape_cast %4 : vector<8x64xf32> to vector<1x8x64xf32>
    %43 = vector.broadcast %42 : vector<1x8x64xf32> to vector<8x8x64xf32>
    %44 = arith.mulf %41, %43 : vector<8x8x64xf32>
    %cst_15 = arith.constant dense<0.000000e+00> : vector<8x64xf32>
    %45 = vector.multi_reduction <add>, %44, %cst_15 [1] : vector<8x8x64xf32> to vector<8x64xf32>
    %46 = vector.shape_cast %45 : vector<8x64xf32> to vector<8x1x64xf32>
    %cst_16 = arith.constant 5.000000e-01 : f32
    %47 = vector.broadcast %cst_16 : f32 to vector<8x1x64xf32>
    %48 = arith.mulf %46, %47 : vector<8x1x64xf32>
    %cst_17 = arith.constant 9.99999974E-6 : f32
    %49 = vector.broadcast %cst_17 : f32 to vector<8x1x64xf32>
    %50 = arith.addf %48, %49 : vector<8x1x64xf32>
    %51 = math.rsqrt %50 : vector<8x1x64xf32>
    %52 = vector.broadcast %51 : vector<8x1x64xf32> to vector<8x8x64xf32>
    %53 = arith.mulf %40, %52 : vector<8x8x64xf32>
    %c0_18 = arith.constant 0 : index
    %c0_19 = arith.constant 0 : index
    %c0_20 = arith.constant 0 : index
    %54 = vector.load %arg3[%c0_18, %c0_19, %c0_20] : memref<8x1x64xf32, #tpu.memory_space<vmem>>, vector<8x1x64xf32>
    %55 = vector.broadcast %54 : vector<8x1x64xf32> to vector<8x8x64xf32>
    %56 = arith.mulf %53, %55 : vector<8x8x64xf32>
    %c0_21 = arith.constant 0 : index
    %c0_22 = arith.constant 0 : index
    %c0_23 = arith.constant 0 : index
    %57 = vector.load %arg4[%c0_21, %c0_22, %c0_23] : memref<8x1x64xf32, #tpu.memory_space<vmem>>, vector<8x1x64xf32>
    %58 = vector.broadcast %57 : vector<8x1x64xf32> to vector<8x8x64xf32>
    %59 = arith.addf %56, %58 : vector<8x8x64xf32>
    %cst_24 = arith.constant 0.000000e+00 : f32
    %60 = vector.broadcast %cst_24 : f32 to vector<8x64xf32>
    %c0_i32 = arith.constant 0 : i32
    %c8_i32 = arith.constant 8 : i32
    %61 = arith.addi %c0_i32, %c8_i32 : i32
    %c1_i32 = arith.constant 1 : i32
    %62:2 = scf.for %arg15 = %c0_i32 to %61 step %c1_i32 iter_args(%arg16 = %60, %arg17 = %59) -> (vector<8x64xf32>, vector<8x8x64xf32>)  : i32 {
      %102 = arith.index_cast %arg15 : i32 to index
      %c0_39 = arith.constant 0 : index
      %c0_40 = arith.constant 0 : index
      %103 = vector.load %arg5[%102, %c0_39, %c0_40] : memref<8x64x256xf32, #tpu.memory_space<vmem>>, vector<1x64x256xf32>
      %104 = vector.shape_cast %103 : vector<1x64x256xf32> to vector<64x256xf32>
      %105 = arith.index_cast %arg15 : i32 to index
      %c0_41 = arith.constant 0 : index
      %c0_42 = arith.constant 0 : index
      %106 = vector.load %arg7[%105, %c0_41, %c0_42] : memref<8x64x256xf32, #tpu.memory_space<vmem>>, vector<1x64x256xf32>
      %107 = vector.shape_cast %106 : vector<1x64x256xf32> to vector<64x256xf32>
      %108 = arith.index_cast %arg15 : i32 to index
      %c0_43 = arith.constant 0 : index
      %c0_44 = arith.constant 0 : index
      %109 = vector.load %arg6[%108, %c0_43, %c0_44] : memref<8x1x256xf32, #tpu.memory_space<vmem>>, vector<1x1x256xf32>
      %110 = vector.shape_cast %109 : vector<1x1x256xf32> to vector<1x256xf32>
      %111 = arith.index_cast %arg15 : i32 to index
      %c0_45 = arith.constant 0 : index
      %c0_46 = arith.constant 0 : index
      %112 = vector.load %arg8[%111, %c0_45, %c0_46] : memref<8x1x256xf32, #tpu.memory_space<vmem>>, vector<1x1x256xf32>
      %113 = vector.shape_cast %112 : vector<1x1x256xf32> to vector<1x256xf32>
      %114 = arith.index_cast %arg15 : i32 to index
      %c0_47 = arith.constant 0 : index
      %c0_48 = arith.constant 0 : index
      %115 = vector.load %arg9[%114, %c0_47, %c0_48] : memref<8x1x64xf32, #tpu.memory_space<vmem>>, vector<1x1x64xf32>
      %116 = vector.shape_cast %115 : vector<1x1x64xf32> to vector<1x64xf32>
      %117 = arith.index_cast %arg15 : i32 to index
      %c0_49 = arith.constant 0 : index
      %c0_50 = arith.constant 0 : index
      %118 = vector.load %arg10[%117, %c0_49, %c0_50] : memref<8x1x64xf32, #tpu.memory_space<vmem>>, vector<1x1x64xf32>
      %119 = vector.shape_cast %118 : vector<1x1x64xf32> to vector<1x64xf32>
      %120 = vector.shape_cast %arg17 : vector<8x8x64xf32> to vector<64x64xf32>
      %cst_51 = arith.constant dense<0.000000e+00> : vector<64x256xf32>
      %121 = tpu.matmul %120, %104, %cst_51 {dimension_numbers = #tpu.dot_dimension_numbers<[1], [0], [0], [1], [0, 0, 1, 1], [], []>} : vector<64x64xf32>, vector<64x256xf32>, vector<64x256xf32> -> vector<64x256xf32>
      %122 = vector.shape_cast %121 : vector<64x256xf32> to vector<8x8x256xf32>
      %123 = vector.shape_cast %110 : vector<1x256xf32> to vector<1x1x256xf32>
      %124 = vector.broadcast %123 : vector<1x1x256xf32> to vector<8x8x256xf32>
      %125 = arith.addf %122, %124 : vector<8x8x256xf32>
      %126 = vector.extract_strided_slice %125 {offsets = [0, 0, 0], sizes = [1, 8, 256], strides = [1, 1, 1]} : vector<8x8x256xf32> to vector<1x8x256xf32>
      %127 = vector.shape_cast %126 : vector<1x8x256xf32> to vector<8x256xf32>
      %128 = arith.mulf %127, %11 : vector<8x256xf32>
      %129 = vector.extract_strided_slice %125 {offsets = [7, 0, 0], sizes = [1, 8, 256], strides = [1, 1, 1]} : vector<8x8x256xf32> to vector<1x8x256xf32>
      %130 = vector.shape_cast %129 : vector<1x8x256xf32> to vector<8x256xf32>
      %131 = arith.mulf %130, %13 : vector<8x256xf32>
      %132 = arith.addf %128, %131 : vector<8x256xf32>
      %c0_52 = arith.constant 0 : index
      %c0_53 = arith.constant 0 : index
      %c0_54 = arith.constant 0 : index
      %133 = vector.load %arg14[%c0_52, %c0_53, %c0_54] : memref<8x8x256xf32, #tpu.memory_space<vmem>>, vector<1x8x256xf32>
      %134 = vector.shape_cast %133 : vector<1x8x256xf32> to vector<8x256xf32>
      %135 = vector.shape_cast %132 : vector<8x256xf32> to vector<1x8x256xf32>
      tpu.vector_store %arg14[%c0_52, %c0_53, %c0_54], %135 {strides = array<i32>} : memref<8x8x256xf32, #tpu.memory_space<vmem>>, vector<1x8x256xf32>,
      %136 = vector.extract_strided_slice %125 {offsets = [1, 0, 0], sizes = [1, 8, 256], strides = [1, 1, 1]} : vector<8x8x256xf32> to vector<1x8x256xf32>
      %137 = vector.shape_cast %136 : vector<1x8x256xf32> to vector<8x256xf32>
      %138 = arith.mulf %137, %11 : vector<8x256xf32>
      %139 = vector.extract_strided_slice %125 {offsets = [6, 0, 0], sizes = [1, 8, 256], strides = [1, 1, 1]} : vector<8x8x256xf32> to vector<1x8x256xf32>
      %140 = vector.shape_cast %139 : vector<1x8x256xf32> to vector<8x256xf32>
      %141 = arith.mulf %140, %13 : vector<8x256xf32>
      %142 = arith.addf %138, %141 : vector<8x256xf32>
      %c1 = arith.constant 1 : index
      %c0_55 = arith.constant 0 : index
      %c0_56 = arith.constant 0 : index
      %143 = vector.load %arg14[%c1, %c0_55, %c0_56] : memref<8x8x256xf32, #tpu.memory_space<vmem>>, vector<1x8x256xf32>
      %144 = vector.shape_cast %143 : vector<1x8x256xf32> to vector<8x256xf32>
      %145 = vector.shape_cast %142 : vector<8x256xf32> to vector<1x8x256xf32>
      tpu.vector_store %arg14[%c1, %c0_55, %c0_56], %145 {strides = array<i32>} : memref<8x8x256xf32, #tpu.memory_space<vmem>>, vector<1x8x256xf32>,
      %146 = vector.extract_strided_slice %125 {offsets = [2, 0, 0], sizes = [1, 8, 256], strides = [1, 1, 1]} : vector<8x8x256xf32> to vector<1x8x256xf32>
      %147 = vector.shape_cast %146 : vector<1x8x256xf32> to vector<8x256xf32>
      %148 = arith.mulf %147, %11 : vector<8x256xf32>
      %149 = vector.extract_strided_slice %125 {offsets = [5, 0, 0], sizes = [1, 8, 256], strides = [1, 1, 1]} : vector<8x8x256xf32> to vector<1x8x256xf32>
      %150 = vector.shape_cast %149 : vector<1x8x256xf32> to vector<8x256xf32>
      %151 = arith.mulf %150, %13 : vector<8x256xf32>
      %152 = arith.addf %148, %151 : vector<8x256xf32>
      %c2 = arith.constant 2 : index
      %c0_57 = arith.constant 0 : index
      %c0_58 = arith.constant 0 : index
      %153 = vector.load %arg14[%c2, %c0_57, %c0_58] : memref<8x8x256xf32, #tpu.memory_space<vmem>>, vector<1x8x256xf32>
      %154 = vector.shape_cast %153 : vector<1x8x256xf32> to vector<8x256xf32>
      %155 = vector.shape_cast %152 : vector<8x256xf32> to vector<1x8x256xf32>
      tpu.vector_store %arg14[%c2, %c0_57, %c0_58], %155 {strides = array<i32>} : memref<8x8x256xf32, #tpu.memory_space<vmem>>, vector<1x8x256xf32>,
      %156 = vector.extract_strided_slice %125 {offsets = [3, 0, 0], sizes = [1, 8, 256], strides = [1, 1, 1]} : vector<8x8x256xf32> to vector<1x8x256xf32>
      %157 = vector.shape_cast %156 : vector<1x8x256xf32> to vector<8x256xf32>
      %158 = arith.mulf %157, %11 : vector<8x256xf32>
      %159 = vector.extract_strided_slice %125 {offsets = [4, 0, 0], sizes = [1, 8, 256], strides = [1, 1, 1]} : vector<8x8x256xf32> to vector<1x8x256xf32>
      %160 = vector.shape_cast %159 : vector<1x8x256xf32> to vector<8x256xf32>
      %161 = arith.mulf %160, %13 : vector<8x256xf32>
      %162 = arith.addf %158, %161 : vector<8x256xf32>
      %c3 = arith.constant 3 : index
      %c0_59 = arith.constant 0 : index
      %c0_60 = arith.constant 0 : index
      %163 = vector.load %arg14[%c3, %c0_59, %c0_60] : memref<8x8x256xf32, #tpu.memory_space<vmem>>, vector<1x8x256xf32>
      %164 = vector.shape_cast %163 : vector<1x8x256xf32> to vector<8x256xf32>
      %165 = vector.shape_cast %162 : vector<8x256xf32> to vector<1x8x256xf32>
      tpu.vector_store %arg14[%c3, %c0_59, %c0_60], %165 {strides = array<i32>} : memref<8x8x256xf32, #tpu.memory_space<vmem>>, vector<1x8x256xf32>,
      %166 = vector.extract_strided_slice %125 {offsets = [4, 0, 0], sizes = [1, 8, 256], strides = [1, 1, 1]} : vector<8x8x256xf32> to vector<1x8x256xf32>
      %167 = vector.shape_cast %166 : vector<1x8x256xf32> to vector<8x256xf32>
      %168 = arith.mulf %167, %11 : vector<8x256xf32>
      %169 = vector.extract_strided_slice %125 {offsets = [3, 0, 0], sizes = [1, 8, 256], strides = [1, 1, 1]} : vector<8x8x256xf32> to vector<1x8x256xf32>
      %170 = vector.shape_cast %169 : vector<1x8x256xf32> to vector<8x256xf32>
      %171 = arith.mulf %170, %13 : vector<8x256xf32>
      %172 = arith.addf %168, %171 : vector<8x256xf32>
      %c4 = arith.constant 4 : index
      %c0_61 = arith.constant 0 : index
      %c0_62 = arith.constant 0 : index
      %173 = vector.load %arg14[%c4, %c0_61, %c0_62] : memref<8x8x256xf32, #tpu.memory_space<vmem>>, vector<1x8x256xf32>
      %174 = vector.shape_cast %173 : vector<1x8x256xf32> to vector<8x256xf32>
      %175 = vector.shape_cast %172 : vector<8x256xf32> to vector<1x8x256xf32>
      tpu.vector_store %arg14[%c4, %c0_61, %c0_62], %175 {strides = array<i32>} : memref<8x8x256xf32, #tpu.memory_space<vmem>>, vector<1x8x256xf32>,
      %176 = vector.extract_strided_slice %125 {offsets = [5, 0, 0], sizes = [1, 8, 256], strides = [1, 1, 1]} : vector<8x8x256xf32> to vector<1x8x256xf32>
      %177 = vector.shape_cast %176 : vector<1x8x256xf32> to vector<8x256xf32>
      %178 = arith.mulf %177, %11 : vector<8x256xf32>
      %179 = vector.extract_strided_slice %125 {offsets = [2, 0, 0], sizes = [1, 8, 256], strides = [1, 1, 1]} : vector<8x8x256xf32> to vector<1x8x256xf32>
      %180 = vector.shape_cast %179 : vector<1x8x256xf32> to vector<8x256xf32>
      %181 = arith.mulf %180, %13 : vector<8x256xf32>
      %182 = arith.addf %178, %181 : vector<8x256xf32>
      %c5 = arith.constant 5 : index
      %c0_63 = arith.constant 0 : index
      %c0_64 = arith.constant 0 : index
      %183 = vector.load %arg14[%c5, %c0_63, %c0_64] : memref<8x8x256xf32, #tpu.memory_space<vmem>>, vector<1x8x256xf32>
      %184 = vector.shape_cast %183 : vector<1x8x256xf32> to vector<8x256xf32>
      %185 = vector.shape_cast %182 : vector<8x256xf32> to vector<1x8x256xf32>
      tpu.vector_store %arg14[%c5, %c0_63, %c0_64], %185 {strides = array<i32>} : memref<8x8x256xf32, #tpu.memory_space<vmem>>, vector<1x8x256xf32>,
      %186 = vector.extract_strided_slice %125 {offsets = [6, 0, 0], sizes = [1, 8, 256], strides = [1, 1, 1]} : vector<8x8x256xf32> to vector<1x8x256xf32>
      %187 = vector.shape_cast %186 : vector<1x8x256xf32> to vector<8x256xf32>
      %188 = arith.mulf %187, %11 : vector<8x256xf32>
      %189 = vector.extract_strided_slice %125 {offsets = [1, 0, 0], sizes = [1, 8, 256], strides = [1, 1, 1]} : vector<8x8x256xf32> to vector<1x8x256xf32>
      %190 = vector.shape_cast %189 : vector<1x8x256xf32> to vector<8x256xf32>
      %191 = arith.mulf %190, %13 : vector<8x256xf32>
      %192 = arith.addf %188, %191 : vector<8x256xf32>
      %c6 = arith.constant 6 : index
      %c0_65 = arith.constant 0 : index
      %c0_66 = arith.constant 0 : index
      %193 = vector.load %arg14[%c6, %c0_65, %c0_66] : memref<8x8x256xf32, #tpu.memory_space<vmem>>, vector<1x8x256xf32>
      %194 = vector.shape_cast %193 : vector<1x8x256xf32> to vector<8x256xf32>
      %195 = vector.shape_cast %192 : vector<8x256xf32> to vector<1x8x256xf32>
      tpu.vector_store %arg14[%c6, %c0_65, %c0_66], %195 {strides = array<i32>} : memref<8x8x256xf32, #tpu.memory_space<vmem>>, vector<1x8x256xf32>,
      %196 = vector.extract_strided_slice %125 {offsets = [7, 0, 0], sizes = [1, 8, 256], strides = [1, 1, 1]} : vector<8x8x256xf32> to vector<1x8x256xf32>
      %197 = vector.shape_cast %196 : vector<1x8x256xf32> to vector<8x256xf32>
      %198 = arith.mulf %197, %11 : vector<8x256xf32>
      %199 = vector.extract_strided_slice %125 {offsets = [0, 0, 0], sizes = [1, 8, 256], strides = [1, 1, 1]} : vector<8x8x256xf32> to vector<1x8x256xf32>
      %200 = vector.shape_cast %199 : vector<1x8x256xf32> to vector<8x256xf32>
      %201 = arith.mulf %200, %13 : vector<8x256xf32>
      %202 = arith.addf %198, %201 : vector<8x256xf32>
      %c7 = arith.constant 7 : index
      %c0_67 = arith.constant 0 : index
      %c0_68 = arith.constant 0 : index
      %203 = vector.load %arg14[%c7, %c0_67, %c0_68] : memref<8x8x256xf32, #tpu.memory_space<vmem>>, vector<1x8x256xf32>
      %204 = vector.shape_cast %203 : vector<1x8x256xf32> to vector<8x256xf32>
      %205 = vector.shape_cast %202 : vector<8x256xf32> to vector<1x8x256xf32>
      tpu.vector_store %arg14[%c7, %c0_67, %c0_68], %205 {strides = array<i32>} : memref<8x8x256xf32, #tpu.memory_space<vmem>>, vector<1x8x256xf32>,
      %c0_69 = arith.constant 0 : index
      %c0_70 = arith.constant 0 : index
      %c0_71 = arith.constant 0 : index
      %206 = vector.load %arg14[%c0_69, %c0_70, %c0_71] : memref<8x8x256xf32, #tpu.memory_space<vmem>>, vector<1x8x256xf32>
      %207 = vector.shape_cast %206 : vector<1x8x256xf32> to vector<8x256xf32>
      %cst_72 = arith.constant dense<0.000000e+00> : vector<8x256xf32>
      %208 = tpu.matmul %arg16, %107, %cst_72 {dimension_numbers = #tpu.dot_dimension_numbers<[1], [0], [0], [1], [0, 0, 1, 1], [], []>} : vector<8x64xf32>, vector<64x256xf32>, vector<8x256xf32> -> vector<8x256xf32>
      %209 = vector.broadcast %113 : vector<1x256xf32> to vector<8x256xf32>
      %210 = arith.addf %208, %209 : vector<8x256xf32>
      %211 = vector.extract_strided_slice %207 {offsets = [0, 0], sizes = [8, 128], strides = [1, 1]} : vector<8x256xf32> to vector<8x128xf32>
      %212 = vector.extract_strided_slice %210 {offsets = [0, 0], sizes = [8, 128], strides = [1, 1]} : vector<8x256xf32> to vector<8x128xf32>
      %213 = arith.addf %211, %212 : vector<8x128xf32>
      %214 = arith.negf %213 : vector<8x128xf32>
      %215 = math.exp %214 : vector<8x128xf32>
      %cst_73 = arith.constant 1.000000e+00 : f32
      %216 = vector.broadcast %cst_73 : f32 to vector<8x128xf32>
      %217 = arith.addf %216, %215 : vector<8x128xf32>
      %218 = arith.divf %216, %217 : vector<8x128xf32>
      %219 = vector.extract_strided_slice %218 {offsets = [0, 0], sizes = [8, 64], strides = [1, 1]} : vector<8x128xf32> to vector<8x64xf32>
      %220 = vector.extract_strided_slice %218 {offsets = [0, 64], sizes = [8, 64], strides = [1, 1]} : vector<8x128xf32> to vector<8x64xf32>
      %221 = vector.extract_strided_slice %207 {offsets = [0, 128], sizes = [8, 64], strides = [1, 1]} : vector<8x256xf32> to vector<8x64xf32>
      %222 = vector.extract_strided_slice %210 {offsets = [0, 128], sizes = [8, 64], strides = [1, 1]} : vector<8x256xf32> to vector<8x64xf32>
      %223 = arith.mulf %219, %222 : vector<8x64xf32>
      %224 = arith.addf %221, %223 : vector<8x64xf32>
      %225 = math.tanh %224 : vector<8x64xf32>
      %cst_74 = arith.constant 1.000000e+00 : f32
      %226 = vector.broadcast %cst_74 : f32 to vector<8x64xf32>
      %227 = arith.subf %226, %220 : vector<8x64xf32>
      %228 = arith.mulf %227, %225 : vector<8x64xf32>
      %229 = arith.mulf %220, %arg16 : vector<8x64xf32>
      %230 = arith.addf %228, %229 : vector<8x64xf32>
      %c1_75 = arith.constant 1 : index
      %c0_76 = arith.constant 0 : index
      %c0_77 = arith.constant 0 : index
      %231 = vector.load %arg14[%c1_75, %c0_76, %c0_77] : memref<8x8x256xf32, #tpu.memory_space<vmem>>, vector<1x8x256xf32>
      %232 = vector.shape_cast %231 : vector<1x8x256xf32> to vector<8x256xf32>
      %cst_78 = arith.constant dense<0.000000e+00> : vector<8x256xf32>
      %233 = tpu.matmul %230, %107, %cst_78 {dimension_numbers = #tpu.dot_dimension_numbers<[1], [0], [0], [1], [0, 0, 1, 1], [], []>} : vector<8x64xf32>, vector<64x256xf32>, vector<8x256xf32> -> vector<8x256xf32>
      %234 = vector.broadcast %113 : vector<1x256xf32> to vector<8x256xf32>
      %235 = arith.addf %233, %234 : vector<8x256xf32>
      %236 = vector.extract_strided_slice %232 {offsets = [0, 0], sizes = [8, 128], strides = [1, 1]} : vector<8x256xf32> to vector<8x128xf32>
      %237 = vector.extract_strided_slice %235 {offsets = [0, 0], sizes = [8, 128], strides = [1, 1]} : vector<8x256xf32> to vector<8x128xf32>
      %238 = arith.addf %236, %237 : vector<8x128xf32>
      %239 = arith.negf %238 : vector<8x128xf32>
      %240 = math.exp %239 : vector<8x128xf32>
      %cst_79 = arith.constant 1.000000e+00 : f32
      %241 = vector.broadcast %cst_79 : f32 to vector<8x128xf32>
      %242 = arith.addf %241, %240 : vector<8x128xf32>
      %243 = arith.divf %241, %242 : vector<8x128xf32>
      %244 = vector.extract_strided_slice %243 {offsets = [0, 0], sizes = [8, 64], strides = [1, 1]} : vector<8x128xf32> to vector<8x64xf32>
      %245 = vector.extract_strided_slice %243 {offsets = [0, 64], sizes = [8, 64], strides = [1, 1]} : vector<8x128xf32> to vector<8x64xf32>
      %246 = vector.extract_strided_slice %232 {offsets = [0, 128], sizes = [8, 64], strides = [1, 1]} : vector<8x256xf32> to vector<8x64xf32>
      %247 = vector.extract_strided_slice %235 {offsets = [0, 128], sizes = [8, 64], strides = [1, 1]} : vector<8x256xf32> to vector<8x64xf32>
      %248 = arith.mulf %244, %247 : vector<8x64xf32>
      %249 = arith.addf %246, %248 : vector<8x64xf32>
      %250 = math.tanh %249 : vector<8x64xf32>
      %cst_80 = arith.constant 1.000000e+00 : f32
      %251 = vector.broadcast %cst_80 : f32 to vector<8x64xf32>
      %252 = arith.subf %251, %245 : vector<8x64xf32>
      %253 = arith.mulf %252, %250 : vector<8x64xf32>
      %254 = arith.mulf %245, %230 : vector<8x64xf32>
      %255 = arith.addf %253, %254 : vector<8x64xf32>
      %c2_81 = arith.constant 2 : index
      %c0_82 = arith.constant 0 : index
      %c0_83 = arith.constant 0 : index
      %256 = vector.load %arg14[%c2_81, %c0_82, %c0_83] : memref<8x8x256xf32, #tpu.memory_space<vmem>>, vector<1x8x256xf32>
      %257 = vector.shape_cast %256 : vector<1x8x256xf32> to vector<8x256xf32>
      %cst_84 = arith.constant dense<0.000000e+00> : vector<8x256xf32>
      %258 = tpu.matmul %255, %107, %cst_84 {dimension_numbers = #tpu.dot_dimension_numbers<[1], [0], [0], [1], [0, 0, 1, 1], [], []>} : vector<8x64xf32>, vector<64x256xf32>, vector<8x256xf32> -> vector<8x256xf32>
      %259 = vector.broadcast %113 : vector<1x256xf32> to vector<8x256xf32>
      %260 = arith.addf %258, %259 : vector<8x256xf32>
      %261 = vector.extract_strided_slice %257 {offsets = [0, 0], sizes = [8, 128], strides = [1, 1]} : vector<8x256xf32> to vector<8x128xf32>
      %262 = vector.extract_strided_slice %260 {offsets = [0, 0], sizes = [8, 128], strides = [1, 1]} : vector<8x256xf32> to vector<8x128xf32>
      %263 = arith.addf %261, %262 : vector<8x128xf32>
      %264 = arith.negf %263 : vector<8x128xf32>
      %265 = math.exp %264 : vector<8x128xf32>
      %cst_85 = arith.constant 1.000000e+00 : f32
      %266 = vector.broadcast %cst_85 : f32 to vector<8x128xf32>
      %267 = arith.addf %266, %265 : vector<8x128xf32>
      %268 = arith.divf %266, %267 : vector<8x128xf32>
      %269 = vector.extract_strided_slice %268 {offsets = [0, 0], sizes = [8, 64], strides = [1, 1]} : vector<8x128xf32> to vector<8x64xf32>
      %270 = vector.extract_strided_slice %268 {offsets = [0, 64], sizes = [8, 64], strides = [1, 1]} : vector<8x128xf32> to vector<8x64xf32>
      %271 = vector.extract_strided_slice %257 {offsets = [0, 128], sizes = [8, 64], strides = [1, 1]} : vector<8x256xf32> to vector<8x64xf32>
      %272 = vector.extract_strided_slice %260 {offsets = [0, 128], sizes = [8, 64], strides = [1, 1]} : vector<8x256xf32> to vector<8x64xf32>
      %273 = arith.mulf %269, %272 : vector<8x64xf32>
      %274 = arith.addf %271, %273 : vector<8x64xf32>
      %275 = math.tanh %274 : vector<8x64xf32>
      %cst_86 = arith.constant 1.000000e+00 : f32
      %276 = vector.broadcast %cst_86 : f32 to vector<8x64xf32>
      %277 = arith.subf %276, %270 : vector<8x64xf32>
      %278 = arith.mulf %277, %275 : vector<8x64xf32>
      %279 = arith.mulf %270, %255 : vector<8x64xf32>
      %280 = arith.addf %278, %279 : vector<8x64xf32>
      %c3_87 = arith.constant 3 : index
      %c0_88 = arith.constant 0 : index
      %c0_89 = arith.constant 0 : index
      %281 = vector.load %arg14[%c3_87, %c0_88, %c0_89] : memref<8x8x256xf32, #tpu.memory_space<vmem>>, vector<1x8x256xf32>
      %282 = vector.shape_cast %281 : vector<1x8x256xf32> to vector<8x256xf32>
      %cst_90 = arith.constant dense<0.000000e+00> : vector<8x256xf32>
      %283 = tpu.matmul %280, %107, %cst_90 {dimension_numbers = #tpu.dot_dimension_numbers<[1], [0], [0], [1], [0, 0, 1, 1], [], []>} : vector<8x64xf32>, vector<64x256xf32>, vector<8x256xf32> -> vector<8x256xf32>
      %284 = vector.broadcast %113 : vector<1x256xf32> to vector<8x256xf32>
      %285 = arith.addf %283, %284 : vector<8x256xf32>
      %286 = vector.extract_strided_slice %282 {offsets = [0, 0], sizes = [8, 128], strides = [1, 1]} : vector<8x256xf32> to vector<8x128xf32>
      %287 = vector.extract_strided_slice %285 {offsets = [0, 0], sizes = [8, 128], strides = [1, 1]} : vector<8x256xf32> to vector<8x128xf32>
      %288 = arith.addf %286, %287 : vector<8x128xf32>
      %289 = arith.negf %288 : vector<8x128xf32>
      %290 = math.exp %289 : vector<8x128xf32>
      %cst_91 = arith.constant 1.000000e+00 : f32
      %291 = vector.broadcast %cst_91 : f32 to vector<8x128xf32>
      %292 = arith.addf %291, %290 : vector<8x128xf32>
      %293 = arith.divf %291, %292 : vector<8x128xf32>
      %294 = vector.extract_strided_slice %293 {offsets = [0, 0], sizes = [8, 64], strides = [1, 1]} : vector<8x128xf32> to vector<8x64xf32>
      %295 = vector.extract_strided_slice %293 {offsets = [0, 64], sizes = [8, 64], strides = [1, 1]} : vector<8x128xf32> to vector<8x64xf32>
      %296 = vector.extract_strided_slice %282 {offsets = [0, 128], sizes = [8, 64], strides = [1, 1]} : vector<8x256xf32> to vector<8x64xf32>
      %297 = vector.extract_strided_slice %285 {offsets = [0, 128], sizes = [8, 64], strides = [1, 1]} : vector<8x256xf32> to vector<8x64xf32>
      %298 = arith.mulf %294, %297 : vector<8x64xf32>
      %299 = arith.addf %296, %298 : vector<8x64xf32>
      %300 = math.tanh %299 : vector<8x64xf32>
      %cst_92 = arith.constant 1.000000e+00 : f32
      %301 = vector.broadcast %cst_92 : f32 to vector<8x64xf32>
      %302 = arith.subf %301, %295 : vector<8x64xf32>
      %303 = arith.mulf %302, %300 : vector<8x64xf32>
      %304 = arith.mulf %295, %280 : vector<8x64xf32>
      %305 = arith.addf %303, %304 : vector<8x64xf32>
      %c4_93 = arith.constant 4 : index
      %c0_94 = arith.constant 0 : index
      %c0_95 = arith.constant 0 : index
      %306 = vector.load %arg14[%c4_93, %c0_94, %c0_95] : memref<8x8x256xf32, #tpu.memory_space<vmem>>, vector<1x8x256xf32>
      %307 = vector.shape_cast %306 : vector<1x8x256xf32> to vector<8x256xf32>
      %cst_96 = arith.constant dense<0.000000e+00> : vector<8x256xf32>
      %308 = tpu.matmul %305, %107, %cst_96 {dimension_numbers = #tpu.dot_dimension_numbers<[1], [0], [0], [1], [0, 0, 1, 1], [], []>} : vector<8x64xf32>, vector<64x256xf32>, vector<8x256xf32> -> vector<8x256xf32>
      %309 = vector.broadcast %113 : vector<1x256xf32> to vector<8x256xf32>
      %310 = arith.addf %308, %309 : vector<8x256xf32>
      %311 = vector.extract_strided_slice %307 {offsets = [0, 0], sizes = [8, 128], strides = [1, 1]} : vector<8x256xf32> to vector<8x128xf32>
      %312 = vector.extract_strided_slice %310 {offsets = [0, 0], sizes = [8, 128], strides = [1, 1]} : vector<8x256xf32> to vector<8x128xf32>
      %313 = arith.addf %311, %312 : vector<8x128xf32>
      %314 = arith.negf %313 : vector<8x128xf32>
      %315 = math.exp %314 : vector<8x128xf32>
      %cst_97 = arith.constant 1.000000e+00 : f32
      %316 = vector.broadcast %cst_97 : f32 to vector<8x128xf32>
      %317 = arith.addf %316, %315 : vector<8x128xf32>
      %318 = arith.divf %316, %317 : vector<8x128xf32>
      %319 = vector.extract_strided_slice %318 {offsets = [0, 0], sizes = [8, 64], strides = [1, 1]} : vector<8x128xf32> to vector<8x64xf32>
      %320 = vector.extract_strided_slice %318 {offsets = [0, 64], sizes = [8, 64], strides = [1, 1]} : vector<8x128xf32> to vector<8x64xf32>
      %321 = vector.extract_strided_slice %307 {offsets = [0, 128], sizes = [8, 64], strides = [1, 1]} : vector<8x256xf32> to vector<8x64xf32>
      %322 = vector.extract_strided_slice %310 {offsets = [0, 128], sizes = [8, 64], strides = [1, 1]} : vector<8x256xf32> to vector<8x64xf32>
      %323 = arith.mulf %319, %322 : vector<8x64xf32>
      %324 = arith.addf %321, %323 : vector<8x64xf32>
      %325 = math.tanh %324 : vector<8x64xf32>
      %cst_98 = arith.constant 1.000000e+00 : f32
      %326 = vector.broadcast %cst_98 : f32 to vector<8x64xf32>
      %327 = arith.subf %326, %320 : vector<8x64xf32>
      %328 = arith.mulf %327, %325 : vector<8x64xf32>
      %329 = arith.mulf %320, %305 : vector<8x64xf32>
      %330 = arith.addf %328, %329 : vector<8x64xf32>
      %c5_99 = arith.constant 5 : index
      %c0_100 = arith.constant 0 : index
      %c0_101 = arith.constant 0 : index
      %331 = vector.load %arg14[%c5_99, %c0_100, %c0_101] : memref<8x8x256xf32, #tpu.memory_space<vmem>>, vector<1x8x256xf32>
      %332 = vector.shape_cast %331 : vector<1x8x256xf32> to vector<8x256xf32>
      %cst_102 = arith.constant dense<0.000000e+00> : vector<8x256xf32>
      %333 = tpu.matmul %330, %107, %cst_102 {dimension_numbers = #tpu.dot_dimension_numbers<[1], [0], [0], [1], [0, 0, 1, 1], [], []>} : vector<8x64xf32>, vector<64x256xf32>, vector<8x256xf32> -> vector<8x256xf32>
      %334 = vector.broadcast %113 : vector<1x256xf32> to vector<8x256xf32>
      %335 = arith.addf %333, %334 : vector<8x256xf32>
      %336 = vector.extract_strided_slice %332 {offsets = [0, 0], sizes = [8, 128], strides = [1, 1]} : vector<8x256xf32> to vector<8x128xf32>
      %337 = vector.extract_strided_slice %335 {offsets = [0, 0], sizes = [8, 128], strides = [1, 1]} : vector<8x256xf32> to vector<8x128xf32>
      %338 = arith.addf %336, %337 : vector<8x128xf32>
      %339 = arith.negf %338 : vector<8x128xf32>
      %340 = math.exp %339 : vector<8x128xf32>
      %cst_103 = arith.constant 1.000000e+00 : f32
      %341 = vector.broadcast %cst_103 : f32 to vector<8x128xf32>
      %342 = arith.addf %341, %340 : vector<8x128xf32>
      %343 = arith.divf %341, %342 : vector<8x128xf32>
      %344 = vector.extract_strided_slice %343 {offsets = [0, 0], sizes = [8, 64], strides = [1, 1]} : vector<8x128xf32> to vector<8x64xf32>
      %345 = vector.extract_strided_slice %343 {offsets = [0, 64], sizes = [8, 64], strides = [1, 1]} : vector<8x128xf32> to vector<8x64xf32>
      %346 = vector.extract_strided_slice %332 {offsets = [0, 128], sizes = [8, 64], strides = [1, 1]} : vector<8x256xf32> to vector<8x64xf32>
      %347 = vector.extract_strided_slice %335 {offsets = [0, 128], sizes = [8, 64], strides = [1, 1]} : vector<8x256xf32> to vector<8x64xf32>
      %348 = arith.mulf %344, %347 : vector<8x64xf32>
      %349 = arith.addf %346, %348 : vector<8x64xf32>
      %350 = math.tanh %349 : vector<8x64xf32>
      %cst_104 = arith.constant 1.000000e+00 : f32
      %351 = vector.broadcast %cst_104 : f32 to vector<8x64xf32>
      %352 = arith.subf %351, %345 : vector<8x64xf32>
      %353 = arith.mulf %352, %350 : vector<8x64xf32>
      %354 = arith.mulf %345, %330 : vector<8x64xf32>
      %355 = arith.addf %353, %354 : vector<8x64xf32>
      %c6_105 = arith.constant 6 : index
      %c0_106 = arith.constant 0 : index
      %c0_107 = arith.constant 0 : index
      %356 = vector.load %arg14[%c6_105, %c0_106, %c0_107] : memref<8x8x256xf32, #tpu.memory_space<vmem>>, vector<1x8x256xf32>
      %357 = vector.shape_cast %356 : vector<1x8x256xf32> to vector<8x256xf32>
      %cst_108 = arith.constant dense<0.000000e+00> : vector<8x256xf32>
      %358 = tpu.matmul %355, %107, %cst_108 {dimension_numbers = #tpu.dot_dimension_numbers<[1], [0], [0], [1], [0, 0, 1, 1], [], []>} : vector<8x64xf32>, vector<64x256xf32>, vector<8x256xf32> -> vector<8x256xf32>
      %359 = vector.broadcast %113 : vector<1x256xf32> to vector<8x256xf32>
      %360 = arith.addf %358, %359 : vector<8x256xf32>
      %361 = vector.extract_strided_slice %357 {offsets = [0, 0], sizes = [8, 128], strides = [1, 1]} : vector<8x256xf32> to vector<8x128xf32>
      %362 = vector.extract_strided_slice %360 {offsets = [0, 0], sizes = [8, 128], strides = [1, 1]} : vector<8x256xf32> to vector<8x128xf32>
      %363 = arith.addf %361, %362 : vector<8x128xf32>
      %364 = arith.negf %363 : vector<8x128xf32>
      %365 = math.exp %364 : vector<8x128xf32>
      %cst_109 = arith.constant 1.000000e+00 : f32
      %366 = vector.broadcast %cst_109 : f32 to vector<8x128xf32>
      %367 = arith.addf %366, %365 : vector<8x128xf32>
      %368 = arith.divf %366, %367 : vector<8x128xf32>
      %369 = vector.extract_strided_slice %368 {offsets = [0, 0], sizes = [8, 64], strides = [1, 1]} : vector<8x128xf32> to vector<8x64xf32>
      %370 = vector.extract_strided_slice %368 {offsets = [0, 64], sizes = [8, 64], strides = [1, 1]} : vector<8x128xf32> to vector<8x64xf32>
      %371 = vector.extract_strided_slice %357 {offsets = [0, 128], sizes = [8, 64], strides = [1, 1]} : vector<8x256xf32> to vector<8x64xf32>
      %372 = vector.extract_strided_slice %360 {offsets = [0, 128], sizes = [8, 64], strides = [1, 1]} : vector<8x256xf32> to vector<8x64xf32>
      %373 = arith.mulf %369, %372 : vector<8x64xf32>
      %374 = arith.addf %371, %373 : vector<8x64xf32>
      %375 = math.tanh %374 : vector<8x64xf32>
      %cst_110 = arith.constant 1.000000e+00 : f32
      %376 = vector.broadcast %cst_110 : f32 to vector<8x64xf32>
      %377 = arith.subf %376, %370 : vector<8x64xf32>
      %378 = arith.mulf %377, %375 : vector<8x64xf32>
      %379 = arith.mulf %370, %355 : vector<8x64xf32>
      %380 = arith.addf %378, %379 : vector<8x64xf32>
      %c7_111 = arith.constant 7 : index
      %c0_112 = arith.constant 0 : index
      %c0_113 = arith.constant 0 : index
      %381 = vector.load %arg14[%c7_111, %c0_112, %c0_113] : memref<8x8x256xf32, #tpu.memory_space<vmem>>, vector<1x8x256xf32>
      %382 = vector.shape_cast %381 : vector<1x8x256xf32> to vector<8x256xf32>
      %cst_114 = arith.constant dense<0.000000e+00> : vector<8x256xf32>
      %383 = tpu.matmul %380, %107, %cst_114 {dimension_numbers = #tpu.dot_dimension_numbers<[1], [0], [0], [1], [0, 0, 1, 1], [], []>} : vector<8x64xf32>, vector<64x256xf32>, vector<8x256xf32> -> vector<8x256xf32>
      %384 = vector.broadcast %113 : vector<1x256xf32> to vector<8x256xf32>
      %385 = arith.addf %383, %384 : vector<8x256xf32>
      %386 = vector.extract_strided_slice %382 {offsets = [0, 0], sizes = [8, 128], strides = [1, 1]} : vector<8x256xf32> to vector<8x128xf32>
      %387 = vector.extract_strided_slice %385 {offsets = [0, 0], sizes = [8, 128], strides = [1, 1]} : vector<8x256xf32> to vector<8x128xf32>
      %388 = arith.addf %386, %387 : vector<8x128xf32>
      %389 = arith.negf %388 : vector<8x128xf32>
      %390 = math.exp %389 : vector<8x128xf32>
      %cst_115 = arith.constant 1.000000e+00 : f32
      %391 = vector.broadcast %cst_115 : f32 to vector<8x128xf32>
      %392 = arith.addf %391, %390 : vector<8x128xf32>
      %393 = arith.divf %391, %392 : vector<8x128xf32>
      %394 = vector.extract_strided_slice %393 {offsets = [0, 0], sizes = [8, 64], strides = [1, 1]} : vector<8x128xf32> to vector<8x64xf32>
      %395 = vector.extract_strided_slice %393 {offsets = [0, 64], sizes = [8, 64], strides = [1, 1]} : vector<8x128xf32> to vector<8x64xf32>
      %396 = vector.extract_strided_slice %382 {offsets = [0, 128], sizes = [8, 64], strides = [1, 1]} : vector<8x256xf32> to vector<8x64xf32>
      %397 = vector.extract_strided_slice %385 {offsets = [0, 128], sizes = [8, 64], strides = [1, 1]} : vector<8x256xf32> to vector<8x64xf32>
      %398 = arith.mulf %394, %397 : vector<8x64xf32>
      %399 = arith.addf %396, %398 : vector<8x64xf32>
      %400 = math.tanh %399 : vector<8x64xf32>
      %cst_116 = arith.constant 1.000000e+00 : f32
      %401 = vector.broadcast %cst_116 : f32 to vector<8x64xf32>
      %402 = arith.subf %401, %395 : vector<8x64xf32>
      %403 = arith.mulf %402, %400 : vector<8x64xf32>
      %404 = arith.mulf %395, %380 : vector<8x64xf32>
      %405 = arith.addf %403, %404 : vector<8x64xf32>
      %406 = arith.mulf %230, %18 : vector<8x64xf32>
      %407 = arith.mulf %405, %20 : vector<8x64xf32>
      %408 = arith.addf %406, %407 : vector<8x64xf32>
      %409 = arith.mulf %255, %18 : vector<8x64xf32>
      %410 = arith.mulf %380, %20 : vector<8x64xf32>
      %411 = arith.addf %409, %410 : vector<8x64xf32>
      %412 = arith.mulf %280, %18 : vector<8x64xf32>
      %413 = arith.mulf %355, %20 : vector<8x64xf32>
      %414 = arith.addf %412, %413 : vector<8x64xf32>
      %415 = arith.mulf %305, %18 : vector<8x64xf32>
      %416 = arith.mulf %330, %20 : vector<8x64xf32>
      %417 = arith.addf %415, %416 : vector<8x64xf32>
      %418 = arith.mulf %330, %18 : vector<8x64xf32>
      %419 = arith.mulf %305, %20 : vector<8x64xf32>
      %420 = arith.addf %418, %419 : vector<8x64xf32>
      %421 = arith.mulf %355, %18 : vector<8x64xf32>
      %422 = arith.mulf %280, %20 : vector<8x64xf32>
      %423 = arith.addf %421, %422 : vector<8x64xf32>
      %424 = arith.mulf %380, %18 : vector<8x64xf32>
      %425 = arith.mulf %255, %20 : vector<8x64xf32>
      %426 = arith.addf %424, %425 : vector<8x64xf32>
      %427 = arith.mulf %405, %18 : vector<8x64xf32>
      %428 = arith.mulf %230, %20 : vector<8x64xf32>
      %429 = arith.addf %427, %428 : vector<8x64xf32>
      %430 = vector.shape_cast %408 : vector<8x64xf32> to vector<1x8x64xf32>
      %431 = vector.shape_cast %411 : vector<8x64xf32> to vector<1x8x64xf32>
      %432 = vector.shape_cast %414 : vector<8x64xf32> to vector<1x8x64xf32>
      %433 = vector.shape_cast %417 : vector<8x64xf32> to vector<1x8x64xf32>
      %434 = vector.shape_cast %420 : vector<8x64xf32> to vector<1x8x64xf32>
      %435 = vector.shape_cast %423 : vector<8x64xf32> to vector<1x8x64xf32>
      %436 = vector.shape_cast %426 : vector<8x64xf32> to vector<1x8x64xf32>
      %437 = vector.shape_cast %429 : vector<8x64xf32> to vector<1x8x64xf32>
      %438 = tpu.concatenate %430, %431, %432, %433, %434, %435, %436, %437 in 0 : vector<1x8x64xf32>, vector<1x8x64xf32>, vector<1x8x64xf32>, vector<1x8x64xf32>, vector<1x8x64xf32>, vector<1x8x64xf32>, vector<1x8x64xf32>, vector<1x8x64xf32> -> vector<8x8x64xf32>
      %439 = vector.shape_cast %4 : vector<8x64xf32> to vector<1x8x64xf32>
      %440 = vector.broadcast %439 : vector<1x8x64xf32> to vector<8x8x64xf32>
      %441 = arith.mulf %438, %440 : vector<8x8x64xf32>
      %cst_117 = arith.constant dense<0.000000e+00> : vector<8x64xf32>
      %442 = vector.multi_reduction <add>, %441, %cst_117 [0] : vector<8x8x64xf32> to vector<8x64xf32>
      %cst_118 = arith.constant dense<0.000000e+00> : vector<64xf32>
      %443 = vector.multi_reduction <add>, %442, %cst_118 [0] : vector<8x64xf32> to vector<64xf32>
      %444 = vector.shape_cast %443 : vector<64xf32> to vector<1x64xf32>
      %cst_119 = arith.constant 6.250000e-02 : f32
      %445 = vector.broadcast %cst_119 : f32 to vector<1x64xf32>
      %446 = arith.mulf %444, %445 : vector<1x64xf32>
      %447 = vector.shape_cast %446 : vector<1x64xf32> to vector<1x1x64xf32>
      %448 = vector.broadcast %447 : vector<1x1x64xf32> to vector<8x8x64xf32>
      %449 = arith.subf %438, %448 : vector<8x8x64xf32>
      %450 = arith.mulf %449, %449 : vector<8x8x64xf32>
      %451 = vector.shape_cast %4 : vector<8x64xf32> to vector<1x8x64xf32>
      %452 = vector.broadcast %451 : vector<1x8x64xf32> to vector<8x8x64xf32>
      %453 = arith.mulf %450, %452 : vector<8x8x64xf32>
      %cst_120 = arith.constant dense<0.000000e+00> : vector<8x64xf32>
      %454 = vector.multi_reduction <add>, %453, %cst_120 [0] : vector<8x8x64xf32> to vector<8x64xf32>
      %cst_121 = arith.constant dense<0.000000e+00> : vector<64xf32>
      %455 = vector.multi_reduction <add>, %454, %cst_121 [0] : vector<8x64xf32> to vector<64xf32>
      %456 = vector.shape_cast %455 : vector<64xf32> to vector<1x64xf32>
      %cst_122 = arith.constant 6.250000e-02 : f32
      %457 = vector.broadcast %cst_122 : f32 to vector<1x64xf32>
      %458 = arith.mulf %456, %457 : vector<1x64xf32>
      %cst_123 = arith.constant 9.99999974E-6 : f32
      %459 = vector.broadcast %cst_123 : f32 to vector<1x64xf32>
      %460 = arith.addf %458, %459 : vector<1x64xf32>
      %461 = math.rsqrt %460 : vector<1x64xf32>
      %462 = vector.shape_cast %461 : vector<1x64xf32> to vector<1x1x64xf32>
      %463 = vector.broadcast %462 : vector<1x1x64xf32> to vector<8x8x64xf32>
      %464 = arith.mulf %449, %463 : vector<8x8x64xf32>
      %465 = vector.shape_cast %116 : vector<1x64xf32> to vector<1x1x64xf32>
      %466 = vector.broadcast %465 : vector<1x1x64xf32> to vector<8x8x64xf32>
      %467 = arith.mulf %464, %466 : vector<8x8x64xf32>
      %468 = vector.shape_cast %119 : vector<1x64xf32> to vector<1x1x64xf32>
      %469 = vector.broadcast %468 : vector<1x1x64xf32> to vector<8x8x64xf32>
      %470 = arith.addf %467, %469 : vector<8x8x64xf32>
      %c0_i32_124 = arith.constant 0 : i32
      %471 = arith.cmpi sgt, %arg15, %c0_i32_124 : i32
      %cst_125 = arith.constant 1.000000e+00 : f32
      %cst_126 = arith.constant 0.000000e+00 : f32
      %472 = arith.select %471, %cst_125, %cst_126 : f32
      %473 = vector.broadcast %472 : f32 to vector<8x8x64xf32>
      %474 = arith.mulf %473, %arg17 : vector<8x8x64xf32>
      %475 = arith.addf %470, %474 : vector<8x8x64xf32>
      scf.yield %405, %475 : vector<8x64xf32>, vector<8x8x64xf32>
    }
    %c8_i32_25 = arith.constant 8 : i32
    %cst_26 = arith.constant 0.000000e+00 : f32
    %63 = vector.broadcast %cst_26 : f32 to vector<8x8x64xf32>
    %64 = arith.cmpf ogt, %62#1, %63 : vector<8x8x64xf32>
    %cst_27 = arith.constant 0.00999999977 : f32
    %65 = vector.broadcast %cst_27 : f32 to vector<8x8x64xf32>
    %66 = arith.mulf %65, %62#1 : vector<8x8x64xf32>
    %67 = arith.select %64, %62#1, %66 : vector<8x8x64xi1>, vector<8x8x64xf32>
    %cst_28 = arith.constant 0.000000e+00 : f32
    %68 = vector.broadcast %cst_28 : f32 to vector<8x64xf32>
    %69 = vector.extract_strided_slice %67 {offsets = [7, 0, 0], sizes = [1, 8, 64], strides = [1, 1, 1]} : vector<8x8x64xf32> to vector<1x8x64xf32>
    %70 = vector.shape_cast %69 : vector<1x8x64xf32> to vector<8x64xf32>
    %71 = arith.mulf %70, %18 : vector<8x64xf32>
    %72 = vector.extract_strided_slice %67 {offsets = [0, 0, 0], sizes = [1, 8, 64], strides = [1, 1, 1]} : vector<8x8x64xf32> to vector<1x8x64xf32>
    %73 = vector.shape_cast %72 : vector<1x8x64xf32> to vector<8x64xf32>
    %74 = arith.mulf %73, %20 : vector<8x64xf32>
    %75 = arith.addf %71, %74 : vector<8x64xf32>
    %76 = vector.extract_strided_slice %67 {offsets = [3, 0, 0], sizes = [1, 8, 64], strides = [1, 1, 1]} : vector<8x8x64xf32> to vector<1x8x64xf32>
    %77 = vector.shape_cast %76 : vector<1x8x64xf32> to vector<8x64xf32>
    %78 = arith.mulf %77, %18 : vector<8x64xf32>
    %79 = arith.addf %78, %68 : vector<8x64xf32>
    %80 = vector.extract_strided_slice %67 {offsets = [2, 0, 0], sizes = [1, 8, 64], strides = [1, 1, 1]} : vector<8x8x64xf32> to vector<1x8x64xf32>
    %81 = vector.shape_cast %80 : vector<1x8x64xf32> to vector<8x64xf32>
    %82 = arith.mulf %81, %20 : vector<8x64xf32>
    %83 = arith.addf %68, %82 : vector<8x64xf32>
    %84 = vector.extract_strided_slice %67 {offsets = [5, 0, 0], sizes = [1, 8, 64], strides = [1, 1, 1]} : vector<8x8x64xf32> to vector<1x8x64xf32>
    %85 = vector.shape_cast %84 : vector<1x8x64xf32> to vector<8x64xf32>
    %86 = arith.mulf %85, %18 : vector<8x64xf32>
    %87 = vector.extract_strided_slice %67 {offsets = [4, 0, 0], sizes = [1, 8, 64], strides = [1, 1, 1]} : vector<8x8x64xf32> to vector<1x8x64xf32>
    %88 = vector.shape_cast %87 : vector<1x8x64xf32> to vector<8x64xf32>
    %89 = arith.mulf %88, %20 : vector<8x64xf32>
    %90 = arith.addf %86, %89 : vector<8x64xf32>
    %91 = vector.shape_cast %75 : vector<8x64xf32> to vector<1x8x64xf32>
    %92 = vector.shape_cast %79 : vector<8x64xf32> to vector<1x8x64xf32>
    %93 = vector.shape_cast %83 : vector<8x64xf32> to vector<1x8x64xf32>
    %94 = vector.shape_cast %90 : vector<8x64xf32> to vector<1x8x64xf32>
    %95 = tpu.concatenate %91, %92, %93, %94 in 0 : vector<1x8x64xf32>, vector<1x8x64xf32>, vector<1x8x64xf32>, vector<1x8x64xf32> -> vector<4x8x64xf32>
    %c0_29 = arith.constant 0 : index
    %c0_30 = arith.constant 0 : index
    %c0_31 = arith.constant 0 : index
    %96 = vector.load %arg11[%c0_29, %c0_30, %c0_31] : memref<4x64x4xf32, #tpu.memory_space<vmem>>, vector<4x64x4xf32>
    "tpu.trace_start"() <{level = 10 : i32, message = "obw,owc->obc"}> : () -> ()
    %cst_32 = arith.constant dense<0.000000e+00> : vector<4x8x4xf32>
    %97 = tpu.matmul %95, %96, %cst_32 {dimension_numbers = #tpu.dot_dimension_numbers<[2], [1], [1], [2], [0, 0, 0, 1, 1, 2], [0], [0]>} : vector<4x8x64xf32>, vector<4x64x4xf32>, vector<4x8x4xf32> -> vector<4x8x4xf32>
    "tpu.trace_stop"() : () -> ()
    %c0_33 = arith.constant 0 : index
    %c0_34 = arith.constant 0 : index
    %c0_35 = arith.constant 0 : index
    %98 = vector.load %arg12[%c0_33, %c0_34, %c0_35] : memref<4x1x4xf32, #tpu.memory_space<vmem>>, vector<4x1x4xf32>
    %99 = vector.broadcast %98 : vector<4x1x4xf32> to vector<4x8x4xf32>
    %100 = arith.addf %97, %99 : vector<4x8x4xf32>
    %c0_36 = arith.constant 0 : index
    %c0_37 = arith.constant 0 : index
    %c0_38 = arith.constant 0 : index
    %101 = vector.load %arg13[%c0_36, %c0_37, %c0_38] : memref<4x8x4xf32, #tpu.memory_space<vmem>>, vector<4x8x4xf32>
    tpu.vector_store %arg13[%c0_36, %c0_37, %c0_38], %100 {strides = array<i32>} : memref<4x8x4xf32, #tpu.memory_space<vmem>>, vector<4x8x4xf32>,
    return
  }
}

</mosaic_0001>

<bundles_post_ra>
// kernel: tpu_custom_call.1
= control target key start
LH: loop header
LB: loop body
LE: loop exit
PB: predicated region body
PF: predicated region fallthrough
CT: control target
= control target key end

     0   :  { %18 = vsyncpa [#allocation4], 0  ;;  %s3616_s0 = inlined_call_operand.vmem [shape: f32[8,8,16], index: 0, kind: input, shape index: {}]   ;;  %s3617_s1 = inlined_call_operand.vmem [shape: f32[8,16,64], index: 1, kind: input, shape index: {}]   ;;  %s3618_s2 = inlined_call_operand.vmem [shape: f32[8,1,64], index: 2, kind: input, shape index: {}]   ;;  %s3619_s3 = inlined_call_operand.vmem [shape: f32[8,1,64], index: 3, kind: input, shape index: {}]   ;;  %s3620_s4 = inlined_call_operand.vmem [shape: f32[8,1,64], index: 4, kind: input, shape index: {}]   ;;  %s3621_s5 = inlined_call_operand.hbm [shape: f32[8,64,256], index: 5, kind: input, shape index: {}]   ;;  %s3622_s6 = inlined_call_operand.vmem [shape: f32[8,1,256], index: 6, kind: input, shape index: {}]   ;;  %s3623_s7 = inlined_call_operand.hbm [shape: f32[8,64,256], index: 7, kind: input, shape index: {}]   ;;  %s3624_s8 = inlined_call_operand.vmem [shape: f32[8,1,256], index: 8, kind: input, shape index: {}]   ;;  %s3625_s9 = inlined_call_operand.vmem [shape: f32[8,1,64], index: 9, kind: input, shape index: {}]   ;;  %s3626_s10 = inlined_call_operand.vmem [shape: f32[8,1,64], index: 10, kind: input, shape index: {}]   ;;  %s3627_s11 = inlined_call_operand.vmem [shape: f32[4,64,4], index: 11, kind: input, shape index: {}]   ;;  %s3628_s12 = inlined_call_operand.vmem [shape: f32[4,1,4], index: 12, kind: input, shape index: {}]   ;;  %s3629_s13 = inlined_call_operand.vmem [shape: f32[4,8,4], index: 13, kind: output, shape index: {}]  }
   0x1   :  { %s34_s27 = sshll.u32 %s3621_s5, 4  ;;  %s35_s27 = int_to_ptr.hbm [resolvable:$true] %s34_s27 }
   0x2   :  { %19 = vsyncpa [#allocation6], 0  ;;  %s2424_s28 = smov [#allocation3]   ;;  %s49_s15 = sshll.u32 %s3623_s7, 4  ;;  %s50_s15 = int_to_ptr.hbm [resolvable:$true] %s49_s15 }
   0x3   :  { %s36_s29 = sshll.u32 %s2424_s28, 4  ;;  %s2425_s16 = smov 256   ;;  %s37_s29 = int_to_ptr.vmem [resolvable:$true] %s36_s29 }
   0x4   :  { %s2426_s17 = smov 16   ;;  %s2427_s18 = smov [#allocation5]  }
   0x5   :  { %42 = dma.hbm_to_vmem [thread:$0]  %s35_s27, 16384, %s37_s29, [#allocation4], %s2425_s16, %s2425_s16, %s2426_s17  }
   0x6   :  { %s51_s19 = sshll.u32 %s2427_s18, 4  ;;  %s52_s19 = int_to_ptr.vmem [resolvable:$true] %s51_s19 }
   0x7   :  { %57 = dma.hbm_to_vmem [thread:$0]  %s50_s15, 16384, %s52_s19, [#allocation6], %s2425_s16, %s2425_s16, %s2426_s17  }
   0x8   :  { %2380 = dma.done.wait [#allocation4], 16384  }
   0x9   :  { %2381 = vsyncadd [#allocation4], 4294950912 }
   0xa   :  { %2382 = dma.done.wait [#allocation6], 16384  }
   0xb   :  { %2383 = vsyncadd [#allocation6], 4294950912  ;;  %v76_v0 = vlaneseq  ;;  %v2428_v4 = vmov 0.0   ;;  %v107_v8 = vld [vmem:[%s3617_s1 + $0x8] sm:$0xff]  ;;  %v109_v9 = vld [vmem:[%s3617_s1 + $0x18] sm:$0xff]  ;;  %vm154_vm3 = vcmask 130048  }
   0xc   :  { %v111_v10 = vld [vmem:[%s3617_s1 + $0x28] sm:$0xff]  ;;  %172 = vmatpush.msra.mxu0 %v107_v8  ;;  %195 = vmatpush.msra.mxu1 %v109_v9  ;;  %v113_v12 = vld [vmem:[%s3617_s1 + $0x38] sm:$0xff]  ;;  %v106_v13 = vld [vmem:[%s3617_s1] sm:$0xff]  ;;  %vm371_vm7 = vcmask 523264  }
   0xd   :  { %v82_v1 = vand.u32 127, %v76_v0  ;;  %v108_v14 = vld [vmem:[%s3617_s1 + $0x10] sm:$0xff]  ;;  %218 = vmatpush.msra.mxu2 %v111_v10  ;;  %241 = vmatpush.msra.mxu3 %v113_v12  ;;  %v110_v16 = vld [vmem:[%s3617_s1 + $0x20] sm:$0xff]  ;;  %v99_v20 = vld [vmem:[%s3616_s0 + $0x8] sm:$0xff]  ;;  %v77_v36 = vshrl.u32 %v76_v0, 7 }
   0xe   :  { %v112_v17 = vld [vmem:[%s3617_s1 + $0x30] sm:$0xff]  ;;  %v98_v18 = vld [vmem:[%s3616_s0] sm:$0xff]  ;;  %173 = vmatpush.msra.mxu0 %v106_v13  ;;  %196 = vmatpush.msra.mxu1 %v108_v14  ;;  %v101_v22 = vld [vmem:[%s3616_s0 + $0x18] sm:$0xff] }
   0xf   :  { %v83_v2 = vadd.s32 128, %v82_v1  ;;  %v84_v3 = vand.u32 63, %v82_v1  ;;  %vm94_vm0 = vcmp.lt.s32.totalorder %v82_v1, 32  ;;  %v100_v21 = vld [vmem:[%s3616_s0 + $0x10] sm:$0xff]  ;;  %219 = vmatpush.msra.mxu2 %v110_v16  ;;  %242 = vmatpush.msra.mxu3 %v112_v17  ;;  %v119_v24 = vld [vmem:[%s3617_s1 + $0x68] sm:$0xff]  ;;  %v121_v25 = vld [vmem:[%s3617_s1 + $0x78] sm:$0xff] }
  0x10   :  { %v2508_v5 = vsel %vm94_vm0, 1.0, %v2428_v4  ;;  %2052 = vmatmul.msk.f32.vlgmr.msra.gmra.mxu0 %vm154_vm3, %v98_v18  ;;  %2053 = vmatmul.msk.f32.vlgmr.msra.gmra.mxu1 %vm154_vm3, %v99_v20  ;;  %v115_v26 = vld [vmem:[%s3617_s1 + $0x48] sm:$0xff]  ;;  %v117_v27 = vld [vmem:[%s3617_s1 + $0x58] sm:$0xff]  ;;  %v118_v28 = vld [vmem:[%s3617_s1 + $0x60] sm:$0xff]  ;;  %vm78_vm4 = vcmp.lt.s32.totalorder %v77_v36, 2 }
  0x11   :  { %v85_v6 = vand.u32 63, %v83_v2  ;;  %vm86_vm1 = vcmp.lt.s32.totalorder %v84_v3, 32  ;;  %v2511_v7 = vsub.f32 1.0, %v2508_v5  ;;  %2054 = vmatmul.msk.f32.vlgmr.msra.gmra.mxu2 %vm154_vm3, %v100_v21  ;;  %2055 = vmatmul.msk.f32.vlgmr.msra.gmra.mxu3 %vm154_vm3, %v101_v22  ;;  %v120_v29 = vld [vmem:[%s3617_s1 + $0x70] sm:$0xff]  ;;  %v114_v30 = vld [vmem:[%s3617_s1 + $0x40] sm:$0xff]  ;;  %v103_v33 = vld [vmem:[%s3616_s0 + $0x28] sm:$0xff] }
  0x12   :  { %v2523_v11 = vsel %vm86_vm1, 1.0, %v2428_v4  ;;  %310 = vmatpush.msrb.mxu2 %v119_v24  ;;  %333 = vmatpush.msrb.mxu3 %v121_v25  ;;  %v116_v31 = vld [vmem:[%s3617_s1 + $0x50] sm:$0xff]  ;;  %v102_v32 = vld [vmem:[%s3616_s0 + $0x20] sm:$0xff]  ;;  %v105_v35 = vld [vmem:[%s3616_s0 + $0x38] sm:$0xff]  ;;  %v2613_v43 = vsel %vm78_vm4, 1.0, %v2428_v4 }
  0x13   :  { %3636 = vst [vmem:[#allocation9_spill] sm:$0xff] %v2523_v11  ;;  %vm87_vm2 = vcmp.lt.s32.totalorder %v85_v6, 32  ;;  %v2535_v15 = vsub.f32 1.0, %v2523_v11  ;;  %264 = vmatpush.msrb.mxu0 %v115_v26  ;;  %287 = vmatpush.msrb.mxu1 %v117_v27  ;;  %v104_v34 = vld [vmem:[%s3616_s0 + $0x30] sm:$0xff]  ;;  %v2196_v37 = vld [vmem:[%s3618_s2] ss:$0 sm:$0xff] }
  0x14   :  { %v2547_v19 = vsel %vm87_vm2, 1.0, %v2428_v4  ;;  %311 = vmatpush.msrb.mxu2 %v118_v28  ;;  %334 = vmatpush.msrb.mxu3 %v120_v29  ;;  %v2199_v38 = vld [vmem:[%s3618_s2 + $0x1] ss:$0 sm:$0xff]  ;;  %3638 = vst [vmem:[#allocation11_spill] sm:$0xff] %v2613_v43  ;;  %v2202_v46 = vld [vmem:[%s3618_s2 + $0x2] ss:$0 sm:$0xff] }
  0x15   :  { %3637 = vst [vmem:[#allocation10_spill] sm:$0xff] %v2535_v15  ;;  %v2559_v23 = vsub.f32 1.0, %v2547_v19  ;;  %265 = vmatpush.msrb.mxu0 %v114_v30  ;;  %288 = vmatpush.msrb.mxu1 %v116_v31  ;;  %v2205_v47 = vld [vmem:[%s3618_s2 + $0x3] ss:$0 sm:$0xff]  ;;  %v2208_v50 = vld [vmem:[%s3618_s2 + $0x4] ss:$0 sm:$0xff] }
  0x16   :  { %v2211_v51 = vld [vmem:[%s3618_s2 + $0x5] ss:$0 sm:$0xff]  ;;  %v2214_v18 = vld [vmem:[%s3618_s2 + $0x6] ss:$0 sm:$0xff]  ;;  %v2217_v20 = vld [vmem:[%s3618_s2 + $0x7] ss:$0 sm:$0xff] }
  0x18   :  { %2056 = vmatmul.msk.f32.vlgmr.msrb.gmra.mxu0 %vm154_vm3, %v102_v32  ;;  %2057 = vmatmul.msk.f32.vlgmr.msrb.gmra.mxu1 %vm154_vm3, %v103_v33 }
  0x19   :  { %2058 = vmatmul.msk.f32.vlgmr.msrb.gmra.mxu2 %vm154_vm3, %v104_v34  ;;  %2059 = vmatmul.msk.f32.vlgmr.msrb.gmra.mxu3 %vm154_vm3, %v105_v35 }
  0x8d   :  { %v175_v39 = vpop.f32.mrf.mxu0  ;;  %v198_v40 = vpop.f32.mrf.mxu1 }
  0x8e   :  { %v176_v41 = vadd.f32 %v2196_v37, %v175_v39  ;;  %v199_v42 = vadd.f32 %v2199_v38, %v198_v40 }
  0x90   :  { %vm339_vm5 = vcmp.gt.f32.partialorder %v176_v41, 0.0  ;;  %v347_v44 = vmul.f32 0.01, %v176_v41  ;;  %vm340_vm6 = vcmp.gt.f32.partialorder %v199_v42, 0.0  ;;  %v348_v45 = vmul.f32 0.01, %v199_v42 }
  0x92   :  { %v2621_v48 = vsel %vm339_vm5, %v176_v41, %v347_v44  ;;  %v2623_v49 = vsel %vm340_vm6, %v199_v42, %v348_v45 }
  0x93   :  { %v363_v52 = vmul.f32 %v2613_v43, %v2621_v48  ;;  %v364_v53 = vmul.f32 %v2613_v43, %v2623_v49 }
  0x94   :  { %v221_v54 = vpop.f32.mrf.mxu2  ;;  %v244_v55 = vpop.f32.mrf.mxu3 }
  0x95   :  { %v372_v56 = vsel %vm371_vm7, %v363_v52, 0.0  ;;  %v379_v57 = vsel %vm371_vm7, %v364_v53, 0.0  ;;  %v222_v58 = vadd.f32 %v2202_v46, %v221_v54  ;;  %v245_v59 = vadd.f32 %v2205_v47, %v244_v55  ;;  %v267_v60 = vpop.f32.mrf.mxu0  ;;  %v290_v61 = vpop.f32.mrf.mxu1 }
  0x96   :  { %v373_v62 = vrot.slane %v372_v56, 4  ;;  %v380_v63 = vrot.slane %v379_v57, 4  ;;  %v268_v0 = vadd.f32 %v2208_v50, %v267_v60  ;;  %v291_v1 = vadd.f32 %v2211_v51, %v290_v61 }
  0x97   :  { %vm341_vm8 = vcmp.gt.f32.partialorder %v222_v58, 0.0  ;;  %v349_v2 = vmul.f32 0.01, %v222_v58  ;;  %vm342_vm9 = vcmp.gt.f32.partialorder %v245_v59, 0.0  ;;  %v350_v3 = vmul.f32 0.01, %v245_v59 }
  0x98   :  { %v374_v4 = vadd.f32 %v373_v62, %v372_v56  ;;  %v381_v6 = vadd.f32 %v380_v63, %v379_v57  ;;  %vm343_vm10 = vcmp.gt.f32.partialorder %v268_v0, 0.0  ;;  %v351_v8 = vmul.f32 0.01, %v268_v0 }
  0x99   :  { %v2637_v9 = vsel %vm341_vm8, %v222_v58, %v349_v2  ;;  %v2639_v10 = vsel %vm342_vm9, %v245_v59, %v350_v3  ;;  %vm344_vm11 = vcmp.gt.f32.partialorder %v291_v1, 0.0  ;;  %v352_v12 = vmul.f32 0.01, %v291_v1 }
  0x9a   :  { %v375_v13 = vrot.slane %v374_v4, 2  ;;  %v382_v14 = vrot.slane %v381_v6, 2  ;;  %v365_v16 = vmul.f32 %v2613_v43, %v2637_v9  ;;  %v366_v17 = vmul.f32 %v2613_v43, %v2639_v10 }
  0x9b   :  { %v2651_v21 = vsel %vm343_vm10, %v268_v0, %v351_v8  ;;  %v2653_v22 = vsel %vm344_vm11, %v291_v1, %v352_v12 }
  0x9c   :  { %v376_v24 = vadd.f32 %v375_v13, %v374_v4  ;;  %v383_v25 = vadd.f32 %v382_v14, %v381_v6  ;;  %v386_v26 = vsel %vm371_vm7, %v365_v16, 0.0  ;;  %v393_v27 = vsel %vm371_vm7, %v366_v17, 0.0  ;;  %v313_v28 = vpop.f32.mrf.mxu2  ;;  %v336_v29 = vpop.f32.mrf.mxu3 }
  0x9d   :  { %v387_v30 = vrot.slane %v386_v26, 4  ;;  %v394_v31 = vrot.slane %v393_v27, 4  ;;  %v367_v32 = vmul.f32 %v2613_v43, %v2651_v21  ;;  %v368_v33 = vmul.f32 %v2613_v43, %v2653_v22 }
  0x9e   :  { %v377_v34 = vrot.slane %v376_v24, 1  ;;  %v384_v35 = vrot.slane %v383_v25, 1  ;;  %v314_v36 = vadd.f32 %v2214_v18, %v313_v28  ;;  %v337_v37 = vadd.f32 %v2217_v20, %v336_v29 }
  0x9f   :  { %v388_v38 = vadd.f32 %v387_v30, %v386_v26  ;;  %v395_v39 = vadd.f32 %v394_v31, %v393_v27  ;;  %v400_v40 = vsel %vm371_vm7, %v367_v32, 0.0  ;;  %v407_v41 = vsel %vm371_vm7, %v368_v33, 0.0 }
  0xa0   :  { %v378_v42 = vadd.f32 %v377_v34, %v376_v24  ;;  %v385_v44 = vadd.f32 %v384_v35, %v383_v25  ;;  %v401_v45 = vrot.slane %v400_v40, 4  ;;  %v408_v46 = vrot.slane %v407_v41, 4 }
  0xa1   :  { %v389_v47 = vrot.slane %v388_v38, 2  ;;  %v396_v50 = vrot.slane %v395_v39, 2  ;;  %vm345_vm12 = vcmp.gt.f32.partialorder %v314_v36, 0.0  ;;  %v353_v51 = vmul.f32 0.01, %v314_v36 }
  0xa2   :  { %v428_v52 = vmul.f32 0.5, %v378_v42  ;;  %v429_v53 = vmul.f32 0.5, %v385_v44  ;;  %v402_v54 = vadd.f32 %v401_v45, %v400_v40  ;;  %v409_v55 = vadd.f32 %v408_v46, %v407_v41 }
  0xa3   :  { %v390_v56 = vadd.f32 %v389_v47, %v388_v38  ;;  %v397_v57 = vadd.f32 %v396_v50, %v395_v39  ;;  %v2663_v58 = vsel %vm345_vm12, %v314_v36, %v353_v51  ;;  %vm346_vm13 = vcmp.gt.f32.partialorder %v337_v37, 0.0 }
  0xa4   :  { %v2666_v59 = vsub.f32 %v2621_v48, %v428_v52  ;;  %v2669_v60 = vsub.f32 %v2623_v49, %v429_v53  ;;  %v403_v61 = vrot.slane %v402_v54, 2  ;;  %v410_v62 = vrot.slane %v409_v55, 2 }
  0xa5   :  { %v391_v63 = vrot.slane %v390_v56, 1  ;;  %v398_v0 = vrot.slane %v397_v57, 1  ;;  %v369_v1 = vmul.f32 %v2613_v43, %v2663_v58  ;;  %v354_v2 = vmul.f32 0.01, %v337_v37 }
  0xa6   :  { %v444_v3 = vmul.f32 %v2666_v59, %v2666_v59  ;;  %v445_v4 = vmul.f32 %v2669_v60, %v2669_v60  ;;  %v404_v6 = vadd.f32 %v403_v61, %v402_v54  ;;  %v411_v48 = vadd.f32 %v410_v62, %v409_v55 }
  0xa7   :  { %v392_v8 = vadd.f32 %v391_v63, %v390_v56  ;;  %v399_v12 = vadd.f32 %v398_v0, %v397_v57  ;;  %v414_v49 = vsel %vm371_vm7, %v369_v1, 0.0  ;;  %v2679_v13 = vsel %vm346_vm13, %v337_v37, %v354_v2 }
  0xa8   :  { %v452_v14 = vmul.f32 %v2613_v43, %v444_v3  ;;  %v453_v16 = vmul.f32 %v2613_v43, %v445_v4  ;;  %v405_v17 = vrot.slane %v404_v6, 1  ;;  %v412_v18 = vrot.slane %v411_v48, 1 }
  0xa9   :  { %v430_v20 = vmul.f32 0.5, %v392_v8  ;;  %v431_v24 = vmul.f32 0.5, %v399_v12  ;;  %v415_v25 = vrot.slane %v414_v49, 4  ;;  %v370_v26 = vmul.f32 %v2613_v43, %v2679_v13 }
  0xaa   :  { %v460_v27 = vsel %vm371_vm7, %v452_v14, 0.0  ;;  %v467_v28 = vsel %vm371_vm7, %v453_v16, 0.0  ;;  %v406_v29 = vadd.f32 %v405_v17, %v404_v6  ;;  %v413_v30 = vadd.f32 %v412_v18, %v411_v48 }
  0xab   :  { %v461_v31 = vrot.slane %v460_v27, 4  ;;  %v468_v32 = vrot.slane %v467_v28, 4  ;;  %v2688_v33 = vsub.f32 %v2637_v9, %v430_v20  ;;  %v2691_v34 = vsub.f32 %v2639_v10, %v431_v24 }
  0xac   :  { %v432_v35 = vmul.f32 0.5, %v406_v29  ;;  %v433_v36 = vmul.f32 0.5, %v413_v30  ;;  %v416_v37 = vadd.f32 %v415_v25, %v414_v49  ;;  %v421_v38 = vsel %vm371_vm7, %v370_v26, 0.0 }
  0xad   :  { %v462_v39 = vadd.f32 %v461_v31, %v460_v27  ;;  %v469_v40 = vadd.f32 %v468_v32, %v467_v28  ;;  %v446_v41 = vmul.f32 %v2688_v33, %v2688_v33  ;;  %v447_v42 = vmul.f32 %v2691_v34, %v2691_v34 }
  0xae   :  { %v2699_v44 = vsub.f32 %v2651_v21, %v432_v35  ;;  %v2702_v9 = vsub.f32 %v2653_v22, %v433_v36  ;;  %v417_v10 = vrot.slane %v416_v37, 2  ;;  %v422_v45 = vrot.slane %v421_v38, 4 }
  0xaf   :  { %v463_v46 = vrot.slane %v462_v39, 2  ;;  %v470_v47 = vrot.slane %v469_v40, 2  ;;  %v454_v50 = vmul.f32 %v2613_v43, %v446_v41  ;;  %v455_v51 = vmul.f32 %v2613_v43, %v447_v42 }
  0xb0   :  { %v448_v52 = vmul.f32 %v2699_v44, %v2699_v44  ;;  %v449_v53 = vmul.f32 %v2702_v9, %v2702_v9  ;;  %v418_v54 = vadd.f32 %v417_v10, %v416_v37  ;;  %v423_v21 = vadd.f32 %v422_v45, %v421_v38 }
  0xb1   :  { %v464_v55 = vadd.f32 %v463_v46, %v462_v39  ;;  %v471_v56 = vadd.f32 %v470_v47, %v469_v40  ;;  %v474_v22 = vsel %vm371_vm7, %v454_v50, 0.0  ;;  %v481_v57 = vsel %vm371_vm7, %v455_v51, 0.0 }
  0xb2   :  { %v475_v61 = vrot.slane %v474_v22, 4  ;;  %v482_v62 = vrot.slane %v481_v57, 4  ;;  %v456_v63 = vmul.f32 %v2613_v43, %v448_v52  ;;  %v457_v0 = vmul.f32 %v2613_v43, %v449_v53 }
  0xb3   :  { %v465_v1 = vrot.slane %v464_v55, 1  ;;  %v472_v2 = vrot.slane %v471_v56, 1  ;;  %v419_v3 = vrot.slane %v418_v54, 1  ;;  %v424_v4 = vrot.slane %v423_v21, 2 }
  0xb4   :  { %v476_v6 = vadd.f32 %v475_v61, %v474_v22  ;;  %v483_v48 = vadd.f32 %v482_v62, %v481_v57  ;;  %v488_v8 = vsel %vm371_vm7, %v456_v63, 0.0  ;;  %v495_v12 = vsel %vm371_vm7, %v457_v0, 0.0 }
  0xb5   :  { %v466_v49 = vadd.f32 %v465_v1, %v464_v55  ;;  %v473_v14 = vadd.f32 %v472_v2, %v471_v56  ;;  %v489_v16 = vrot.slane %v488_v8, 4  ;;  %v496_v17 = vrot.slane %v495_v12, 4 }
  0xb6   :  { %v477_v18 = vrot.slane %v476_v6, 2  ;;  %v484_v20 = vrot.slane %v483_v48, 2  ;;  %v420_v24 = vadd.f32 %v419_v3, %v418_v54  ;;  %v425_v25 = vadd.f32 %v424_v4, %v423_v21 }
  0xb7   :  { %v516_v26 = vmul.f32 0.5, %v466_v49  ;;  %v517_v27 = vmul.f32 0.5, %v473_v14  ;;  %v490_v28 = vadd.f32 %v489_v16, %v488_v8  ;;  %v497_v29 = vadd.f32 %v496_v17, %v495_v12 }
  0xb8   :  { %v478_v30 = vadd.f32 %v477_v18, %v476_v6  ;;  %v485_v31 = vadd.f32 %v484_v20, %v483_v48  ;;  %v434_v32 = vmul.f32 0.5, %v420_v24  ;;  %v426_v35 = vrot.slane %v425_v25, 1 }
  0xb9   :  { %v524_v36 = vadd.f32 1e-05, %v516_v26  ;;  %v2716_v37 = vadd.f32 1e-05, %v517_v27  ;;  %v491_v38 = vrot.slane %v490_v28, 2  ;;  %v498_v39 = vrot.slane %v497_v29, 2 }
  0xba   :  { %v479_v40 = vrot.slane %v478_v30, 1  ;;  %v486_v41 = vrot.slane %v485_v31, 1  ;;  %v2719_v42 = vsub.f32 %v2663_v58, %v434_v32  ;;  %v427_v10 = vadd.f32 %v426_v35, %v425_v25 }
  0xbb   :  { %2220 = vrsqrt.f32 %v524_v36  ;;  %v492_v45 = vadd.f32 %v491_v38, %v490_v28  ;;  %v499_v50 = vadd.f32 %v498_v39, %v497_v29  ;;  %vm538_vm14 = vweird.f32 %v524_v36  ;;  %v2197_v39 = vld [vmem:[%s3619_s3] ss:$0 sm:$0xff] }
  0xbc   :  { %2222 = vrsqrt.f32 %v2716_v37  ;;  %v480_v46 = vadd.f32 %v479_v40, %v478_v30  ;;  %v487_v47 = vadd.f32 %v486_v41, %v485_v31  ;;  %v450_v52 = vmul.f32 %v2719_v42, %v2719_v42 }
  0xbd   :  { %v493_v51 = vrot.slane %v492_v45, 1  ;;  %v435_v53 = vmul.f32 0.5, %v427_v10  ;;  %v500_v55 = vrot.slane %v499_v50, 1  ;;  %vm548_vm1 = vweird.f32 %v2716_v37 }
  0xbe   :  { %v518_v54 = vmul.f32 0.5, %v480_v46  ;;  %v519_v21 = vmul.f32 0.5, %v487_v47  ;;  %v458_v58 = vmul.f32 %v2613_v43, %v450_v52 }
  0xbf   :  { %v494_v56 = vadd.f32 %v493_v51, %v492_v45  ;;  %v2726_v22 = vsub.f32 %v2679_v13, %v435_v53  ;;  %v501_v62 = vadd.f32 %v500_v55, %v499_v50  ;;  %v2198_v50 = vld [vmem:[%s3620_s4] ss:$0 sm:$0xff]  ;;  %v2201_v55 = vld [vmem:[%s3620_s4 + $0x1] ss:$0 sm:$0xff] }
  0xc0   :  { %v2728_v57 = vadd.f32 1e-05, %v518_v54  ;;  %v2730_v61 = vadd.f32 1e-05, %v519_v21  ;;  %v502_v1 = vsel %vm371_vm7, %v458_v58, 0.0 }
  0xc1   :  { %v2221_v63 = vpop.eup %2220  ;;  %v520_v0 = vmul.f32 0.5, %v494_v56  ;;  %v451_v2 = vmul.f32 %v2726_v22, %v2726_v22  ;;  %v521_v8 = vmul.f32 0.5, %v501_v62  ;;  %v503_v12 = vrot.slane %v502_v1, 4 }
  0xc2   :  { %v2223_v3 = vpop.eup %2222  ;;  %v533_v4 = vmul.f32 %v2221_v63, %v524_v36  ;;  %2224 = vrsqrt.f32 %v2728_v57  ;;  %vm539_vm15 = vweird.f32 %v2221_v63  ;;  %vm558_vm3 = vweird.f32 %v2728_v57  ;;  %v2200_v36 = vld [vmem:[%s3619_s3 + $0x1] ss:$0 sm:$0xff] }
  0xc3   :  { %v543_v6 = vmul.f32 %v2223_v3, %v2716_v37  ;;  %2226 = vrsqrt.f32 %v2730_v61  ;;  %v2738_v48 = vadd.f32 1e-05, %v520_v0  ;;  %v459_v14 = vmul.f32 %v2613_v43, %v451_v2  ;;  %vm540_vm2 = vmor %vm538_vm14, %vm539_vm15 }
  0xc4   :  { %v534_v13 = vmul.f32 %v2221_v63, %v533_v4  ;;  %v2742_v17 = vadd.f32 1e-05, %v521_v8  ;;  %v504_v20 = vadd.f32 %v503_v12, %v502_v1  ;;  %vm549_vm0 = vweird.f32 %v2223_v3 }
  0xc5   :  { %v544_v49 = vmul.f32 %v2223_v3, %v543_v6  ;;  %2228 = vrsqrt.f32 %v2738_v48  ;;  %v509_v24 = vsel %vm371_vm7, %v459_v14, 0.0  ;;  %vm550_vm4 = vmor %vm548_vm1, %vm549_vm0  ;;  %vm568_vm6 = vweird.f32 %v2730_v61 }
  0xc6   :  { %v535_v16 = vmul.f32 0.5, %v534_v13  ;;  %2230 = vrsqrt.f32 %v2742_v17  ;;  %v510_v27 = vrot.slane %v509_v24, 4  ;;  %v505_v31 = vrot.slane %v504_v20, 2 }
  0xc7   :  { %v545_v18 = vmul.f32 0.5, %v544_v49  ;;  %vm578_vm8 = vweird.f32 %v2738_v48  ;;  %v2203_v49 = vld [vmem:[%s3619_s3 + $0x2] ss:$0 sm:$0xff]  ;;  %vm588_vm15 = vweird.f32 %v2742_v17 }
  0xc8   :  { %v2745_v25 = vpop.eup %2224  ;;  %v536_v26 = vsub.f32 1.5, %v535_v16  ;;  %v511_v38 = vadd.f32 %v510_v27, %v509_v24  ;;  %v506_v10 = vadd.f32 %v505_v31, %v504_v20  ;;  %v2206_v24 = vld [vmem:[%s3619_s3 + $0x3] ss:$0 sm:$0xff] }
  0xc9   :  { %v2748_v28 = vpop.eup %2226  ;;  %v546_v29 = vsub.f32 1.5, %v545_v18  ;;  %v553_v30 = vmul.f32 %v2745_v25, %v2728_v57  ;;  %vm559_vm5 = vweird.f32 %v2745_v25 }
  0xca   :  { %v537_v32 = vmul.f32 %v2221_v63, %v536_v26  ;;  %v563_v35 = vmul.f32 %v2748_v28, %v2730_v61  ;;  %v512_v58 = vrot.slane %v511_v38, 2  ;;  %vm569_vm9 = vweird.f32 %v2748_v28  ;;  %vm560_vm10 = vmor %vm558_vm3, %vm559_vm5 }
  0xcb   :  { %v547_v40 = vmul.f32 %v2223_v3, %v546_v29  ;;  %v554_v41 = vmul.f32 %v2745_v25, %v553_v30  ;;  %v2761_v45 = vpop.eup %2228  ;;  %vm570_vm11 = vmor %vm568_vm6, %vm569_vm9  ;;  %v2204_v29 = vld [vmem:[%s3620_s4 + $0x2] ss:$0 sm:$0xff] }
  0xcc   :  { %v541_v46 = vsel %vm540_vm2, %v2221_v63, %v537_v32  ;;  %v564_v37 = vmul.f32 %v2748_v28, %v563_v35  ;;  %v573_v53 = vmul.f32 %v2761_v45, %v2738_v48  ;;  %v2231_v54 = vpop.eup %2230  ;;  %v513_v18 = vadd.f32 %v512_v58, %v511_v38  ;;  %v2207_v32 = vld [vmem:[%s3620_s4 + $0x3] ss:$0 sm:$0xff]  ;;  %v2210_v48 = vld [vmem:[%s3620_s4 + $0x4] ss:$0 sm:$0xff] }
  0xcd   :  { %v612_v47 = vmul.f32 %v541_v46, %v2666_v59  ;;  %v551_v51 = vsel %vm550_vm4, %v2223_v3, %v547_v40  ;;  %v555_v52 = vmul.f32 0.5, %v554_v41  ;;  %v507_v59 = vrot.slane %v506_v10, 1 }
  0xce   :  { %v613_v21 = vmul.f32 %v551_v51, %v2669_v60  ;;  %v565_v56 = vmul.f32 0.5, %v564_v37  ;;  %v574_v0 = vmul.f32 %v2761_v45, %v573_v53  ;;  %v583_v1 = vmul.f32 %v2231_v54, %v2742_v17  ;;  %v2213_v17 = vld [vmem:[%s3620_s4 + $0x5] ss:$0 sm:$0xff] }
  0xcf   :  { %v652_v62 = vmul.f32 %v2197_v39, %v612_v47  ;;  %v556_v63 = vsub.f32 1.5, %v555_v52  ;;  %v508_v4 = vadd.f32 %v507_v59, %v506_v10  ;;  %vm579_vm12 = vweird.f32 %v2761_v45 }
  0xd0   :  { %v653_v2 = vmul.f32 %v2200_v36, %v613_v21  ;;  %v566_v3 = vsub.f32 1.5, %v565_v56  ;;  %v575_v13 = vmul.f32 0.5, %v574_v0  ;;  %v584_v8 = vmul.f32 %v2231_v54, %v583_v1  ;;  %vm580_vm14 = vmor %vm578_vm8, %vm579_vm12  ;;  %v2212_v36 = vld [vmem:[%s3619_s3 + $0x5] ss:$0 sm:$0xff]  ;;  %v2215_v1 = vld [vmem:[%s3619_s3 + $0x6] ss:$0 sm:$0xff] }
  0xd1   :  { %v2784_v6 = vadd.f32 %v2198_v50, %v652_v62   ;;  %v557_v60 = vmul.f32 %v2745_v25, %v556_v63  ;;  %v522_v16 = vmul.f32 0.5, %v508_v4  ;;  %v514_v31 = vrot.slane %v513_v18, 1 }
  0xd2   :  { %v2787_v12 = vadd.f32 %v2201_v55, %v653_v2   ;;  %v567_v14 = vmul.f32 %v2748_v28, %v566_v3  ;;  %v576_v26 = vsub.f32 1.5, %v575_v13  ;;  %v585_v57 = vmul.f32 0.5, %v584_v8 }
  0xd3   :  { %v561_v20 = vsel %vm560_vm10, %v2745_v25, %v557_v60  ;;  %v530_v25 = vadd.f32 1e-05, %v522_v16  ;;  %vm589_vm13 = vweird.f32 %v2231_v54  ;;  %v2216_v60 = vld [vmem:[%s3620_s4 + $0x6] ss:$0 sm:$0xff]  ;;  %v2218_v16 = vld [vmem:[%s3619_s3 + $0x7] ss:$0 sm:$0xff] }
  0xd4   :  { %v614_v27 = vmul.f32 %v561_v20, %v2688_v33  ;;  %v571_v30 = vsel %vm570_vm11, %v2748_v28, %v567_v14  ;;  %v577_v35 = vmul.f32 %v2761_v45, %v576_v26  ;;  %v586_v38 = vsub.f32 1.5, %v585_v57  ;;  %v2209_v33 = vld [vmem:[%s3619_s3 + $0x4] ss:$0 sm:$0xff]  ;;  %vm590_vm0 = vmor %vm588_vm15, %vm589_vm13  ;;  %s2866_s3 = smov 0  }
  0xd5   :  { %v615_v61 = vmul.f32 %v571_v30, %v2691_v34  ;;  %2232 = vrsqrt.f32 %v530_v25  ;;  %v515_v28 = vadd.f32 %v514_v31, %v513_v18  ;;  %vm598_vm2 = vweird.f32 %v530_v25 }
  0xd6   :  { %v654_v39 = vmul.f32 %v2203_v49, %v614_v27  ;;  %v581_v34 = vsel %vm580_vm14, %v2761_v45, %v577_v35  ;;  %v587_v41 = vmul.f32 %v2231_v54, %v586_v38 }
  0xd7   :  { %v655_v40 = vmul.f32 %v2206_v24, %v615_v61  ;;  %v616_v46 = vmul.f32 %v581_v34, %v2699_v44  ;;  %v523_v37 = vmul.f32 0.5, %v515_v28 }
  0xd8   :  { %v694_v10 = vadd.f32 %v2204_v29, %v654_v39   ;;  %v591_v50 = vsel %vm590_vm0, %v2231_v54, %v587_v41 }
  0xd9   :  { %v695_v47 = vadd.f32 %v2207_v32, %v655_v40   ;;  %v656_v51 = vmul.f32 %v2209_v33, %v616_v46  ;;  %v617_v45 = vmul.f32 %v591_v50, %v2702_v9  ;;  %v531_v44 = vadd.f32 1e-05, %v523_v37 }
  0xdb   :  { %v2233_v52 = vpop.eup %2232  ;;  %v696_v53 = vadd.f32 %v2210_v48, %v656_v51   ;;  %v657_v21 = vmul.f32 %v2212_v36, %v617_v45  ;;  %2234 = vrsqrt.f32 %v531_v44  ;;  %vm608_vm5 = vweird.f32 %v531_v44 }
  0xdc   :  { %v593_v55 = vmul.f32 %v2233_v52, %v530_v25  ;;  %vm599_vm1 = vweird.f32 %v2233_v52 }
  0xdd   :  { %v697_v56 = vadd.f32 %v2213_v17, %v657_v21   ;;  %vm600_vm3 = vmor %vm598_vm2, %vm599_vm1 }
  0xde   :  { %v594_v59 = vmul.f32 %v2233_v52, %v593_v55 }
  0xe0   :  { %v595_v58 = vmul.f32 0.5, %v594_v59 }
  0xe1   :  { %v2235_v62 = vpop.eup %2234 }
  0xe2   :  { %v596_v63 = vsub.f32 1.5, %v595_v58  ;;  %v603_v54 = vmul.f32 %v2235_v62, %v531_v44  ;;  %vm609_vm4 = vweird.f32 %v2235_v62 }
  0xe3   :  { %vm610_vm6 = vmor %vm608_vm5, %vm609_vm4 }
  0xe4   :  { %v597_v0 = vmul.f32 %v2233_v52, %v596_v63  ;;  %v604_v9 = vmul.f32 %v2235_v62, %v603_v54 }
  0xe6   :  { %v601_v2 = vsel %vm600_vm3, %v2233_v52, %v597_v0  ;;  %v605_v3 = vmul.f32 0.5, %v604_v9 }
  0xe7   :  { %v618_v4 = vmul.f32 %v601_v2, %v2719_v42  ;;  %v2219_v42 = vld [vmem:[%s3620_s4 + $0x7] ss:$0 sm:$0xff] }
  0xe8   :  { %v606_v13 = vsub.f32 1.5, %v605_v3 }
  0xe9   :  { %v658_v8 = vmul.f32 %v2215_v1, %v618_v4 }
  0xea   :  { %v607_v49 = vmul.f32 %v2235_v62, %v606_v13 }
  0xeb   :  { %v698_v14 = vadd.f32 %v2216_v60, %v658_v8  }
  0xec   :  { %v611_v18 = vsel %vm610_vm6, %v2235_v62, %v607_v49 }
  0xed   :  { %v619_v20 = vmul.f32 %v611_v18, %v2726_v22  ;;  %v2864_v22 = vmov 0.0  }
  0xef   :  { %v659_v24 = vmul.f32 %v2218_v16, %v619_v20 }
  0xf1   :  { %v699_v26 = vadd.f32 %v2219_v42, %v659_v24  }
  0xf2 LB: > { %v3639_v11 = vld [vmem:[#allocation9_spill] sm:$0xff]  ;;  %v3640_v15 = vld [vmem:[#allocation10_spill] sm:$0xff]  ;;  %3641 = vst [vmem:[#allocation12_spill] sm:$0xff] %v2390_v14  ;;  %s2429_s4 = smov 64   ;;  %s2108_s0 = sshll.u32 %s2422_s3, 7  ;;  %v2390_v14 = vphi %v698_v14, %v1816_v14   ;;  %v2386_v26 = vphi %v699_v26, %v3648_v26   ;;  %s2422_s3 = sphi %s2866_s3, %s705_s3   ;;  %v2418_v22 = vphi %v2864_v22, %v3347_v22   ;;  %v2414_v6 = vphi %v2784_v6, %v3653_v6   ;;  %v2410_v12 = vphi %v2787_v12, %v1806_v12   ;;  %v2406_v10 = vphi %v694_v10, %v3652_v10   ;;  %v2402_v47 = vphi %v695_v47, %v3651_v47   ;;  %v2398_v53 = vphi %v696_v53, %v3650_v53   ;;  %v2394_v56 = vphi %v697_v56, %v3649_v56  }
  0xf3   : > { %967 = vrot.lane.b32.xlu0 %v2418_v22, %s2429_s4  ;;  %s717_s14 = scalar_lea.vmem [#allocation3], %s2108_s0  ;;  %s2921_s15 = scalar_lea.vmem [#allocation5], %s2108_s0 }
  0xf4   : > { %v732_v57 = vld [vmem:[%s717_s14 + $0x70] sm:$0xff]  ;;  %v730_v27 = vld [vmem:[%s717_s14 + $0x60] sm:$0xff]  ;;  %v733_v30 = vld [vmem:[%s717_s14 + $0x78] sm:$0xff]  ;;  %s2063_s16 = sshll.u32 %s2422_s3, 1  ;;  %s757_s2 = scalar_lea.vmem %s3625_s9, %s2422_s3 }
  0xf5   : > { %793 = vmatpush.msra.mxu0 %v732_v57  ;;  %v728_v29 = vld [vmem:[%s717_s14 + $0x50] sm:$0xff]  ;;  %834 = vmatpush.msra.mxu1 %v733_v30  ;;  %v731_v25 = vld [vmem:[%s717_s14 + $0x68] sm:$0xff]  ;;  %v726_v31 = vld [vmem:[%s717_s14 + $0x40] sm:$0xff]  ;;  %s753_s19 = scalar_lea.vmem %s3622_s6, %s2063_s16  ;;  %s755_s20 = scalar_lea.vmem %s3624_s8, %s2063_s16 }
  0xf6   : > { %v729_v61 = vld [vmem:[%s717_s14 + $0x58] sm:$0xff]  ;;  %v724_v32 = vld [vmem:[%s717_s14 + $0x30] sm:$0xff]  ;;  %v727_v35 = vld [vmem:[%s717_s14 + $0x48] sm:$0xff]  ;;  %s759_s25 = scalar_lea.vmem %s3626_s10, %s2422_s3  ;;  %p1744_p0 = scmp.gt.s32.totalorder %s2422_s3, 0 }
  0xf7   : > { %794 = vmatpush.msra.mxu0 %v730_v27  ;;  %835 = vmatpush.msra.mxu1 %v731_v25  ;;  %v722_v38 = vld [vmem:[%s717_s14 + $0x20] sm:$0xff]  ;;  %v725_v39 = vld [vmem:[%s717_s14 + $0x38] sm:$0xff]  ;;  %v720_v33 = vld [vmem:[%s717_s14 + $0x10] sm:$0xff]  ;;  %s705_s3 = sadd.s32 1, %s2422_s3  }
  0xf8   : > { %v723_v28 = vld [vmem:[%s717_s14 + $0x28] sm:$0xff]  ;;  %v718_v40 = vld [vmem:[%s717_s14] sm:$0xff]  ;;  %v721_v34 = vld [vmem:[%s717_s14 + $0x18] sm:$0xff]  ;;  %s1745_s26 = scalar_select %p1744_p0, 1.0, 0.0 }
  0xf9   : > { %795 = vmatpush.msra.mxu0 %v728_v29  ;;  %836 = vmatpush.msra.mxu1 %v729_v61  ;;  %v719_v41 = vld [vmem:[%s717_s14 + $0x8] sm:$0xff]  ;;  %v2924_v46 = vld [vmem:[%s2921_s15 + $0x70] sm:$0xff]  ;;  %v2927_v48 = vld [vmem:[%s2921_s15 + $0x78] sm:$0xff]  ;;  %p702_p1 = scmp.ge.s32.totalorder %s705_s3, 8  }
  0xfa   : > { %v2930_v36 = vld [vmem:[%s2921_s15 + $0x60] sm:$0xff]  ;;  %979 = vmatpush.msra.mxu2 %v2924_v46  ;;  %999 = vmatpush.msra.mxu3 %v2927_v48  ;;  %v2935_v37 = vld [vmem:[%s2921_s15 + $0x68] sm:$0xff]  ;;  %v2938_v50 = vld [vmem:[%s2921_s15 + $0x50] sm:$0xff] }
  0xfb   : > { %796 = vmatpush.msra.mxu0 %v726_v31  ;;  %837 = vmatpush.msra.mxu1 %v727_v35  ;;  %v2941_v51 = vld [vmem:[%s2921_s15 + $0x58] sm:$0xff]  ;;  %v2948_v45 = vld [vmem:[%s2921_s15 + $0x40] sm:$0xff]  ;;  %v2951_v17 = vld [vmem:[%s2921_s15 + $0x48] sm:$0xff] }
  0xfc   : > { %980 = vmatpush.msra.mxu2 %v2930_v36  ;;  %1000 = vmatpush.msra.mxu3 %v2935_v37  ;;  %v2960_v44 = vld [vmem:[%s2921_s15 + $0x30] sm:$0xff]  ;;  %v2963_v52 = vld [vmem:[%s2921_s15 + $0x38] sm:$0xff]  ;;  %v2971_v21 = vld [vmem:[%s2921_s15 + $0x20] sm:$0xff] }
  0xfd   : > { %797 = vmatpush.msra.mxu0 %v724_v32  ;;  %838 = vmatpush.msra.mxu1 %v725_v39  ;;  %v2974_v55 = vld [vmem:[%s2921_s15 + $0x28] sm:$0xff]  ;;  %v2980_v59 = vld [vmem:[%s2921_s15 + $0x10] sm:$0xff]  ;;  %v2983_v58 = vld [vmem:[%s2921_s15 + $0x18] sm:$0xff] }
  0xfe   : > { %981 = vmatpush.msra.mxu2 %v2938_v50  ;;  %1001 = vmatpush.msra.mxu3 %v2941_v51  ;;  %v2990_v62 = vld [vmem:[%s2921_s15] sm:$0xff]  ;;  %v2993_v63 = vld [vmem:[%s2921_s15 + $0x8] sm:$0xff] }
  0xff   : > { %798 = vmatpush.msra.mxu0 %v722_v38  ;;  %839 = vmatpush.msra.mxu1 %v723_v28  ;;  %v754_v1 = vld [vmem:[%s753_s19] sm:$0x3] }
 0x100   : > { %982 = vmatpush.msra.mxu2 %v2948_v45  ;;  %1002 = vmatpush.msra.mxu3 %v2951_v17  ;;  %v3079_v2 = vperm.slane %v754_v1, 0  ;;  %v3082_v60 = vperm.slane %v754_v1, 1 }
 0x101   : > { %799 = vmatpush.msra.mxu0 %v720_v33  ;;  %840 = vmatpush.msra.mxu1 %v721_v34 }
 0x102   : > { %983 = vmatpush.msra.mxu2 %v2960_v44  ;;  %1003 = vmatpush.msra.mxu3 %v2963_v52 }
 0x103   : > { %800 = vmatpush.msra.mxu0 %v718_v40  ;;  %841 = vmatpush.msra.mxu1 %v719_v41 }
 0x104   : > { %2064 = vmatmul.msk.f32.vlgmr.msra.gmra.mxu0 %vm371_vm7, %v2414_v6  ;;  %2072 = vmatmul.msk.f32.vlgmr.msra.gmra.mxu1 %vm371_vm7, %v2414_v6 }
 0x105   : > { %1291 = vmatpush.msrb.mxu0 %v2924_v46  ;;  %1311 = vmatpush.msrb.mxu1 %v2927_v48 }
 0x106   : > { %984 = vmatpush.msra.mxu2 %v2971_v21  ;;  %1004 = vmatpush.msra.mxu3 %v2974_v55 }
 0x107   : > { %1292 = vmatpush.msrb.mxu0 %v2930_v36  ;;  %1312 = vmatpush.msrb.mxu1 %v2935_v37 }
 0x108   : > { %985 = vmatpush.msra.mxu2 %v2980_v59  ;;  %1005 = vmatpush.msra.mxu3 %v2983_v58 }
 0x109   : > { %1313 = vmatpush.msrb.mxu1 %v2941_v51  ;;  %1293 = vmatpush.msrb.mxu0 %v2938_v50 }
 0x10a   : > { %986 = vmatpush.msra.mxu2 %v2990_v62  ;;  %1006 = vmatpush.msra.mxu3 %v2993_v63 }
 0x10b   : > { %1294 = vmatpush.msrb.mxu0 %v2948_v45  ;;  %1314 = vmatpush.msrb.mxu1 %v2951_v17 }
 0x10c   : > { %2065 = vmatmul.msk.f32.gmra.mxu0 %vm371_vm7, %v2410_v12  ;;  %2073 = vmatmul.msk.f32.gmra.mxu1 %vm371_vm7, %v2410_v12 }
 0x10d   : > { %1295 = vmatpush.msrb.mxu0 %v2960_v44  ;;  %1315 = vmatpush.msrb.mxu1 %v2963_v52 }
 0x10e   : > { %1057 = vmatpush.msrb.mxu2 %v2924_v46  ;;  %1077 = vmatpush.msrb.mxu3 %v2927_v48 }
 0x10f   : > { %1316 = vmatpush.msrb.mxu1 %v2974_v55  ;;  %1296 = vmatpush.msrb.mxu0 %v2971_v21 }
 0x110   : > { %1058 = vmatpush.msrb.mxu2 %v2930_v36  ;;  %1078 = vmatpush.msrb.mxu3 %v2935_v37 }
 0x111   : > { %1317 = vmatpush.msrb.mxu1 %v2983_v58  ;;  %1297 = vmatpush.msrb.mxu0 %v2980_v59 }
 0x112   : > { %1059 = vmatpush.msrb.mxu2 %v2938_v50  ;;  %1079 = vmatpush.msrb.mxu3 %v2941_v51 }
 0x113   : > { %1318 = vmatpush.msrb.mxu1 %v2993_v63  ;;  %1298 = vmatpush.msrb.mxu0 %v2990_v62 }
 0x114   : > { %2066 = vmatmul.msk.f32.gmra.mxu0 %vm371_vm7, %v2406_v10  ;;  %2074 = vmatmul.msk.f32.gmra.mxu1 %vm371_vm7, %v2406_v10 }
 0x115   : > { %1060 = vmatpush.msrb.mxu2 %v2948_v45  ;;  %1080 = vmatpush.msrb.mxu3 %v2951_v17 }
 0x116   : > { %1447 = vmatpush.msra.mxu0 %v2924_v46  ;;  %1467 = vmatpush.msra.mxu1 %v2927_v48 }
 0x117   : > { %1061 = vmatpush.msrb.mxu2 %v2960_v44  ;;  %1081 = vmatpush.msrb.mxu3 %v2963_v52 }
 0x118   : > { %1448 = vmatpush.msra.mxu0 %v2930_v36  ;;  %1468 = vmatpush.msra.mxu1 %v2935_v37 }
 0x119   : > { %1062 = vmatpush.msrb.mxu2 %v2971_v21  ;;  %1082 = vmatpush.msrb.mxu3 %v2974_v55 }
 0x11a   : > { %1449 = vmatpush.msra.mxu0 %v2938_v50  ;;  %1469 = vmatpush.msra.mxu1 %v2941_v51 }
 0x11b   : > { %1063 = vmatpush.msrb.mxu2 %v2980_v59  ;;  %1083 = vmatpush.msrb.mxu3 %v2983_v58 }
 0x11c   : > { %2067 = vmatmul.msk.f32.gmra.mxu0 %vm371_vm7, %v2402_v47  ;;  %2075 = vmatmul.msk.f32.gmra.mxu1 %vm371_vm7, %v2402_v47 }
 0x11d   : > { %1064 = vmatpush.msrb.mxu2 %v2990_v62  ;;  %1084 = vmatpush.msrb.mxu3 %v2993_v63 }
 0x11e   : > { %1450 = vmatpush.msra.mxu0 %v2948_v45  ;;  %1470 = vmatpush.msra.mxu1 %v2951_v17 }
 0x120   : > { %1451 = vmatpush.msra.mxu0 %v2960_v44  ;;  %1471 = vmatpush.msra.mxu1 %v2963_v52 }
 0x122   : > { %1452 = vmatpush.msra.mxu0 %v2971_v21  ;;  %1472 = vmatpush.msra.mxu1 %v2974_v55 }
 0x124   : > { %2068 = vmatmul.msk.f32.gmra.mxu0 %vm371_vm7, %v2398_v53  ;;  %2076 = vmatmul.msk.f32.gmra.mxu1 %vm371_vm7, %v2398_v53 }
 0x125   : > { %1453 = vmatpush.msra.mxu0 %v2980_v59  ;;  %1473 = vmatpush.msra.mxu1 %v2983_v58 }
 0x127   : > { %1454 = vmatpush.msra.mxu0 %v2990_v62  ;;  %1474 = vmatpush.msra.mxu1 %v2993_v63 }
 0x12c   : > { %2069 = vmatmul.msk.f32.gmra.mxu0 %vm371_vm7, %v2394_v56  ;;  %2077 = vmatmul.msk.f32.gmra.mxu1 %vm371_vm7, %v2394_v56 }
 0x134   : > { %2070 = vmatmul.msk.f32.gmra.mxu0 %vm371_vm7, %v2390_v14  ;;  %2078 = vmatmul.msk.f32.gmra.mxu1 %vm371_vm7, %v2390_v14 }
 0x13c   : > { %2071 = vmatmul.msk.f32.gmra.mxu0 %vm371_vm7, %v2386_v26  ;;  %2079 = vmatmul.msk.f32.gmra.mxu1 %vm371_vm7, %v2386_v26 }
 0x165   : > { %v968_v54 = vpop.permute.xlu0 %967 }
 0x166   : > { %2080 = vmatmul.msk.f32.vlgmr.msra.gmra.mxu2 %vm371_vm7, %v968_v54  ;;  %2081 = vmatmul.msk.f32.vlgmr.msra.gmra.mxu3 %vm371_vm7, %v968_v54 }
 0x167   : > { %1135 = vmatpush.msra.mxu2 %v2924_v46  ;;  %1155 = vmatpush.msra.mxu3 %v2927_v48 }
 0x169   : > { %1136 = vmatpush.msra.mxu2 %v2930_v36  ;;  %1156 = vmatpush.msra.mxu3 %v2935_v37 }
 0x16b   : > { %1137 = vmatpush.msra.mxu2 %v2938_v50  ;;  %1157 = vmatpush.msra.mxu3 %v2941_v51 }
 0x16d   : > { %1138 = vmatpush.msra.mxu2 %v2948_v45  ;;  %1158 = vmatpush.msra.mxu3 %v2951_v17 }
 0x16f   : > { %1139 = vmatpush.msra.mxu2 %v2960_v44  ;;  %1159 = vmatpush.msra.mxu3 %v2963_v52 }
 0x171   : > { %1140 = vmatpush.msra.mxu2 %v2971_v21  ;;  %1160 = vmatpush.msra.mxu3 %v2974_v55 }
 0x173   : > { %1141 = vmatpush.msra.mxu2 %v2980_v59  ;;  %1161 = vmatpush.msra.mxu3 %v2983_v58 }
 0x175   : > { %1142 = vmatpush.msra.mxu2 %v2990_v62  ;;  %1162 = vmatpush.msra.mxu3 %v2993_v63 }
 0x181   : > { %v3070_v0 = vpop.f32.mrf.mxu0  ;;  %v3077_v9 = vpop.f32.mrf.mxu1 }
 0x189   : > { %v805_v3 = vpop.f32.mrf.mxu0  ;;  %v846_v13 = vpop.f32.mrf.mxu1 }
 0x18a   : > { %v874_v4 = vadd.f32 %v3079_v2, %v805_v3  ;;  %v875_v8 = vadd.f32 %v3082_v60, %v846_v13 }
 0x191   : > { %v808_v49 = vpop.f32.mrf.mxu0  ;;  %v849_v18 = vpop.f32.mrf.mxu1 }
 0x192   : > { %v876_v16 = vadd.f32 %v3079_v2, %v808_v49  ;;  %v877_v20 = vadd.f32 %v3082_v60, %v849_v18 }
 0x194   : > { %v905_v13 = vmul.f32 %v3639_v11, %v876_v16  ;;  %v934_v49 = vmul.f32 %v876_v16, %v3640_v15 }
 0x199   : > { %v811_v42 = vpop.f32.mrf.mxu0  ;;  %v852_v57 = vpop.f32.mrf.mxu1 }
 0x19a   : > { %v878_v24 = vadd.f32 %v3079_v2, %v811_v42  ;;  %v879_v27 = vadd.f32 %v3082_v60, %v852_v57  ;;  %v906_v42 = vmul.f32 %v2547_v19, %v877_v20  ;;  %v935_v57 = vmul.f32 %v877_v20, %v2559_v23 }
 0x19b   : > { %v896_v20 = vmul.f32 %v3639_v11, %v874_v4 }
 0x19c   : > { %v915_v31 = vmul.f32 %v2547_v19, %v879_v27  ;;  %v926_v61 = vmul.f32 %v879_v27, %v2559_v23  ;;  %v914_v35 = vmul.f32 %v3639_v11, %v878_v24  ;;  %v925_v38 = vmul.f32 %v878_v24, %v3640_v15 }
 0x1a1   : > { %v814_v29 = vpop.f32.mrf.mxu0  ;;  %v855_v25 = vpop.f32.mrf.mxu1 }
 0x1a2   : > { %v880_v30 = vadd.f32 %v3079_v2, %v814_v29  ;;  %v881_v32 = vadd.f32 %v3082_v60, %v855_v25 }
 0x1a4   : > { %v916_v39 = vmul.f32 %v880_v30, %v3640_v15  ;;  %v923_v33 = vmul.f32 %v3639_v11, %v880_v30  ;;  %v917_v28 = vmul.f32 %v881_v32, %v2559_v23  ;;  %v924_v40 = vmul.f32 %v2547_v19, %v881_v32 }
 0x1a6   : > { %v3099_v34 = vadd.f32 %v917_v28, %v915_v31  ;;  %v3101_v41 = vadd.f32 %v926_v61, %v924_v40  ;;  %v3103_v1 = vadd.f32 %v916_v39, %v914_v35  ;;  %v3105_v3 = vadd.f32 %v925_v38, %v923_v33 }
 0x1a7   : > { %v943_v39 = vmul.f32 %v874_v4, %v3640_v15  ;;  %v897_v28 = vmul.f32 %v2547_v19, %v875_v8 }
 0x1a9   : > { %v817_v54 = vpop.f32.mrf.mxu0  ;;  %v858_v24 = vpop.f32.mrf.mxu1 }
 0x1aa   : > { %v882_v18 = vadd.f32 %v3079_v2, %v817_v54  ;;  %v883_v30 = vadd.f32 %v3082_v60, %v858_v24  ;;  %v944_v54 = vmul.f32 %v875_v8, %v2559_v23  ;;  %v873_v8 = vadd.f32 %v3082_v60, %v3077_v9 }
 0x1ac   : > { %v907_v27 = vmul.f32 %v882_v18, %v3640_v15  ;;  %v932_v29 = vmul.f32 %v3639_v11, %v882_v18  ;;  %v908_v25 = vmul.f32 %v883_v30, %v2559_v23  ;;  %v933_v31 = vmul.f32 %v2547_v19, %v883_v30 }
 0x1ae   : > { %v3117_v61 = vadd.f32 %v907_v27, %v905_v13  ;;  %v3119_v16 = vadd.f32 %v934_v49, %v932_v29  ;;  %v3121_v32 = vadd.f32 %v908_v25, %v906_v42  ;;  %v3123_v35 = vadd.f32 %v935_v57, %v933_v31 }
 0x1af   : > { %v872_v27 = vadd.f32 %v3079_v2, %v3070_v0 }
 0x1b1   : > { %v820_v38 = vpop.f32.mrf.mxu0  ;;  %v861_v40 = vpop.f32.mrf.mxu1 }
 0x1b2   : > { %v884_v33 = vadd.f32 %v3079_v2, %v820_v38  ;;  %v885_v18 = vadd.f32 %v3082_v60, %v861_v40 }
 0x1b4   : > { %v898_v13 = vmul.f32 %v884_v33, %v3640_v15  ;;  %v941_v49 = vmul.f32 %v3639_v11, %v884_v33  ;;  %v899_v42 = vmul.f32 %v885_v18, %v2559_v23  ;;  %v942_v24 = vmul.f32 %v2547_v19, %v885_v18 }
 0x1b5   : > { %v953_v33 = vmul.f32 %v873_v8, %v2559_v23 }
 0x1b6   : > { %v3135_v57 = vadd.f32 %v898_v13, %v896_v20  ;;  %v3137_v4 = vadd.f32 %v943_v39, %v941_v49  ;;  %v3143_v29 = vadd.f32 %v899_v42, %v897_v28  ;;  %v3145_v30 = vadd.f32 %v944_v54, %v942_v24 }
 0x1b7   : > { %v952_v20 = vmul.f32 %v872_v27, %v3640_v15  ;;  %v888_v49 = vmul.f32 %v3639_v11, %v872_v27 }
 0x1b9   : > { %v823_v25 = vpop.f32.mrf.mxu0  ;;  %v864_v38 = vpop.f32.mrf.mxu1 }
 0x1ba   : > { %v886_v31 = vadd.f32 %v3079_v2, %v823_v25  ;;  %v887_v40 = vadd.f32 %v3082_v60, %v864_v38  ;;  %v756_v2 = vld [vmem:[%s755_s20] sm:$0x3] }
 0x1bb   : > { %v3163_v54 = vperm.slane %v756_v2, 0  ;;  %v3167_v14 = vperm.slane %v756_v2, 1 }
 0x1bc   : > { %v950_v39 = vmul.f32 %v3639_v11, %v886_v31  ;;  %v951_v0 = vmul.f32 %v2547_v19, %v887_v40  ;;  %v890_v28 = vmul.f32 %v886_v31, %v3640_v15 }
 0x1be   : > { %v3153_v13 = vadd.f32 %v952_v20, %v950_v39  ;;  %v3155_v9 = vadd.f32 %v953_v33, %v951_v0  ;;  %v892_v60 = vadd.f32 %v890_v28, %v888_v49  ;;  %v889_v28 = vmul.f32 %v2547_v19, %v873_v8  ;;  %v1876_v19 = vld [vmem:[%s3627_s11 + $0xa8] sm:$0xff] (%p702_p1) }
 0x1bf   : > { %v891_v49 = vmul.f32 %v887_v40, %v2559_v23  ;;  %v1884_v23 = vld [vmem:[%s3627_s11 + $0xe8] sm:$0xff] (%p702_p1) }
 0x1e9   : > { %v988_v18 = vpop.f32.mrf.mxu2  ;;  %v1008_v27 = vpop.f32.mrf.mxu3 }
 0x1ea   : > { %v989_v42 = vadd.f32 %v988_v18, %v3163_v54 }
 0x1ec   : > { %v1011_v24 = vadd.f32 %v989_v42, %v892_v60  ;;  %v1009_v42 = vadd.f32 %v1008_v27, %v3167_v14 }
 0x1ee   : > { %v2082_v25 = vmul.f32 -1.442695, %v1011_v24 }
 0x1f0   : > { %2238 = vpow2.f32 %v2082_v25 }
 0x1f6   : > { %v2239_v38 = vpop.eup %2238 }
 0x1f7   : > { %v1015_v20 = vadd.f32 1.0, %v2239_v38  ;;  %v893_v38 = vadd.f32 %v891_v49, %v889_v28 }
 0x1f9   : > { %2240 = vrcp.f32 %v1015_v20  ;;  %v1027_v43 = vand.u32 2147483648, %v1015_v20  ;;  %v1025_v15 = vand.u32 2147483647, %v1015_v20  ;;  %vm1021_vm9 = vweird.f32 %v1015_v20 }
 0x1fb   : > { %v1028_v60 = vor.u32 1.1754944e-38, %v1027_v43  ;;  %vm1026_vm11 = vcmp.eq.f32.partialorder %v1025_v15, 8.507059e+37 }
 0x1ff   : > { %v2241_v33 = vpop.eup %2240 }
 0x200   : > { %v1017_v39 = vmul.f32 %v2241_v33, %v1015_v20  ;;  %vm1022_vm8 = vweird.f32 %v2241_v33 }
 0x201   : > { %vm1023_vm10 = vmor %vm1021_vm9, %vm1022_vm8 }
 0x202   : > { %v1018_v0 = vsub.f32 1.0, %v1017_v39 }
 0x204   : > { %v1019_v31 = vmul.f32 %v2241_v33, %v1018_v0 }
 0x206   : > { %v1020_v18 = vadd.f32 %v2241_v33, %v1019_v31 }
 0x208   : > { %v1024_v24 = vsel %vm1023_vm10, %v2241_v33, %v1020_v18 }
 0x209   : > { %v1029_v25 = vsel %vm1026_vm11, %v1028_v60, %v1024_v24 }
 0x20a   : > { %v1031_v2 = vmul.f32 %v1029_v25, %v1009_v42  ;;  %v1034_v11 = vsub.f32 1.0, %v1029_v25  ;;  %v1040_v40 = vmul.f32 %v2418_v22, %v1029_v25 }
 0x20c   : > { %v1032_v39 = vadd.f32 %v1031_v2, %v893_v38 }
 0x20e   : > { %2242 = vtanh.f32 %v1032_v39 }
 0x214   : > { %v2243_v0 = vpop.eup %2242 }
 0x215   : > { %1036 = vrot.lane.b32.xlu0 %v2243_v0, %s2429_s4 }
 0x287   : > { %v1037_v8 = vpop.permute.xlu0 %1036 }
 0x288   : > { %v1039_v31 = vmul.f32 %v1037_v8, %v1034_v11 }
 0x28a   : > { %v3174_v20 = vadd.f32 %v1040_v40, %v1039_v31 }
 0x28c   : > { %1045 = vrot.lane.b32.xlu1 %v3174_v20, %s2429_s4 }
 0x2fe   : > { %v1046_v43 = vpop.permute.xlu1 %1045 }
 0x2ff   : > { %2083 = vmatmul.msk.f32.vlgmr.msrb.gmra.mxu2 %vm371_vm7, %v1046_v43  ;;  %2084 = vmatmul.msk.f32.vlgmr.msrb.gmra.mxu3 %vm371_vm7, %v1046_v43 }
 0x300   : > { %1213 = vmatpush.msrb.mxu2 %v2924_v46  ;;  %1233 = vmatpush.msrb.mxu3 %v2927_v48 }
 0x302   : > { %1214 = vmatpush.msrb.mxu2 %v2930_v36  ;;  %1234 = vmatpush.msrb.mxu3 %v2935_v37 }
 0x304   : > { %1215 = vmatpush.msrb.mxu2 %v2938_v50  ;;  %1235 = vmatpush.msrb.mxu3 %v2941_v51 }
 0x306   : > { %1216 = vmatpush.msrb.mxu2 %v2948_v45  ;;  %1236 = vmatpush.msrb.mxu3 %v2951_v17 }
 0x308   : > { %1217 = vmatpush.msrb.mxu2 %v2960_v44  ;;  %1237 = vmatpush.msrb.mxu3 %v2963_v52 }
 0x30a   : > { %1218 = vmatpush.msrb.mxu2 %v2971_v21  ;;  %1238 = vmatpush.msrb.mxu3 %v2974_v55 }
 0x30c   : > { %1219 = vmatpush.msrb.mxu2 %v2980_v59  ;;  %1239 = vmatpush.msrb.mxu3 %v2983_v58 }
 0x30e   : > { %1220 = vmatpush.msrb.mxu2 %v2990_v62  ;;  %1240 = vmatpush.msrb.mxu3 %v2993_v63 }
 0x382   : > { %v1066_v11 = vpop.f32.mrf.mxu2  ;;  %v1086_v38 = vpop.f32.mrf.mxu3 }
 0x383   : > { %v1067_v15 = vadd.f32 %v1066_v11, %v3163_v54  ;;  %v1087_v0 = vadd.f32 %v1086_v38, %v3167_v14 }
 0x385   : > { %v1089_v22 = vadd.f32 %v1067_v15, %v3135_v57 }
 0x387   : > { %v2085_v33 = vmul.f32 -1.442695, %v1089_v22 }
 0x389   : > { %2244 = vpow2.f32 %v2085_v33 }
 0x38f   : > { %v2245_v27 = vpop.eup %2244 }
 0x390   : > { %v1093_v28 = vadd.f32 1.0, %v2245_v27 }
 0x392   : > { %2246 = vrcp.f32 %v1093_v28  ;;  %v1105_v42 = vand.u32 2147483648, %v1093_v28  ;;  %v1103_v25 = vand.u32 2147483647, %v1093_v28  ;;  %vm1099_vm13 = vweird.f32 %v1093_v28 }
 0x394   : > { %v1106_v39 = vor.u32 1.1754944e-38, %v1105_v42  ;;  %vm1104_vm15 = vcmp.eq.f32.partialorder %v1103_v25, 8.507059e+37 }
 0x398   : > { %v2247_v49 = vpop.eup %2246 }
 0x399   : > { %v1095_v18 = vmul.f32 %v2247_v49, %v1093_v28  ;;  %vm1100_vm12 = vweird.f32 %v2247_v49 }
 0x39a   : > { %vm1101_vm14 = vmor %vm1099_vm13, %vm1100_vm12 }
 0x39b   : > { %v1096_v60 = vsub.f32 1.0, %v1095_v18 }
 0x39d   : > { %v1097_v24 = vmul.f32 %v2247_v49, %v1096_v60 }
 0x39f   : > { %v1098_v2 = vadd.f32 %v2247_v49, %v1097_v24 }
 0x3a1   : > { %v1102_v57 = vsel %vm1101_vm14, %v2247_v49, %v1098_v2 }
 0x3a2   : > { %v1107_v8 = vsel %vm1104_vm15, %v1106_v39, %v1102_v57 }
 0x3a3   : > { %v1109_v40 = vmul.f32 %v1107_v8, %v1087_v0  ;;  %v1112_v11 = vsub.f32 1.0, %v1107_v8  ;;  %v1118_v22 = vmul.f32 %v1107_v8, %v3174_v20 }
 0x3a5   : > { %v1110_v31 = vadd.f32 %v1109_v40, %v3143_v29 }
 0x3a7   : > { %2248 = vtanh.f32 %v1110_v31 }
 0x3ad   : > { %v2249_v43 = vpop.eup %2248 }
 0x3ae   : > { %1114 = vrot.lane.b32.xlu1 %v2249_v43, %s2429_s4 }
 0x420   : > { %v1115_v15 = vpop.permute.xlu1 %1114 }
 0x421   : > { %v1117_v33 = vmul.f32 %v1115_v15, %v1112_v11 }
 0x423   : > { %v3202_v27 = vadd.f32 %v1118_v22, %v1117_v33 }
 0x425   : > { %1123 = vrot.lane.b32.xlu2 %v3202_v27, %s2429_s4 }
 0x47f   : > { %v1124_v28 = vpop.permute.xlu2 %1123 }
 0x480   : > { %2086 = vmatmul.msk.f32.vlgmr.msra.gmra.mxu2 %vm371_vm7, %v1124_v28  ;;  %2087 = vmatmul.msk.f32.vlgmr.msra.gmra.mxu3 %vm371_vm7, %v1124_v28 }
 0x481   : > { %1369 = vmatpush.msra.mxu2 %v2924_v46  ;;  %1389 = vmatpush.msra.mxu3 %v2927_v48 }
 0x483   : > { %1370 = vmatpush.msra.mxu2 %v2930_v36  ;;  %1390 = vmatpush.msra.mxu3 %v2935_v37 }
 0x485   : > { %1371 = vmatpush.msra.mxu2 %v2938_v50  ;;  %1391 = vmatpush.msra.mxu3 %v2941_v51 }
 0x487   : > { %1372 = vmatpush.msra.mxu2 %v2948_v45  ;;  %1392 = vmatpush.msra.mxu3 %v2951_v17 }
 0x489   : > { %1373 = vmatpush.msra.mxu2 %v2960_v44  ;;  %1393 = vmatpush.msra.mxu3 %v2963_v52 }
 0x48b   : > { %1374 = vmatpush.msra.mxu2 %v2971_v21  ;;  %1394 = vmatpush.msra.mxu3 %v2974_v55 }
 0x48d   : > { %1375 = vmatpush.msra.mxu2 %v2980_v59  ;;  %1395 = vmatpush.msra.mxu3 %v2983_v58 }
 0x48f   : > { %1376 = vmatpush.msra.mxu2 %v2990_v62  ;;  %1396 = vmatpush.msra.mxu3 %v2993_v63 }
 0x503   : > { %v1144_v29 = vpop.f32.mrf.mxu2  ;;  %v1164_v8 = vpop.f32.mrf.mxu3 }
 0x504   : > { %v1145_v49 = vadd.f32 %v1144_v29, %v3163_v54  ;;  %v1165_v43 = vadd.f32 %v1164_v8, %v3167_v14 }
 0x506   : > { %v1167_v18 = vadd.f32 %v1145_v49, %v3117_v61 }
 0x508   : > { %v2088_v60 = vmul.f32 -1.442695, %v1167_v18 }
 0x50a   : > { %2250 = vpow2.f32 %v2088_v60 }
 0x510   : > { %v2251_v42 = vpop.eup %2250 }
 0x511   : > { %v1171_v24 = vadd.f32 1.0, %v2251_v42 }
 0x513   : > { %2252 = vrcp.f32 %v1171_v24  ;;  %v1183_v39 = vand.u32 2147483648, %v1171_v24  ;;  %v1181_v57 = vand.u32 2147483647, %v1171_v24  ;;  %vm1177_vm1 = vweird.f32 %v1171_v24 }
 0x515   : > { %v1184_v31 = vor.u32 1.1754944e-38, %v1183_v39  ;;  %vm1182_vm3 = vcmp.eq.f32.partialorder %v1181_v57, 8.507059e+37 }
 0x519   : > { %v2253_v25 = vpop.eup %2252 }
 0x51a   : > { %v1173_v38 = vmul.f32 %v2253_v25, %v1171_v24  ;;  %vm1178_vm0 = vweird.f32 %v2253_v25 }
 0x51b   : > { %vm1179_vm2 = vmor %vm1177_vm1, %vm1178_vm0 }
 0x51c   : > { %v1174_v2 = vsub.f32 1.0, %v1173_v38 }
 0x51e   : > { %v1175_v0 = vmul.f32 %v2253_v25, %v1174_v2 }
 0x520   : > { %v1176_v40 = vadd.f32 %v2253_v25, %v1175_v0 }
 0x522   : > { %v1180_v61 = vsel %vm1179_vm2, %v2253_v25, %v1176_v40 }
 0x523   : > { %v1185_v11 = vsel %vm1182_vm3, %v1184_v31, %v1180_v61 }
 0x524   : > { %v1187_v15 = vmul.f32 %v1185_v11, %v1165_v43  ;;  %v1190_v28 = vsub.f32 1.0, %v1185_v11  ;;  %v1196_v49 = vmul.f32 %v1185_v11, %v3202_v27 }
 0x526   : > { %v1188_v22 = vadd.f32 %v1187_v15, %v3121_v32 }
 0x528   : > { %2254 = vtanh.f32 %v1188_v22 }
 0x52e   : > { %v2255_v33 = vpop.eup %2254 }
 0x52f   : > { %1192 = vrot.lane.b32.xlu2 %v2255_v33, %s2429_s4 }
 0x589   : > { %v1193_v29 = vpop.permute.xlu2 %1192 }
 0x58a   : > { %v1195_v18 = vmul.f32 %v1193_v29, %v1190_v28 }
 0x58c   : > { %v3230_v60 = vadd.f32 %v1196_v49, %v1195_v18 }
 0x58e   : > { %1201 = vrot.lane.b32.xlu0 %v3230_v60, %s2429_s4 }
 0x600   : > { %v1202_v42 = vpop.permute.xlu0 %1201 }
 0x601   : > { %2089 = vmatmul.msk.f32.vlgmr.msrb.gmra.mxu2 %vm371_vm7, %v1202_v42  ;;  %2090 = vmatmul.msk.f32.vlgmr.msrb.gmra.mxu3 %vm371_vm7, %v1202_v42 }
 0x602   : > { %1525 = vmatpush.msrb.mxu2 %v2924_v46  ;;  %1545 = vmatpush.msrb.mxu3 %v2927_v48 }
 0x604   : > { %1526 = vmatpush.msrb.mxu2 %v2930_v36  ;;  %1546 = vmatpush.msrb.mxu3 %v2935_v37 }
 0x606   : > { %1527 = vmatpush.msrb.mxu2 %v2938_v50  ;;  %1547 = vmatpush.msrb.mxu3 %v2941_v51 }
 0x608   : > { %1528 = vmatpush.msrb.mxu2 %v2948_v45  ;;  %1548 = vmatpush.msrb.mxu3 %v2951_v17 }
 0x60a   : > { %1529 = vmatpush.msrb.mxu2 %v2960_v44  ;;  %1549 = vmatpush.msrb.mxu3 %v2963_v52 }
 0x60c   : > { %1530 = vmatpush.msrb.mxu2 %v2971_v21  ;;  %1550 = vmatpush.msrb.mxu3 %v2974_v55 }
 0x60e   : > { %1531 = vmatpush.msrb.mxu2 %v2980_v59  ;;  %1551 = vmatpush.msrb.mxu3 %v2983_v58 }
 0x610   : > { %1532 = vmatpush.msrb.mxu2 %v2990_v62  ;;  %1552 = vmatpush.msrb.mxu3 %v2993_v63 }
 0x684   : > { %v1222_v46 = vpop.f32.mrf.mxu2  ;;  %v1242_v59 = vpop.f32.mrf.mxu3 }
 0x685   : > { %v1223_v48 = vadd.f32 %v1222_v46, %v3163_v54  ;;  %v1243_v63 = vadd.f32 %v1242_v59, %v3167_v14 }
 0x687   : > { %v1245_v36 = vadd.f32 %v1223_v48, %v3103_v1 }
 0x689   : > { %v2091_v37 = vmul.f32 -1.442695, %v1245_v36 }
 0x68b   : > { %2256 = vpow2.f32 %v2091_v37 }
 0x691   : > { %v2257_v50 = vpop.eup %2256 }
 0x692   : > { %v1249_v51 = vadd.f32 1.0, %v2257_v50 }
 0x694   : > { %2258 = vrcp.f32 %v1249_v51  ;;  %v1261_v52 = vand.u32 2147483648, %v1249_v51  ;;  %v1259_v55 = vand.u32 2147483647, %v1249_v51  ;;  %vm1255_vm5 = vweird.f32 %v1249_v51 }
 0x696   : > { %v1262_v62 = vor.u32 1.1754944e-38, %v1261_v52  ;;  %vm1260_vm8 = vcmp.eq.f32.partialorder %v1259_v55, 8.507059e+37 }
 0x69a   : > { %v2259_v45 = vpop.eup %2258 }
 0x69b   : > { %v1251_v17 = vmul.f32 %v2259_v45, %v1249_v51  ;;  %vm1256_vm4 = vweird.f32 %v2259_v45 }
 0x69c   : > { %vm1257_vm6 = vmor %vm1255_vm5, %vm1256_vm4 }
 0x69d   : > { %v1252_v44 = vsub.f32 1.0, %v1251_v17 }
 0x69f   : > { %v1253_v21 = vmul.f32 %v2259_v45, %v1252_v44 }
 0x6a1   : > { %v1254_v58 = vadd.f32 %v2259_v45, %v1253_v21 }
 0x6a3   : > { %v1258_v1 = vsel %vm1257_vm6, %v2259_v45, %v1254_v58 }
 0x6a4   : > { %v1263_v32 = vsel %vm1260_vm8, %v1262_v62, %v1258_v1 }
 0x6a5   : > { %v1265_v24 = vmul.f32 %v1263_v32, %v1243_v63  ;;  %v1268_v2 = vsub.f32 1.0, %v1263_v32  ;;  %v1274_v0 = vmul.f32 %v1263_v32, %v3230_v60 }
 0x6a7   : > { %v1266_v25 = vadd.f32 %v1265_v24, %v3099_v34 }
 0x6a9   : > { %2260 = vtanh.f32 %v1266_v25 }
 0x6af   : > { %v2261_v38 = vpop.eup %2260 }
 0x6b0   : > { %1270 = vrot.lane.b32.xlu1 %v2261_v38, %s2429_s4 }
 0x722   : > { %v1271_v39 = vpop.permute.xlu1 %1270 }
 0x723   : > { %v1273_v57 = vmul.f32 %v1271_v39, %v1268_v2 }
 0x725   : > { %v3258_v8 = vadd.f32 %v1274_v0, %v1273_v57 }
 0x727   : > { %1279 = vrot.lane.b32.xlu2 %v3258_v8, %s2429_s4 }
 0x781   : > { %v1280_v40 = vpop.permute.xlu2 %1279 }
 0x782   : > { %2092 = vmatmul.msk.f32.vlgmr.msrb.gmra.mxu0 %vm371_vm7, %v1280_v40  ;;  %2093 = vmatmul.msk.f32.vlgmr.msrb.gmra.mxu1 %vm371_vm7, %v1280_v40 }
 0x7ff   : > { %v1300_v34 = vpop.f32.mrf.mxu0  ;;  %v1320_v42 = vpop.f32.mrf.mxu1 }
 0x800   : > { %v1301_v31 = vadd.f32 %v1300_v34, %v3163_v54  ;;  %v1321_v36 = vadd.f32 %v1320_v42, %v3167_v14 }
 0x802   : > { %v1323_v43 = vadd.f32 %v1301_v31, %v3105_v3 }
 0x804   : > { %v2094_v61 = vmul.f32 -1.442695, %v1323_v43 }
 0x806   : > { %2262 = vpow2.f32 %v2094_v61 }
 0x80c   : > { %v2263_v11 = vpop.eup %2262 }
 0x80d   : > { %v1327_v15 = vadd.f32 1.0, %v2263_v11 }
 0x80f   : > { %2264 = vrcp.f32 %v1327_v15  ;;  %v1339_v29 = vand.u32 2147483648, %v1327_v15  ;;  %v1337_v18 = vand.u32 2147483647, %v1327_v15  ;;  %vm1333_vm10 = vweird.f32 %v1327_v15 }
 0x811   : > { %v1340_v48 = vor.u32 1.1754944e-38, %v1339_v29  ;;  %vm1338_vm12 = vcmp.eq.f32.partialorder %v1337_v18, 8.507059e+37 }
 0x815   : > { %v2265_v22 = vpop.eup %2264 }
 0x816   : > { %v1329_v33 = vmul.f32 %v2265_v22, %v1327_v15  ;;  %vm1334_vm9 = vweird.f32 %v2265_v22 }
 0x817   : > { %vm1335_vm11 = vmor %vm1333_vm10, %vm1334_vm9  ;;  %vm1628_vm10 = vcmask 1048064  }
 0x818   : > { %v1330_v28 = vsub.f32 1.0, %v1329_v33 }
 0x81a   : > { %v1331_v49 = vmul.f32 %v2265_v22, %v1330_v28 }
 0x81c   : > { %v1332_v46 = vadd.f32 %v2265_v22, %v1331_v49 }
 0x81e   : > { %v1336_v3 = vsel %vm1335_vm11, %v2265_v22, %v1332_v46 }
 0x81f   : > { %v1341_v37 = vsel %vm1338_vm12, %v1340_v48, %v1336_v3 }
 0x820   : > { %v1343_v50 = vmul.f32 %v1341_v37, %v1321_v36  ;;  %v1346_v17 = vsub.f32 1.0, %v1341_v37  ;;  %v1352_v52 = vmul.f32 %v1341_v37, %v3258_v8 }
 0x822   : > { %v1344_v51 = vadd.f32 %v1343_v50, %v3101_v41 }
 0x824   : > { %2266 = vtanh.f32 %v1344_v51 }
 0x82a   : > { %v2267_v45 = vpop.eup %2266 }
 0x82b   : > { %1348 = vrot.lane.b32.xlu0 %v2267_v45, %s2429_s4 }
 0x89d   : > { %v1349_v44 = vpop.permute.xlu0 %1348 }
 0x89e   : > { %v1351_v21 = vmul.f32 %v1349_v44, %v1346_v17 }
 0x8a0   : > { %v3270_v55 = vadd.f32 %v1352_v52, %v1351_v21 }
 0x8a2   : > { %1357 = vrot.lane.b32.xlu1 %v3270_v55, %s2429_s4 }
 0x914   : > { %v1358_v59 = vpop.permute.xlu1 %1357 }
 0x915   : > { %2095 = vmatmul.msk.f32.vlgmr.msra.gmra.mxu2 %vm371_vm7, %v1358_v59  ;;  %2096 = vmatmul.msk.f32.vlgmr.msra.gmra.mxu3 %vm371_vm7, %v1358_v59 }
 0x998   : > { %v1378_v41 = vpop.f32.mrf.mxu2  ;;  %v1398_v57 = vpop.f32.mrf.mxu3 }
 0x999   : > { %v1379_v58 = vadd.f32 %v1378_v41, %v3163_v54  ;;  %v1399_v31 = vadd.f32 %v1398_v57, %v3167_v14 }
 0x99b   : > { %v1401_v62 = vadd.f32 %v1379_v58, %v3119_v16 }
 0x99d   : > { %v2097_v63 = vmul.f32 -1.442695, %v1401_v62 }
 0x99f   : > { %2268 = vpow2.f32 %v2097_v63 }
 0x9a5   : > { %v2269_v1 = vpop.eup %2268 }
 0x9a6   : > { %v1405_v32 = vadd.f32 1.0, %v2269_v1 }
 0x9a8   : > { %2270 = vrcp.f32 %v1405_v32  ;;  %v1417_v2 = vand.u32 2147483648, %v1405_v32  ;;  %v1415_v0 = vand.u32 2147483647, %v1405_v32  ;;  %vm1411_vm14 = vweird.f32 %v1405_v32 }
 0x9aa   : > { %v1418_v34 = vor.u32 1.1754944e-38, %v1417_v2  ;;  %vm1416_vm0 = vcmp.eq.f32.partialorder %v1415_v0, 8.507059e+37 }
 0x9ae   : > { %v2271_v24 = vpop.eup %2270 }
 0x9af   : > { %v1407_v25 = vmul.f32 %v2271_v24, %v1405_v32  ;;  %vm1412_vm13 = vweird.f32 %v2271_v24 }
 0x9b0   : > { %vm1413_vm15 = vmor %vm1411_vm14, %vm1412_vm13 }
 0x9b1   : > { %v1408_v38 = vsub.f32 1.0, %v1407_v25 }
 0x9b3   : > { %v1409_v39 = vmul.f32 %v2271_v24, %v1408_v38 }
 0x9b5   : > { %v1410_v40 = vadd.f32 %v2271_v24, %v1409_v39 }
 0x9b7   : > { %v1414_v16 = vsel %vm1413_vm15, %v2271_v24, %v1410_v40 }
 0x9b8   : > { %v1419_v43 = vsel %vm1416_vm0, %v1418_v34, %v1414_v16  ;;  %v2237_v16 = vld [vmem:[%s759_s25] ss:$0 sm:$0xff] }
 0x9b9   : > { %v1421_v61 = vmul.f32 %v1419_v43, %v1399_v31  ;;  %v1424_v22 = vsub.f32 1.0, %v1419_v43  ;;  %v1430_v28 = vmul.f32 %v1419_v43, %v3270_v55 }
 0x9bb   : > { %v1422_v11 = vadd.f32 %v1421_v61, %v3123_v35 }
 0x9bd   : > { %2272 = vtanh.f32 %v1422_v11 }
 0x9c3   : > { %v2273_v15 = vpop.eup %2272 }
 0x9c4   : > { %1426 = vrot.lane.b32.xlu2 %v2273_v15, %s2429_s4 }
 0xa1e   : > { %v1427_v33 = vpop.permute.xlu2 %1426 }
 0xa1f   : > { %v1429_v29 = vmul.f32 %v1427_v33, %v1424_v22 }
 0xa21   : > { %v3282_v49 = vadd.f32 %v1430_v28, %v1429_v29 }
 0xa23   : > { %1435 = vrot.lane.b32.xlu0 %v3282_v49, %s2429_s4 }
 0xa95   : > { %v1436_v18 = vpop.permute.xlu0 %1435 }
 0xa96   : > { %2098 = vmatmul.msk.f32.vlgmr.msra.gmra.mxu0 %vm371_vm7, %v1436_v18  ;;  %2099 = vmatmul.msk.f32.vlgmr.msra.gmra.mxu1 %vm371_vm7, %v1436_v18 }
 0xb13   : > { %v1456_v35 = vpop.f32.mrf.mxu0  ;;  %v1476_v52 = vpop.f32.mrf.mxu1 }
 0xb14   : > { %v1457_v42 = vadd.f32 %v1456_v35, %v3163_v54  ;;  %v1477_v41 = vadd.f32 %v1476_v52, %v3167_v14 }
 0xb16   : > { %v1479_v46 = vadd.f32 %v1457_v42, %v3137_v4 }
 0xb18   : > { %v2100_v48 = vmul.f32 -1.442695, %v1479_v46 }
 0xb1a   : > { %2274 = vpow2.f32 %v2100_v48 }
 0xb20   : > { %v2275_v36 = vpop.eup %2274 }
 0xb21   : > { %v1483_v3 = vadd.f32 1.0, %v2275_v36 }
 0xb23   : > { %2276 = vrcp.f32 %v1483_v3  ;;  %v1495_v45 = vand.u32 2147483648, %v1483_v3  ;;  %v1493_v44 = vand.u32 2147483647, %v1483_v3  ;;  %vm1489_vm2 = vweird.f32 %v1483_v3 }
 0xb25   : > { %v1496_v59 = vor.u32 1.1754944e-38, %v1495_v45  ;;  %vm1494_vm4 = vcmp.eq.f32.partialorder %v1493_v44, 8.507059e+37 }
 0xb29   : > { %v2277_v37 = vpop.eup %2276 }
 0xb2a   : > { %v1485_v50 = vmul.f32 %v2277_v37, %v1483_v3  ;;  %vm1490_vm1 = vweird.f32 %v2277_v37 }
 0xb2b   : > { %vm1491_vm3 = vmor %vm1489_vm2, %vm1490_vm1 }
 0xb2c   : > { %v1486_v51 = vsub.f32 1.0, %v1485_v50 }
 0xb2e   : > { %v1487_v17 = vmul.f32 %v2277_v37, %v1486_v51  ;;  %v3642_v51 = vld [vmem:[#allocation12_spill] sm:$0xff] }
 0xb30   : > { %v1488_v21 = vadd.f32 %v2277_v37, %v1487_v17 }
 0xb32   : > { %v1492_v4 = vsel %vm1491_vm3, %v2277_v37, %v1488_v21 }
 0xb33   : > { %v1497_v58 = vsel %vm1494_vm4, %v1496_v59, %v1492_v4  ;;  %vm1995_vm4 = vcmask (%p702_p1), 31744  }
 0xb34   : > { %v1499_v62 = vmul.f32 %v1497_v58, %v1477_v41  ;;  %v1502_v32 = vsub.f32 1.0, %v1497_v58  ;;  %v1508_v25 = vmul.f32 %v1497_v58, %v3282_v49 }
 0xb36   : > { %v1500_v63 = vadd.f32 %v1499_v62, %v3145_v30 }
 0xb38   : > { %2278 = vtanh.f32 %v1500_v63 }
 0xb3e   : > { %v2279_v1 = vpop.eup %2278 }
 0xb3f   : > { %1504 = vrot.lane.b32.xlu1 %v2279_v1, %s2429_s4 }
 0xb47   : > { %1589 = vrot.lane.b32.xlu1 %v2508_v5, %s2429_s4 }
 0xb4f   : > { %1733 = vrot.lane.b32.xlu1 %v2237_v16, %s2429_s4 }
 0xbb1   : > { %v1505_v24 = vpop.permute.xlu1 %1504 }
 0xbb2   : > { %v1507_v38 = vmul.f32 %v1505_v24, %v1502_v32 }
 0xbb4   : > { %v3296_v2 = vadd.f32 %v1508_v25, %v1507_v38 }
 0xbb6   : > { %1513 = vrot.lane.b32.xlu2 %v3296_v2, %s2429_s4 }
 0xbbe   : > { %1594 = vrot.lane.b32.xlu2 %v2511_v7, %s2429_s4 }
 0xc10   : > { %v1514_v30 = vpop.permute.xlu2 %1513 }
 0xc11   : > { %2101 = vmatmul.msk.f32.vlgmr.msrb.gmra.mxu2 %vm371_vm7, %v1514_v30  ;;  %2102 = vmatmul.msk.f32.vlgmr.msrb.gmra.mxu3 %vm371_vm7, %v1514_v30 }
 0xc18   : > { %v1595_v17 = vpop.permute.xlu2 %1594 }
 0xc19   : > { %v1600_v52 = vmul.f32 %v1595_v17, %v3296_v2  ;;  %v1603_v21 = vmul.f32 %v1595_v17, %v3282_v49  ;;  %v1606_v4 = vmul.f32 %v1595_v17, %v3270_v55  ;;  %v1609_v63 = vmul.f32 %v1595_v17, %v3258_v8 }
 0xc1a   : > { %v1612_v25 = vmul.f32 %v1595_v17, %v3230_v60 }
 0xc94   : > { %v1534_v39 = vpop.f32.mrf.mxu2  ;;  %v1554_v28 = vpop.f32.mrf.mxu3 }
 0xc95   : > { %v1535_v0 = vadd.f32 %v1534_v39, %v3163_v54  ;;  %v1746_v54 = vstv %s1745_s26  ;;  %v1555_v35 = vadd.f32 %v1554_v28, %v3167_v14  ;;  %v2236_v14 = vld [vmem:[%s757_s2] ss:$0 sm:$0xff] }
 0xc96   : > { %v1752_v3 = vmul.f32 %v2394_v56, %v1746_v54  ;;  %v1747_v37 = vmul.f32 %v2414_v6, %v1746_v54  ;;  %v1751_v56 = vmul.f32 %v2398_v53, %v1746_v54  ;;  %v1754_v50 = vmul.f32 %v2386_v26, %v1746_v54 }
 0xc97   : > { %v1557_v57 = vadd.f32 %v1535_v0, %v3153_v13  ;;  %v1749_v13 = vmul.f32 %v2406_v10, %v1746_v54  ;;  %v1750_v6 = vmul.f32 %v2402_v47, %v1746_v54  ;;  %v1753_v45 = vmul.f32 %v3642_v51, %v1746_v54  ;;  %v3643_v0 = vld [vmem:[#allocation11_spill] sm:$0xff] }
 0xc98   : > { %1763 = vrot.lane.b32.xlu2 %v1747_v37, %s2429_s4 }
 0xc99   : > { %v2103_v40 = vmul.f32 -1.442695, %v1557_v57  ;;  %1767 = vrot.lane.b32.xlu1 %v1749_v13, %s2429_s4 }
 0xc9b   : > { %2280 = vpow2.f32 %v2103_v40 }
 0xca0   : > { %1769 = vrot.lane.b32.xlu2 %v1750_v6, %s2429_s4 }
 0xca1   : > { %v2281_v34 = vpop.eup %2280  ;;  %1773 = vrot.lane.b32.xlu1 %v1752_v3, %s2429_s4 }
 0xca2   : > { %v1561_v31 = vadd.f32 1.0, %v2281_v34 }
 0xca4   : > { %2282 = vrcp.f32 %v1561_v31  ;;  %v1573_v15 = vand.u32 2147483648, %v1561_v31  ;;  %v1571_v33 = vand.u32 2147483647, %v1561_v31  ;;  %vm1567_vm6 = vweird.f32 %v1561_v31 }
 0xca6   : > { %v1574_v18 = vor.u32 1.1754944e-38, %v1573_v15  ;;  %vm1572_vm9 = vcmp.eq.f32.partialorder %v1571_v33, 8.507059e+37 }
 0xca8   : > { %1775 = vrot.lane.b32.xlu2 %v1753_v45, %s2429_s4 }
 0xcaa   : > { %v2283_v43 = vpop.eup %2282 }
 0xcab   : > { %v1563_v61 = vmul.f32 %v2283_v43, %v1561_v31  ;;  %vm1568_vm5 = vweird.f32 %v2283_v43  ;;  %v1615_v31 = vmul.f32 %v1595_v17, %v3202_v27 }
 0xcac   : > { %vm1569_vm8 = vmor %vm1567_vm6, %vm1568_vm5 }
 0xcad   : > { %v1564_v11 = vsub.f32 1.0, %v1563_v61 }
 0xcaf   : > { %v1565_v22 = vmul.f32 %v2283_v43, %v1564_v11 }
 0xcb1   : > { %v1566_v29 = vadd.f32 %v2283_v43, %v1565_v22 }
 0xcb3   : > { %v1570_v42 = vsel %vm1569_vm8, %v2283_v43, %v1566_v29 }
 0xcb4   : > { %v1575_v46 = vsel %vm1572_vm9, %v1574_v18, %v1570_v42 }
 0xcb5   : > { %v1577_v48 = vmul.f32 %v1575_v46, %v1555_v35  ;;  %v1580_v44 = vsub.f32 1.0, %v1575_v46  ;;  %v1586_v26 = vmul.f32 %v1575_v46, %v3296_v2 }
 0xcb7   : > { %v1578_v36 = vadd.f32 %v1577_v48, %v3155_v9  ;;  %v1748_v9 = vmul.f32 %v2410_v12, %v1746_v54  ;;  %v1590_v12 = vpop.permute.xlu1 %1589  ;;  %v1618_v54 = vmul.f32 %v1595_v17, %v3174_v20 }
 0xcb8   : > { %v1599_v41 = vmul.f32 %v1590_v12, %v3202_v27  ;;  %v1602_v47 = vmul.f32 %v1590_v12, %v3230_v60  ;;  %v1605_v62 = vmul.f32 %v1590_v12, %v3258_v8  ;;  %v1592_v1 = vmul.f32 %v1590_v12, %v3174_v20 }
 0xcb9   : > { %2284 = vtanh.f32 %v1578_v36  ;;  %v1608_v38 = vmul.f32 %v1590_v12, %v3270_v55  ;;  %v1611_v40 = vmul.f32 %v1590_v12, %v3282_v49  ;;  %v1614_v43 = vmul.f32 %v1590_v12, %v3296_v2 }
 0xcba   : > { %v1601_v58 = vadd.f32 %v1600_v52, %v1599_v41  ;;  %v1604_v24 = vadd.f32 %v1603_v21, %v1602_v47  ;;  %v1607_v39 = vadd.f32 %v1606_v4, %v1605_v62 }
 0xcbb   : > { %v1610_v34 = vadd.f32 %v1609_v63, %v1608_v38  ;;  %v1613_v61 = vadd.f32 %v1612_v25, %v1611_v40  ;;  %v1616_v33 = vadd.f32 %v1615_v31, %v1614_v43 }
 0xcbc   : > { %v1621_v57 = vmul.f32 %v3643_v0, %v1601_v58  ;;  %v1622_v16 = vmul.f32 %v3643_v0, %v1604_v24  ;;  %v1623_v55 = vmul.f32 %v3643_v0, %v1607_v39 }
 0xcbd   : > { %v1624_v27 = vmul.f32 %v3643_v0, %v1610_v34  ;;  %v1625_v2 = vmul.f32 %v3643_v0, %v1613_v61  ;;  %v1626_v42 = vmul.f32 %v3643_v0, %v1616_v33 }
 0xcbe   : > { %v1630_v15 = vsel %vm1628_vm10, %v1621_v57, 0.0  ;;  %v1632_v28 = vsel %vm1628_vm10, %v1622_v16, 0.0  ;;  %v1634_v18 = vsel %vm1628_vm10, %v1623_v55, 0.0 }
 0xcbf   : > { %v2285_v10 = vpop.eup %2284  ;;  %v1636_v46 = vsel %vm1628_vm10, %v1624_v27, 0.0  ;;  %v1638_v20 = vsel %vm1628_vm10, %v1625_v2, 0.0 }
 0xcc0   : > { %1582 = vrot.lane.b32.xlu0 %v2285_v10, %s2429_s4  ;;  %v1640_v10 = vsel %vm1628_vm10, %v1626_v42, 0.0 }
 0xcc8   : > { %1720 = vrot.lane.b32.xlu0 %v2236_v14, %s2429_s4 }
 0xcd0   : > { %1765 = vrot.lane.b32.xlu0 %v1748_v9, %s2429_s4 }
 0xcd8   : > { %1771 = vrot.lane.b32.xlu0 %v1751_v56, %s2429_s4 }
 0xce0   : > { %1777 = vrot.lane.b32.xlu0 %v1754_v50, %s2429_s4 }
 0xd32   : > { %v1583_v53 = vpop.permute.xlu0 %1582 }
 0xd33   : > { %v1585_v59 = vmul.f32 %v1583_v53, %v1580_v44 }
 0xd35   : > { %v3347_v22 = vadd.f32 %v1586_v26, %v1585_v59  }
 0xd37   : > { %v1597_v32 = vmul.f32 %v1595_v17, %v3347_v22  ;;  %v1617_v60 = vmul.f32 %v1590_v12, %v3347_v22  ;;  %v1885_v22 = vld [vmem:[%s3627_s11 + $0xf0] sm:$0xff] (%p702_p1) }
 0xd39   : > { %v1598_v30 = vadd.f32 %v1597_v32, %v1592_v1  ;;  %v1619_v29 = vadd.f32 %v1618_v54, %v1617_v60 }
 0xd3b   : > { %v1620_v8 = vmul.f32 %v3643_v0, %v1598_v30  ;;  %v1627_v36 = vmul.f32 %v3643_v0, %v1619_v29 }
 0xd3d   : > { %v1629_v11 = vsel %vm1628_vm10, %v1620_v8, 0.0  ;;  %v1642_v14 = vsel %vm1628_vm10, %v1627_v36, 0.0 }
 0xd3e   : > { %v1631_v49 = vadd.f32 %v1630_v15, %v1629_v11 }
 0xd40   : > { %v1633_v13 = vadd.f32 %v1632_v28, %v1631_v49 }
 0xd42   : > { %v1635_v35 = vadd.f32 %v1634_v18, %v1633_v13 }
 0xd44   : > { %v1637_v48 = vadd.f32 %v1636_v46, %v1635_v35 }
 0xd46   : > { %v1639_v3 = vadd.f32 %v1638_v20, %v1637_v48 }
 0xd48   : > { %v1641_v37 = vadd.f32 %v1640_v10, %v1639_v3 }
 0xd4a   : > { %v1643_v9 = vadd.f32 %v1642_v14, %v1641_v37 }
 0xd4c   : > { %v1644_v56 = vsel %vm1628_vm10, %v1643_v9, 0.0 }
 0xd4d   : > { %v1645_v50 = vrot.slane %v1644_v56, 4 }
 0xd4f   : > { %v1646_v6 = vadd.f32 %v1645_v50, %v1644_v56  ;;  %v1721_v56 = vpop.permute.xlu0 %1720  ;;  %v1734_v50 = vpop.permute.xlu1 %1733 }
 0xd51   : > { %v1647_v51 = vrot.slane %v1646_v6, 2 }
 0xd53   : > { %v1648_v45 = vadd.f32 %v1647_v51, %v1646_v6 }
 0xd55   : > { %v1649_v17 = vrot.slane %v1648_v45, 1 }
 0xd57   : > { %v1650_v12 = vadd.f32 %v1649_v17, %v1648_v45 }
 0xd59   : > { %v1651_v44 = vmul.f32 0.0625, %v1650_v12 }
 0xd5b   : > { %v3377_v52 = vsub.f32 %v1598_v30, %v1651_v44  ;;  %v3379_v53 = vsub.f32 %v1601_v58, %v1651_v44  ;;  %v1654_v21 = vsub.f32 %v1604_v24, %v1651_v44  ;;  %v3381_v26 = vsub.f32 %v1607_v39, %v1651_v44 }
 0xd5c   : > { %v3383_v59 = vsub.f32 %v1610_v34, %v1651_v44  ;;  %v1657_v62 = vsub.f32 %v1613_v61, %v1651_v44  ;;  %v3389_v63 = vsub.f32 %v1616_v33, %v1651_v44  ;;  %v3398_v38 = vsub.f32 %v1619_v29, %v1651_v44  ;;  %v1766_v44 = vpop.permute.xlu0 %1765 }
 0xd5d   : > { %v1660_v41 = vmul.f32 %v3377_v52, %v3377_v52  ;;  %v1661_v47 = vmul.f32 %v3379_v53, %v3379_v53  ;;  %v1662_v4 = vmul.f32 %v1654_v21, %v1654_v21  ;;  %v1663_v1 = vmul.f32 %v3381_v26, %v3381_v26 }
 0xd5e   : > { %v1664_v25 = vmul.f32 %v3383_v59, %v3383_v59  ;;  %v1665_v57 = vmul.f32 %v1657_v62, %v1657_v62  ;;  %v1666_v8 = vmul.f32 %v3389_v63, %v3389_v63  ;;  %v1667_v61 = vmul.f32 %v3398_v38, %v3398_v38 }
 0xd5f   : > { %v1668_v58 = vmul.f32 %v3643_v0, %v1660_v41  ;;  %v1669_v32 = vmul.f32 %v3643_v0, %v1661_v47  ;;  %v1670_v24 = vmul.f32 %v3643_v0, %v1662_v4  ;;  %v1671_v40 = vmul.f32 %v3643_v0, %v1663_v1  ;;  %v1764_v41 = vpop.permute.xlu2 %1763  ;;  %v1768_v4 = vpop.permute.xlu1 %1767 }
 0xd60   : > { %v1672_v16 = vmul.f32 %v3643_v0, %v1664_v25  ;;  %v1673_v60 = vmul.f32 %v3643_v0, %v1665_v57  ;;  %v1674_v15 = vmul.f32 %v3643_v0, %v1666_v8  ;;  %v1675_v54 = vmul.f32 %v3643_v0, %v1667_v61  ;;  %v1862_v0 = vld [vmem:[%s3627_s11 + $0x38] sm:$0xff] (%p702_p1) }
 0xd61   : > { %v1676_v30 = vsel %vm1628_vm10, %v1668_v58, 0.0  ;;  %v1677_v39 = vsel %vm1628_vm10, %v1669_v32, 0.0  ;;  %v1679_v31 = vsel %vm1628_vm10, %v1670_v24, 0.0  ;;  %v1681_v55 = vsel %vm1628_vm10, %v1671_v40, 0.0  ;;  %1914 = vmatpush.msra.mxu0 (%p702_p1), %v1862_v0 }
 0xd62   : > { %v1678_v34 = vadd.f32 %v1677_v39, %v1676_v30  ;;  %v1683_v49 = vsel %vm1628_vm10, %v1672_v16, 0.0  ;;  %v1685_v27 = vsel %vm1628_vm10, %v1673_v60, 0.0  ;;  %v1687_v13 = vsel %vm1628_vm10, %v1674_v15, 0.0 }
 0xd63   : > { %v1689_v2 = vsel %vm1628_vm10, %v1675_v54, 0.0 }
 0xd64   : > { %v1680_v43 = vadd.f32 %v1679_v31, %v1678_v34 }
 0xd66   : > { %v1682_v11 = vadd.f32 %v1681_v55, %v1680_v43 }
 0xd67   : > { %v1774_v15 = vpop.permute.xlu1 %1773 }
 0xd68   : > { %v1684_v33 = vadd.f32 %v1683_v49, %v1682_v11 }
 0xd6a   : > { %v1686_v28 = vadd.f32 %v1685_v27, %v1684_v33 }
 0xd6c   : > { %v1688_v29 = vadd.f32 %v1687_v13, %v1686_v28 }
 0xd6e   : > { %v1690_v18 = vadd.f32 %v1689_v2, %v1688_v29 }
 0xd70   : > { %v1691_v35 = vsel %vm1628_vm10, %v1690_v18, 0.0 }
 0xd71   : > { %v1692_v42 = vrot.slane %v1691_v35, 4 }
 0xd73   : > { %v1693_v46 = vadd.f32 %v1692_v42, %v1691_v35 }
 0xd75   : > { %v1694_v48 = vrot.slane %v1693_v46, 2 }
 0xd77   : > { %v1695_v36 = vadd.f32 %v1694_v48, %v1693_v46 }
 0xd79   : > { %v1696_v20 = vrot.slane %v1695_v36, 1 }
 0xd7b   : > { %v1697_v3 = vadd.f32 %v1696_v20, %v1695_v36 }
 0xd7d   : > { %v1698_v10 = vmul.f32 0.0625, %v1697_v3  ;;  %v1878_v3 = vld [vmem:[%s3627_s11 + $0xb8] sm:$0xff] (%p702_p1) }
 0xd7e   :  { %1960 = vmatpush.msra.mxu2 (%p702_p1), %v1878_v3 }
 0xd7f   : > { %v1699_v37 = vadd.f32 1e-05, %v1698_v10 }
 0xd81   : > { %2286 = vrsqrt.f32 %v1699_v37  ;;  %vm1706_vm12 = vweird.f32 %v1699_v37 }
 0xd87   : > { %v2287_v14 = vpop.eup %2286 }
 0xd88   : > { %v1701_v9 = vmul.f32 %v2287_v14, %v1699_v37  ;;  %vm1707_vm11 = vweird.f32 %v2287_v14  ;;  %v1886_v37 = vld [vmem:[%s3627_s11 + $0xf8] sm:$0xff] (%p702_p1) }
 0xd89   : > { %vm1708_vm13 = vmor %vm1706_vm12, %vm1707_vm11  ;;  %1983 = vmatpush.msra.mxu3 (%p702_p1), %v1886_v37 }
 0xd8a   : > { %v1702_v6 = vmul.f32 %v2287_v14, %v1701_v9  ;;  %v1877_v9 = vld [vmem:[%s3627_s11 + $0xb0] sm:$0xff] (%p702_p1) }
 0xd8b   :  { %1961 = vmatpush.msra.mxu2 (%p702_p1), %v1877_v9  ;;  %1984 = vmatpush.msra.mxu3 (%p702_p1), %v1885_v22 }
 0xd8c   : > { %v1703_v51 = vmul.f32 0.5, %v1702_v6 }
 0xd8d   :  { %1962 = vmatpush.msra.mxu2 (%p702_p1), %v1876_v19  ;;  %1985 = vmatpush.msra.mxu3 (%p702_p1), %v1884_v23 }
 0xd8e   : > { %v1704_v45 = vsub.f32 1.5, %v1703_v51  ;;  %v1875_v51 = vld [vmem:[%s3627_s11 + $0xa0] sm:$0xff] (%p702_p1) }
 0xd8f   :  { %1963 = vmatpush.msra.mxu2 (%p702_p1), %v1875_v51 }
 0xd90   : > { %v1705_v17 = vmul.f32 %v2287_v14, %v1704_v45  ;;  %v1883_v45 = vld [vmem:[%s3627_s11 + $0xe0] sm:$0xff] (%p702_p1) }
 0xd91   :  { %1986 = vmatpush.msra.mxu3 (%p702_p1), %v1883_v45 }
 0xd92   : > { %v1709_v12 = vsel %vm1708_vm13, %v2287_v14, %v1705_v17 }
 0xd93   : > { %v1712_v47 = vmul.f32 %v1709_v12, %v1654_v21  ;;  %v1711_v1 = vmul.f32 %v1709_v12, %v3379_v53  ;;  %v1710_v58 = vmul.f32 %v1709_v12, %v3377_v52  ;;  %v1715_v24 = vmul.f32 %v1709_v12, %v1657_v62  ;;  %v1772_v52 = vpop.permute.xlu0 %1771  ;;  %v1770_v53 = vpop.permute.xlu2 %1769 }
 0xd94   : > { %v1714_v25 = vmul.f32 %v1709_v12, %v3383_v59  ;;  %v1713_v30 = vmul.f32 %v1709_v12, %v3381_v26  ;;  %v1717_v55 = vmul.f32 %v1709_v12, %v3398_v38  ;;  %v1716_v11 = vmul.f32 %v1709_v12, %v3389_v63 }
 0xd95   : > { %v1725_v32 = vmul.f32 %v1721_v56, %v1712_v47  ;;  %v1724_v39 = vmul.f32 %v1721_v56, %v1711_v1  ;;  %v1723_v57 = vmul.f32 %v1721_v56, %v1710_v58  ;;  %v1728_v16 = vmul.f32 %v1721_v56, %v1715_v24  ;;  %v1874_v58 = vld [vmem:[%s3627_s11 + $0x98] sm:$0xff] (%p702_p1)  ;;  %v1859_v24 = vld [vmem:[%s3627_s11 + $0x20] sm:$0xff] (%p702_p1) }
 0xd96   : > { %v1727_v43 = vmul.f32 %v1721_v56, %v1714_v25  ;;  %v1726_v21 = vmul.f32 %v1721_v56, %v1713_v30  ;;  %v1730_v27 = vmul.f32 %v1721_v56, %v1717_v55  ;;  %v1729_v28 = vmul.f32 %v1721_v56, %v1716_v11  ;;  %v1867_v25 = vld [vmem:[%s3627_s11 + $0x60] sm:$0xff] (%p702_p1)  ;;  %v1873_v30 = vld [vmem:[%s3627_s11 + $0x90] sm:$0xff] (%p702_p1)  ;;  %1964 = vmatpush.msra.mxu2 (%p702_p1), %v1874_v58 }
 0xd97   : > { %v1738_v40 = vadd.f32 %v1734_v50, %v1725_v32  ;;  %v1737_v34 = vadd.f32 %v1734_v50, %v1724_v39  ;;  %v1736_v31 = vadd.f32 %v1734_v50, %v1723_v57  ;;  %v1741_v26 = vadd.f32 %v1734_v50, %v1728_v16  ;;  %v1882_v32 = vld [vmem:[%s3627_s11 + $0xd8] sm:$0xff] (%p702_p1)  ;;  %v1881_v39 = vld [vmem:[%s3627_s11 + $0xd0] sm:$0xff] (%p702_p1) }
 0xd98   : > { %v1740_v59 = vadd.f32 %v1734_v50, %v1727_v43  ;;  %v1739_v62 = vadd.f32 %v1734_v50, %v1726_v21  ;;  %v1743_v13 = vadd.f32 %v1734_v50, %v1730_v27  ;;  %v1742_v29 = vadd.f32 %v1734_v50, %v1729_v28  ;;  %v1869_v50 = vld [vmem:[%s3627_s11 + $0x70] sm:$0xff] (%p702_p1)  ;;  %1987 = vmatpush.msra.mxu3 (%p702_p1), %v1882_v32  ;;  %v1866_v16 = vld [vmem:[%s3627_s11 + $0x58] sm:$0xff] (%p702_p1)  ;;  %v1863_v27 = vld [vmem:[%s3627_s11 + $0x40] sm:$0xff] (%p702_p1) }
 0xd99   : > { %v1789_v8 = vadd.f32 %v1768_v4, %v1738_v40  ;;  %v1788_v61 = vadd.f32 %v1766_v44, %v1737_v34  ;;  %v1787_v60 = vadd.f32 %v1764_v41, %v1736_v31  ;;  %v1792_v49 = vadd.f32 %v1774_v15, %v1741_v26  ;;  %v1868_v44 = vld [vmem:[%s3627_s11 + $0x68] sm:$0xff] (%p702_p1)  ;;  %1965 = vmatpush.msra.mxu2 (%p702_p1), %v1873_v30 }
 0xd9a   : > { %v1791_v33 = vadd.f32 %v1772_v52, %v1740_v59  ;;  %v1790_v54 = vadd.f32 %v1770_v53, %v1739_v62  ;;  %v1872_v31 = vld [vmem:[%s3627_s11 + $0x88] sm:$0xff] (%p702_p1)  ;;  %v1857_v52 = vld [vmem:[%s3627_s11 + $0x10] sm:$0xff] (%p702_p1)  ;;  %1988 = vmatpush.msra.mxu3 (%p702_p1), %v1881_v39  ;;  %v1871_v59 = vld [vmem:[%s3627_s11 + $0x80] sm:$0xff] (%p702_p1) }
 0xd9b   : > { %1807 = vrot.lane.b32.xlu0 %v1789_v8, %s2429_s4  ;;  %1805 = vrot.lane.b32.xlu2 %v1788_v61, %s2429_s4  ;;  %v1778_v2 = vpop.permute.xlu0 %1777  ;;  %v1776_v18 = vpop.permute.xlu2 %1775  ;;  %v1858_v8 = vld [vmem:[%s3627_s11 + $0x18] sm:$0xff] (%p702_p1)  ;;  %v1879_v62 = vld [vmem:[%s3627_s11 + $0xc0] sm:$0xff] (%p702_p1) }
 0xd9c   : > { %1803 = vrot.lane.b32.xlu1 %v1787_v60, %s2429_s4  ;;  %v1794_v35 = vadd.f32 %v1778_v2, %v1743_v13  ;;  %v1793_v38 = vadd.f32 %v1776_v18, %v1742_v29  ;;  %v1880_v60 = vld [vmem:[%s3627_s11 + $0xc8] sm:$0xff] (%p702_p1)  ;;  %1966 = vmatpush.msra.mxu2 (%p702_p1), %v1872_v31  ;;  %v2288_v29 = vld [vmem:[%s3628_s12] ss:$0 sm:$0xff] (%p702_p1)  ;;  %v2289_v2 = vld [vmem:[%s3628_s12 + $0x1] ss:$0 sm:$0xff] (%p702_p1) }
 0xd9d   :  { %1989 = vmatpush.msra.mxu3 (%p702_p1), %v1880_v60  ;;  %v2291_v18 = vld [vmem:[%s3628_s12 + $0x3] ss:$0 sm:$0xff] (%p702_p1) }
 0xd9e   :  { %1967 = vmatpush.msra.mxu2 (%p702_p1), %v1871_v59 }
 0xd9f   :  { %1990 = vmatpush.msra.mxu3 (%p702_p1), %v1879_v62 }
 0xda3   : > { %1813 = vrot.lane.b32.xlu0 %v1792_v49, %s2429_s4  ;;  %1811 = vrot.lane.b32.xlu2 %v1791_v33, %s2429_s4  ;;  %v1856_v33 = vld [vmem:[%s3627_s11 + $0x8] sm:$0xff] (%p702_p1) }
 0xda4   : > { %1809 = vrot.lane.b32.xlu1 %v1790_v54, %s2429_s4  ;;  %v1864_v54 = vld [vmem:[%s3627_s11 + $0x48] sm:$0xff] (%p702_p1) }
 0xdab   : > { %1817 = vrot.lane.b32.xlu2 %v1794_v35, %s2429_s4 }
 0xdac   : > { %1815 = vrot.lane.b32.xlu1 %v1793_v38, %s2429_s4 }
 0xdf5   : > { %v1806_v12 = vpop.permute.xlu2 %1805  }
 0xdf6   :  { %v1860_v12 = vld [vmem:[%s3627_s11 + $0x28] sm:$0xff] (%p702_p1) }
 0xdfd   : > { %v1812_v63 = vpop.permute.xlu2 %1811  }
 0xdfe   : > { %v3650_v53 = vmov %v1812_v63  ;;  %vm1830_vm14 = vcmp.gt.f32.partialorder (%p702_p1), %v1812_v63, 0.0 }
 0xe05   : > { %v3432_v26 = vpop.permute.xlu2 %1817  }
 0xe06   : > { %v3644_v42 = vmov %v3432_v26 }
 0xe07   : > { %v3648_v26 = vmov %v3644_v42  ;;  %v1838_v1 = vmul.f32 (%p702_p1), 0.01, %v3644_v42  ;;  %vm1832_vm2 = vcmp.gt.f32.partialorder (%p702_p1), %v3644_v42, 0.0 }
 0xe08   :  { %v1865_v26 = vld [vmem:[%s3627_s11 + $0x50] sm:$0xff] (%p702_p1) }
 0xe09   :  { %v1844_v21 = vsel (%p702_p1), %vm1832_vm2, %v3644_v42, %v1838_v1 }
 0xe0a   :  { %v1845_v11 = vmul.f32 (%p702_p1), %v2508_v5, %v1844_v21 }
 0xe0d   : > { %v3434_v10 = vpop.permute.xlu0 %1807  }
 0xe0e   : > { %v3645_v46 = vmov %v3434_v10  ;;  %v3436_v6 = vpop.permute.xlu1 %1803  }
 0xe0f   : > { %v3646_v48 = vmov %v3436_v6  ;;  %v3652_v10 = vmov %v3645_v46  ;;  %vm1828_vm0 = vcmp.gt.f32.partialorder (%p702_p1), %v3645_v46, 0.0  ;;  %v1834_v17 = vmul.f32 (%p702_p1), 0.01, %v3645_v46 }
 0xe10   : > { %v3653_v6 = vmov %v3646_v48  ;;  %v1870_v10 = vld [vmem:[%s3627_s11 + $0x78] sm:$0xff] (%p702_p1)  ;;  %v1833_v4 = vmul.f32 (%p702_p1), 0.01, %v3646_v48  ;;  %vm1827_vm1 = vcmp.gt.f32.partialorder (%p702_p1), %v3646_v48, 0.0 }
 0xe11   :  { %1937 = vmatpush.msra.mxu1 (%p702_p1), %v1870_v10  ;;  %v1840_v57 = vsel (%p702_p1), %vm1828_vm0, %v3645_v46, %v1834_v17 }
 0xe12   :  { %v1839_v43 = vsel (%p702_p1), %vm1827_vm1, %v3646_v48, %v1833_v4  ;;  %v1850_v53 = vmul.f32 (%p702_p1), %v1840_v57, %v2511_v7 }
 0xe13   :  { %1938 = vmatpush.msra.mxu1 (%p702_p1), %v1869_v50  ;;  %v1846_v15 = vmul.f32 (%p702_p1), %v1839_v43, %v2511_v7 }
 0xe14   :  { %2106 = vmatmul.msk.f32.vlgmr.msra.gmra.mxu2 (%p702_p1), %vm371_vm7, %v1850_v53 }
 0xe15   : > { %v1814_v36 = vpop.permute.xlu0 %1813   ;;  %1939 = vmatpush.msra.mxu1 (%p702_p1), %v1868_v44  ;;  %v1847_v28 = vadd.f32 (%p702_p1), %v1846_v15, %v1845_v11 }
 0xe16   : > { %v3438_v47 = vpop.permute.xlu1 %1809   ;;  %v3649_v56 = vmov %v1814_v36  ;;  %vm1831_vm15 = vcmp.gt.f32.partialorder (%p702_p1), %v1814_v36, 0.0  ;;  %v1837_v6 = vmul.f32 (%p702_p1), 0.01, %v1814_v36 }
 0xe17   : > { %v3647_v20 = vmov %v3438_v47  ;;  %v1861_v56 = vld [vmem:[%s3627_s11 + $0x30] sm:$0xff] (%p702_p1)  ;;  %1940 = vmatpush.msra.mxu1 (%p702_p1), %v1867_v25 }
 0xe18   : > { %v3651_v47 = vmov %v3647_v20  ;;  %1915 = vmatpush.msra.mxu0 (%p702_p1), %v1861_v56  ;;  %v1835_v61 = vmul.f32 (%p702_p1), 0.01, %v3647_v20  ;;  %vm1829_vm3 = vcmp.gt.f32.partialorder (%p702_p1), %v3647_v20, 0.0 }
 0xe19   :  { %v1843_v47 = vsel (%p702_p1), %vm1831_vm15, %v1814_v36, %v1837_v6  ;;  %1941 = vmatpush.msra.mxu1 (%p702_p1), %v1866_v16 }
 0xe1a   :  { %704 = sbr.rel (!%p702_p1) target bundleno = 242 (0xf2), region = 100  ;;  %1916 = vmatpush.msra.mxu0 (%p702_p1), %v1860_v12  ;;  %v1852_v40 = vmul.f32 (%p702_p1), %v2508_v5, %v1843_v47  ;;  %v1841_v49 = vsel (%p702_p1), %vm1829_vm3, %v3647_v20, %v1835_v61 }
 0xe1b   :  { %1942 = vmatpush.msra.mxu1 (%p702_p1), %v1865_v26  ;;  %v1848_v13 = vmul.f32 (%p702_p1), %v2508_v5, %v1841_v49  ;;  %v2290_v5 = vld [vmem:[%s3628_s12 + $0x2] ss:$0 sm:$0xff] (%p702_p1) }
 0xe1c   :  { %1917 = vmatpush.msra.mxu0 (%p702_p1), %v1859_v24 }
 0xe1d   :  { %1943 = vmatpush.msra.mxu1 (%p702_p1), %v1864_v54 }
 0xe1e   : > { %v1816_v14 = vpop.permute.xlu1 %1815   ;;  %1918 = vmatpush.msra.mxu0 (%p702_p1), %v1858_v8 }
 0xe1f   :  { %v1836_v14 = vmul.f32 0.01, %v1812_v63  ;;  %1944 = vmatpush.msra.mxu1 %v1863_v27 }
 0xe20   :  { %1919 = vmatpush.msra.mxu0 %v1857_v52  ;;  %2105 = vmatmul.msk.f32.vlgmr.msra.gmra.mxu1 %vm371_vm7, %v1848_v13 }
 0xe21   :  { %v1842_v41 = vsel %vm1830_vm14, %v1812_v63, %v1836_v14 }
 0xe22   :  { %v1853_v34 = vmul.f32 %v1842_v41, %v2511_v7  ;;  %v1855_v7 = vld [vmem:[%s3627_s11] sm:$0xff]  ;;  %1920 = vmatpush.msra.mxu0 %v1856_v33 }
 0xe24   :  { %v1854_v55 = vadd.f32 %v1853_v34, %v1852_v40  ;;  %1921 = vmatpush.msra.mxu0 %v1855_v7 }
 0xe25   :  { %2104 = vmatmul.msk.f32.vlgmr.msra.gmra.mxu0 %vm371_vm7, %v1847_v28 }
 0xe26   :  { %2107 = vmatmul.msk.f32.vlgmr.msra.gmra.mxu3 %vm371_vm7, %v1854_v55 }
 0xe97   :  { %v1969_v46 = vpop.f32.mrf.mxu2 }
 0xe98   :  { %v1970_v36 = vadd.f32 %v2290_v5, %v1969_v46 }
 0xe9a   :  { %1998 = vst.msk [vmem:[%s3629_s13 + $0x10] sm:$0xff] %vm1995_vm4, %v1970_v36 }
 0xe9d   :  { %v1946_v38 = vpop.f32.mrf.mxu1 }
 0xe9e   :  { %v1947_v42 = vadd.f32 %v2289_v2, %v1946_v38 }
 0xea0   :  { %1997 = vst.msk [vmem:[%s3629_s13 + $0x8] sm:$0xff] %vm1995_vm4, %v1947_v42 }
 0xea2   :  { %v1923_v35 = vpop.f32.mrf.mxu0 }
 0xea3   :  { %v1924_v63 = vadd.f32 %v2288_v29, %v1923_v35 }
 0xea5   :  { %1996 = vst.msk [vmem:[%s3629_s13] sm:$0xff] %vm1995_vm4, %v1924_v63 }
 0xea9   :  { %v1992_v48 = vpop.f32.mrf.mxu3 }
 0xeaa   :  { %v1993_v20 = vadd.f32 %v2291_v18, %v1992_v48 }
 0xeac   :  { %1999 = vst.msk [vmem:[%s3629_s13 + $0x18] sm:$0xff] %vm1995_vm4, %v1993_v20 }
 0xead   :  { %2004 = vsyncpa [#allocation4], 1 }
 0xeae   :  { %2005 = vsyncpa [#allocation6], 1 }

</bundles_post_ra>
